<compile_context>
chip_gen: v7x
topology: tpu7x:2x2x1
jax: 0.10.0
libtpu: 0.0.40
codegen_flags: <defaults>
</compile_context>

<pallas_src>
import numpy as np
import jax
import jax.numpy as jnp
from jax import lax
from jax.experimental import pallas as pl
from jax.experimental.pallas import tpu as pltpu

LANE = 128  # padded lane width for features / hidden / output


def _round_up(x, m):
    return ((x + m - 1) // m) * m


# ----------------------------------------------------------------------------
# Pallas kernel
# ----------------------------------------------------------------------------
def _ginconv_kernel(
    h_ref, e_ref, u_ref,            # lane-padded features (f32)
    src_ref, dst_ref, g2a_ref,      # incidence matrices (bf16, exactly 0/1)
    w1_ref, w2_ref, b_ref,          # stacked / BN-folded MLP params (f32)
    h_out, e_out, u_out,            # outputs, lane-padded
    acc_ref, u_node_ref, hu_ref,    # VMEM scratch, persists across grid steps
):
    f32, bf16 = jnp.float32, jnp.bfloat16
    k = pl.program_id(0)
    k_last = pl.num_programs(0) - 1

    def dotf(a, b):
        return jnp.dot(a, b, preferred_element_type=f32)

    def contract0(a, b):
        # a:[R, M], b:[R, N]  --contract axis 0-->  [M, N]  (a^T @ b, MXU-native)
        return lax.dot_general(a, b, (((0,), (0,)), ((), ())),
                               preferred_element_type=f32)

    def mlp(parts, idx):
        # Linear -> (folded eval BatchNorm) -> ReLU -> Linear.
        # x @ W1 is computed as three partial K=128 dots against the stacked
        # W1 slabs, so no lane-dim concat temp is materialized.
        base = 3 * idx * LANE
        z = b_ref[2 * idx:2 * idx + 1, :]
        z = z + dotf(parts[0], w1_ref[base:base + LANE, :])
        z = z + dotf(parts[1], w1_ref[base + LANE:base + 2 * LANE, :])
        z = z + dotf(parts[2], w1_ref[base + 2 * LANE:base + 3 * LANE, :])
        z = jnp.maximum(z, 0.0)
        return dotf(z, w2_ref[idx * LANE:(idx + 1) * LANE, :]) \
            + b_ref[2 * idx + 1:2 * idx + 2, :]

    src = src_ref[...]              # [tE, Ap] bf16 (never upcast to f32)
    dst = dst_ref[...]              # [tE, Ap] bf16

    @pl.when(k == 0)
    def _init():
        acc_ref[...] = jnp.zeros_like(acc_ref)
        # u_node[a] = global feature of the graph atom a belongs to (copy_u g2a).
        u_node = dotf(g2a_ref[...], u_ref[...].astype(bf16))        # [Ap, 128]
        u_node_ref[...] = u_node
        # bf16 [h | u_node] so the per-tile src matmul runs once at N=256.
        hu_ref[...] = jnp.concatenate([h_ref[...], u_node],
                                      axis=-1).astype(bf16)

    # ----- stage 1: bond / edge update for this E-tile ----------------------
    hu_src = dotf(src, hu_ref[...])          # [tE, 256] = [h[src] | u_node[src]]
    h_src = hu_src[:, :LANE]
    u_edge = hu_src[:, LANE:]
    h_dst = dotf(dst, hu_ref[:, :LANE])      # [tE, 128] = h[dst]
    e_new = mlp((h_src + h_dst, e_ref[...], u_edge), 0)
    # Padded edge rows give mlp(0) != 0, but their dst rows are all-zero so
    # they never reach the accumulators; the wrapper slices them off e_out.
    e_out[...] = e_new

    # ----- fused per-atom reductions: acc += dst^T @ [e_new | h_src] --------
    acc_ref[...] += contract0(
        dst, jnp.concatenate([e_new, h_src], axis=-1).astype(bf16))

    @pl.when(k == k_last)
    def _finalize():
        sum_e = acc_ref[:, :LANE]
        sum_h_a = acc_ref[:, LANE:] + h_ref[...]

        # ----- stage 2: atom / node update -----------------------------------
        h_new = mlp((sum_h_a, sum_e, u_node_ref[...]), 1)
        h_out[...] = h_new

        # ----- stage 3: global update (0.5*sum_e folded into the glob W1 slab)
        hg = contract0(g2a_ref[...],
                       jnp.concatenate([h_new, sum_e], axis=-1).astype(bf16))
        u_out[...] = mlp((hg[:, :LANE], hg[:, LANE:], u_ref[...]), 2)


# ----------------------------------------------------------------------------
# Parameter packing: fold BN, embed into lane-128 slabs, stack the 3 MLPs.
# ----------------------------------------------------------------------------
def _pack_mlp(p, part_dims, part_scales):
    hidden = p["w1"].shape[1]
    fout = p["w2"].shape[1]
    w1f = p["w1"] * p["s"]                 # fold eval-BN scale into w1
    b1f = p["b1"] * p["s"] + p["t"]        # fold eval-BN shift into b1
    W1 = jnp.zeros((len(part_dims) * LANE, LANE), jnp.float32)
    off = 0
    for i, (d, sc) in enumerate(zip(part_dims, part_scales)):
        W1 = W1.at[i * LANE:i * LANE + d, :hidden].set(sc * w1f[off:off + d, :])
        off += d
    B1 = jnp.zeros((1, LANE), jnp.float32).at[:, :hidden].set(b1f)
    W2 = jnp.zeros((LANE, LANE), jnp.float32).at[:hidden, :fout].set(p["w2"])
    B2 = jnp.zeros((1, LANE), jnp.float32).at[:, :fout].set(p["b2"])
    return W1, B1, W2, B2


# ----------------------------------------------------------------------------
# VMEM budgeting (per TPU generation) and edge-tile sizing.
# ----------------------------------------------------------------------------
def _vmem_budget_bytes():
    phys = 64 << 20                          # conservative default (v7x / unknown)
    try:
        kind = jax.devices()[0].device_kind.lower()
        if "v7" not in kind:
            phys = 128 << 20                 # v4 / v5e / v5p / v6e: 128 MiB per core
    except Exception:
        pass
    return (phys * 3) // 4                   # leave headroom for Mosaic internals


def _derive_block_e(Ap, Gp, E, budget, requested=None):
    fixed = (
        Ap * LANE * 4 * 2                    # h in + h out
        + Gp * LANE * 4 * 2                  # u in + u out
        + Ap * Gp * 2                        # g2a (bf16)
        + (9 * LANE + 3 * LANE + 8) * LANE * 4  # W1 / W2 / biases
        + Ap * 2 * LANE * 4                  # acc scratch (f32, 256 lanes)
        + Ap * LANE * 4                      # u_node scratch
        + Ap * 2 * LANE * 2                  # [h|u_node] bf16 scratch
    )
    # per edge-row, double-buffered: src+dst (bf16) + e in / e out (f32)
    per_row = 2 * (2 * Ap * 2) + 2 * (LANE * 4) + 2 * (LANE * 4)
    avail = budget - fixed - (4 << 20)
    tE = max(16, (avail // per_row) // 16 * 16) if avail > 16 * per_row else 16
    tE = min(tE, 2048)
    if requested is not None:
        tE = min(tE, max(16, _round_up(requested, 16)))
    tE = min(tE, _round_up(max(E, 1), 16))
    return int(tE)


# ----------------------------------------------------------------------------
# Wrapper
# ----------------------------------------------------------------------------
def ginconv_global_pallas(h, e, u, src, dst, g2a, params, *, block_e=None):
    A, fin = h.shape
    E = e.shape[0]
    G = u.shape[0]
    fout = params["bond"]["w2"].shape[1]

    Ap = _round_up(A, LANE)      # A is the K dim of every incidence matmul
    Gp = _round_up(G, 8)

    budget = _vmem_budget_bytes()
    tE = _derive_block_e(Ap, Gp, E, budget, requested=block_e)
    Ep = _round_up(E, tE)

    def pad2(x, rows):
        x = x.astype(jnp.float32)
        return jnp.pad(x, ((0, rows - x.shape[0]), (0, LANE - x.shape[1])))

    hp = pad2(h, Ap)
    up = pad2(u, Gp)
    ep = pad2(e, Ep)
    # 0/1 incidence matrices are exact in bf16: halves their HBM/VMEM traffic
    # and keeps the dominant contractions on the native-bf16 MXU path.
    srcb = jnp.pad(src.astype(jnp.float32),
                   ((0, Ep - E), (0, Ap - A))).astype(jnp.bfloat16)
    dstb = jnp.pad(dst.astype(jnp.float32),
                   ((0, Ep - E), (0, Ap - A))).astype(jnp.bfloat16)
    g2ab = jnp.pad(g2a.astype(jnp.float32),
                   ((0, Ap - A), (0, Gp - G))).astype(jnp.bfloat16)

    # ---- stacked / folded params (3 arrays instead of 18) ------------------
    packs = [
        _pack_mlp(params["bond"], (fin, fin, fin), (1.0, 1.0, 1.0)),
        _pack_mlp(params["atom"], (fin, fout, fin), (1.0, 1.0, 1.0)),
        _pack_mlp(params["glob"], (fout, fout, fin), (1.0, 0.5, 1.0)),
    ]
    W1_all = jnp.concatenate([pk[0] for pk in packs], axis=0)   # [1152, 128]
    W2_all = jnp.concatenate([pk[2] for pk in packs], axis=0)   # [384, 128]
    b_rows = []
    for pk in packs:
        b_rows += [pk[1], pk[3]]
    b_rows.append(jnp.zeros((2, LANE), jnp.float32))
    B_all = jnp.concatenate(b_rows, axis=0)                     # [8, 128]

    grid = (Ep // tE,)
    full = lambda shape: pl.BlockSpec(shape, lambda k: (0, 0))
    tiled = lambda shape: pl.BlockSpec(shape, lambda k: (k, 0))

    in_specs = [
        full((Ap, LANE)),        # h
        tiled((tE, LANE)),       # e
        full((Gp, LANE)),        # u
        tiled((tE, Ap)),         # src  (bf16)
        tiled((tE, Ap)),         # dst  (bf16)
        full((Ap, Gp)),          # g2a  (bf16)
        full(W1_all.shape),      # stacked W1
        full(W2_all.shape),      # stacked W2
        full(B_all.shape),       # packed biases
    ]
    out_shape = (
        jax.ShapeDtypeStruct((Ap, LANE), jnp.float32),
        jax.ShapeDtypeStruct((Ep, LANE), jnp.float32),
        jax.ShapeDtypeStruct((Gp, LANE), jnp.float32),
    )
    out_specs = (full((Ap, LANE)), tiled((tE, LANE)), full((Gp, LANE)))
    scratch = [
        pltpu.VMEM((Ap, 2 * LANE), jnp.float32),   # acc: [sum_e | sum_h]
        pltpu.VMEM((Ap, LANE), jnp.float32),       # u_node (f32, for MLPs)
        pltpu.VMEM((Ap, 2 * LANE), jnp.bfloat16),  # [h | u_node] bf16 operand
    ]

    h_o, e_o, u_o = pl.pallas_call(
        _ginconv_kernel,
        grid=grid,
        in_specs=in_specs,
        out_specs=out_specs,
        out_shape=out_shape,
        scratch_shapes=scratch,
        compiler_params=pltpu.CompilerParams(
            dimension_semantics=("arbitrary",),    # E axis is a reduction
            vmem_limit_bytes=int(budget),
        ),
    )(hp, ep, up, srcb, dstb, g2ab, W1_all, W2_all, B_all)

    return h_o[:A, :fout], e_o[:E, :fout], u_o[:G, :fout]


# ----------------------------------------------------------------------------
# Pure-JAX reference (mirrors the PyTorch/DGL forward) for a correctness check.
# ----------------------------------------------------------------------------
def _reference(h, e, u, src, dst, g2a, params):
    def mlp(x, p):
        z = x @ p["w1"] + p["b1"]
        z = z * p["s"] + p["t"]
        z = jnp.maximum(z, 0.0)
        return z @ p["w2"] + p["b2"]

    u_node = g2a @ u
    h_src = src @ h
    sum_h_e = h_src + dst @ h
    u_edge = src @ u_node
    e_new = mlp(jnp.concatenate([sum_h_e, e, u_edge], axis=-1), params["bond"])

    sum_e = dst.T @ e_new
    sum_h_a = dst.T @ h_src + h
    h_new = mlp(jnp.concatenate([sum_h_a, sum_e, u_node], axis=-1), params["atom"])

    sum_e_g = 0.5 * (g2a.T @ sum_e)
    sum_h_g = g2a.T @ h_new
    u_new = mlp(jnp.concatenate([sum_h_g, sum_e_g, u], axis=-1), params["glob"])
    return h_new, e_new, u_new


# ----------------------------------------------------------------------------
# Deterministic parameter / graph construction.
# ----------------------------------------------------------------------------
def _init_mlp_params(key, in_dim, hidden, out_dim):
    k1, k2, k3, k4 = jax.random.split(key, 4)
    lim1 = 1.0 / np.sqrt(in_dim)
    lim2 = 1.0 / np.sqrt(hidden)
    w1 = jax.random.uniform(k1, (in_dim, hidden), jnp.float32, -lim1, lim1)
    b1 = jax.random.uniform(k2, (1, hidden), jnp.float32, -lim1, lim1)
    w2 = jax.random.uniform(k3, (hidden, out_dim), jnp.float32, -lim2, lim2)
    b2 = jax.random.uniform(k4, (1, out_dim), jnp.float32, -lim2, lim2)
    # BatchNorm1d (eval mode) with PyTorch default init: gamma=1, beta=0,
    # running_mean=0, running_var=1, eps=1e-5  ->  scale / shift.
    eps = 1e-5
    gamma = jnp.ones((1, hidden), jnp.float32)
    beta = jnp.zeros((1, hidden), jnp.float32)
    rmean = jnp.zeros((1, hidden), jnp.float32)
    rvar = jnp.ones((1, hidden), jnp.float32)
    s = gamma / jnp.sqrt(rvar + eps)
    t = beta - rmean * s
    return dict(w1=w1, b1=b1, s=s, t=t, w2=w2, b2=b2)


def _make_graph(num_graphs=2, atoms_per_graph=6):
    # Two 6-atom ring molecules; bonds are bidirectional directed edges.
    src_ids, dst_ids, graph_of_atom = [], [], []
    for g in range(num_graphs):
        base = g * atoms_per_graph
        for i in range(atoms_per_graph):
            graph_of_atom.append(g)
            a = base + i
            b = base + (i + 1) % atoms_per_graph
            src_ids += [a, b]
            dst_ids += [b, a]
    A = num_graphs * atoms_per_graph
    E = len(src_ids)
    G = num_graphs
    src = np.zeros((E, A), np.float32)
    src[np.arange(E), src_ids] = 1.0
    dst = np.zeros((E, A), np.float32)
    dst[np.arange(E), dst_ids] = 1.0
    g2a = np.zeros((A, G), np.float32)
    g2a[np.arange(A), graph_of_atom] = 1.0
    return jnp.asarray(src), jnp.asarray(dst), jnp.asarray(g2a)


if __name__ == "__main__":
    in_size, out_size = 8, 16
    hidden = 3 * out_size

    key = jax.random.PRNGKey(0)
    ks = jax.random.split(key, 6)

    src, dst, g2a = _make_graph(num_graphs=2, atoms_per_graph=6)
    A, G = g2a.shape
    E = src.shape[0]

    h = jax.random.normal(ks[0], (A, in_size), jnp.float32)   # atom feats
    e = jax.random.normal(ks[1], (E, in_size), jnp.float32)   # bond feats
    u = jax.random.normal(ks[2], (G, in_size), jnp.float32)   # global feats

    params = {
        "bond": _init_mlp_params(ks[3], 3 * in_size, hidden, out_size),
        "atom": _init_mlp_params(ks[4], 2 * in_size + out_size, hidden, out_size),
        "glob": _init_mlp_params(ks[5], in_size + 2 * out_size, hidden, out_size),
    }

    # block_e=16 so the toy graph exercises the multi-step E grid + accumulator.
    h_new, e_new, u_new = jax.block_until_ready(
        ginconv_global_pallas(h, e, u, src, dst, g2a, params, block_e=16)
    )

    h_ref, e_ref, u_ref = _reference(h, e, u, src, dst, g2a, params)
    # Feature operands of the incidence matmuls are bf16 and the MXU runs at
    # default precision (both here and in the XLA reference), so compare with
    # a bf16-level tolerance; this is a wiring/semantics check.
    for got, want in ((h_new, h_ref), (e_new, e_ref), (u_new, u_ref)):
        np.testing.assert_allclose(np.asarray(got), np.asarray(want),
                                   rtol=5e-2, atol=5e-2)

    print("KERNEL_OK")
</pallas_src>

<mosaic_0001>
module attributes {stable_mosaic.version = 11 : i64} {
  func.func @_ginconv_kernel(%arg0: i32, %arg1: memref<128x128xf32, #tpu.memory_space<vmem>>, %arg2: memref<16x128xf32, #tpu.memory_space<vmem>>, %arg3: memref<8x128xf32, #tpu.memory_space<vmem>>, %arg4: memref<16x128xbf16, #tpu.memory_space<vmem>>, %arg5: memref<16x128xbf16, #tpu.memory_space<vmem>>, %arg6: memref<128x8xbf16, #tpu.memory_space<vmem>>, %arg7: memref<1152x128xf32, #tpu.memory_space<vmem>>, %arg8: memref<384x128xf32, #tpu.memory_space<vmem>>, %arg9: memref<8x128xf32, #tpu.memory_space<vmem>>, %arg10: memref<128x128xf32, #tpu.memory_space<vmem>>, %arg11: memref<16x128xf32, #tpu.memory_space<vmem>>, %arg12: memref<8x128xf32, #tpu.memory_space<vmem>>, %arg13: memref<128x256xf32, #tpu.memory_space<vmem>>, %arg14: memref<128x128xf32, #tpu.memory_space<vmem>>, %arg15: memref<128x256xbf16, #tpu.memory_space<vmem>>) attributes {dimension_semantics = [#tpu.dimension_semantics<arbitrary>], iteration_bounds = array<i64: 2>, scalar_prefetch = 0 : i64, scratch_operands = 3 : i64, tpu.core_type = #tpu.core_type<tc>, window_params = [{pipeline_mode = #tpu.pipeline_mode<synchronous>, transform_indices = @transform_0, window_bounds = array<i64: 128, 128>}, {transform_indices = @transform_1, window_bounds = array<i64: 16, 128>}, {pipeline_mode = #tpu.pipeline_mode<synchronous>, transform_indices = @transform_2, window_bounds = array<i64: 8, 128>}, {transform_indices = @transform_3, window_bounds = array<i64: 16, 128>}, {transform_indices = @transform_4, window_bounds = array<i64: 16, 128>}, {pipeline_mode = #tpu.pipeline_mode<synchronous>, transform_indices = @transform_5, window_bounds = array<i64: 128, 8>}, {pipeline_mode = #tpu.pipeline_mode<synchronous>, transform_indices = @transform_6, window_bounds = array<i64: 1152, 128>}, {pipeline_mode = #tpu.pipeline_mode<synchronous>, transform_indices = @transform_7, window_bounds = array<i64: 384, 128>}, {pipeline_mode = #tpu.pipeline_mode<synchronous>, transform_indices = @transform_8, window_bounds = array<i64: 8, 128>}, {pipeline_mode = #tpu.pipeline_mode<synchronous>, transform_indices = @transform_9, window_bounds = array<i64: 128, 128>}, {transform_indices = @transform_10, window_bounds = array<i64: 16, 128>}, {pipeline_mode = #tpu.pipeline_mode<synchronous>, transform_indices = @transform_11, window_bounds = array<i64: 8, 128>}]} {
    %c0 = arith.constant 0 : index
    %c0_0 = arith.constant 0 : index
    %0 = vector.load %arg4[%c0, %c0_0] : memref<16x128xbf16, #tpu.memory_space<vmem>>, vector<16x128xbf16>
    %c0_1 = arith.constant 0 : index
    %c0_2 = arith.constant 0 : index
    %1 = vector.load %arg5[%c0_1, %c0_2] : memref<16x128xbf16, #tpu.memory_space<vmem>>, vector<16x128xbf16>
    %c0_i32 = arith.constant 0 : i32
    %2 = arith.cmpi eq, %arg0, %c0_i32 : i32
    %3 = arith.extui %2 : i1 to i32
    %c0_i32_3 = arith.constant 0 : i32
    %4 = arith.cmpi ne, %3, %c0_i32_3 : i32
    scf.if %4 {
      %cst_33 = arith.constant 0.000000e+00 : f32
      %41 = vector.broadcast %cst_33 : f32 to vector<128x256xf32>
      %c0_34 = arith.constant 0 : index
      %c0_35 = arith.constant 0 : index
      %42 = vector.load %arg13[%c0_34, %c0_35] : memref<128x256xf32, #tpu.memory_space<vmem>>, vector<128x256xf32>
      tpu.vector_store %arg13[%c0_34, %c0_35], %41 {strides = array<i32>} : memref<128x256xf32, #tpu.memory_space<vmem>>, vector<128x256xf32>,
      %c0_36 = arith.constant 0 : index
      %c0_37 = arith.constant 0 : index
      %43 = vector.load %arg6[%c0_36, %c0_37] : memref<128x8xbf16, #tpu.memory_space<vmem>>, vector<128x8xbf16>
      %c0_38 = arith.constant 0 : index
      %c0_39 = arith.constant 0 : index
      %44 = vector.load %arg3[%c0_38, %c0_39] : memref<8x128xf32, #tpu.memory_space<vmem>>, vector<8x128xf32>
      %45 = arith.truncf %44 : vector<8x128xf32> to vector<8x128xbf16>
      %cst_40 = arith.constant dense<0.000000e+00> : vector<128x128xf32>
      %46 = tpu.matmul %43, %45, %cst_40 {dimension_numbers = #tpu.dot_dimension_numbers<[1], [0], [0], [1], [0, 0, 1, 1], [], []>} : vector<128x8xbf16>, vector<8x128xbf16>, vector<128x128xf32> -> vector<128x128xf32>
      %c0_41 = arith.constant 0 : index
      %c0_42 = arith.constant 0 : index
      %47 = vector.load %arg14[%c0_41, %c0_42] : memref<128x128xf32, #tpu.memory_space<vmem>>, vector<128x128xf32>
      tpu.vector_store %arg14[%c0_41, %c0_42], %46 {strides = array<i32>} : memref<128x128xf32, #tpu.memory_space<vmem>>, vector<128x128xf32>,
      %c0_43 = arith.constant 0 : index
      %c0_44 = arith.constant 0 : index
      %48 = vector.load %arg1[%c0_43, %c0_44] : memref<128x128xf32, #tpu.memory_space<vmem>>, vector<128x128xf32>
      %49 = tpu.concatenate %48, %46 in 1 : vector<128x128xf32>, vector<128x128xf32> -> vector<128x256xf32>
      %50 = arith.truncf %49 : vector<128x256xf32> to vector<128x256xbf16>
      %c0_45 = arith.constant 0 : index
      %c0_46 = arith.constant 0 : index
      %51 = vector.load %arg15[%c0_45, %c0_46] : memref<128x256xbf16, #tpu.memory_space<vmem>>, vector<128x256xbf16>
      tpu.vector_store %arg15[%c0_45, %c0_46], %50 {strides = array<i32>} : memref<128x256xbf16, #tpu.memory_space<vmem>>, vector<128x256xbf16>,
    } else {
    }
    %c0_4 = arith.constant 0 : index
    %c0_5 = arith.constant 0 : index
    %5 = vector.load %arg15[%c0_4, %c0_5] : memref<128x256xbf16, #tpu.memory_space<vmem>>, vector<128x256xbf16>
    %cst = arith.constant dense<0.000000e+00> : vector<16x256xf32>
    %6 = tpu.matmul %0, %5, %cst {dimension_numbers = #tpu.dot_dimension_numbers<[1], [0], [0], [1], [0, 0, 1, 1], [], []>} : vector<16x128xbf16>, vector<128x256xbf16>, vector<16x256xf32> -> vector<16x256xf32>
    %7 = vector.extract_strided_slice %6 {offsets = [0, 0], sizes = [16, 128], strides = [1, 1]} : vector<16x256xf32> to vector<16x128xf32>
    %8 = vector.extract_strided_slice %6 {offsets = [0, 128], sizes = [16, 128], strides = [1, 1]} : vector<16x256xf32> to vector<16x128xf32>
    %c0_6 = arith.constant 0 : index
    %c0_7 = arith.constant 0 : index
    %9 = vector.load %arg15[%c0_6, %c0_7] : memref<128x256xbf16, #tpu.memory_space<vmem>>, vector<128x128xbf16>
    %cst_8 = arith.constant dense<0.000000e+00> : vector<16x128xf32>
    %10 = tpu.matmul %1, %9, %cst_8 {dimension_numbers = #tpu.dot_dimension_numbers<[1], [0], [0], [1], [0, 0, 1, 1], [], []>} : vector<16x128xbf16>, vector<128x128xbf16>, vector<16x128xf32> -> vector<16x128xf32>
    %11 = arith.addf %7, %10 : vector<16x128xf32>
    %c0_9 = arith.constant 0 : index
    %c0_10 = arith.constant 0 : index
    %12 = vector.load %arg2[%c0_9, %c0_10] : memref<16x128xf32, #tpu.memory_space<vmem>>, vector<16x128xf32>
    %c0_11 = arith.constant 0 : index
    %c0_12 = arith.constant 0 : index
    %13 = vector.load %arg9[%c0_11, %c0_12] : memref<8x128xf32, #tpu.memory_space<vmem>>, vector<1x128xf32>
    %c0_13 = arith.constant 0 : index
    %c0_14 = arith.constant 0 : index
    %14 = vector.load %arg7[%c0_13, %c0_14] : memref<1152x128xf32, #tpu.memory_space<vmem>>, vector<128x128xf32>
    %cst_15 = arith.constant dense<0.000000e+00> : vector<16x128xf32>
    %15 = tpu.matmul %11, %14, %cst_15 {dimension_numbers = #tpu.dot_dimension_numbers<[1], [0], [0], [1], [0, 0, 1, 1], [], []>} : vector<16x128xf32>, vector<128x128xf32>, vector<16x128xf32> -> vector<16x128xf32>
    %16 = vector.broadcast %13 : vector<1x128xf32> to vector<16x128xf32>
    %17 = arith.addf %16, %15 : vector<16x128xf32>
    %c128 = arith.constant 128 : index
    %c0_16 = arith.constant 0 : index
    %18 = vector.load %arg7[%c128, %c0_16] : memref<1152x128xf32, #tpu.memory_space<vmem>>, vector<128x128xf32>
    %cst_17 = arith.constant dense<0.000000e+00> : vector<16x128xf32>
    %19 = tpu.matmul %12, %18, %cst_17 {dimension_numbers = #tpu.dot_dimension_numbers<[1], [0], [0], [1], [0, 0, 1, 1], [], []>} : vector<16x128xf32>, vector<128x128xf32>, vector<16x128xf32> -> vector<16x128xf32>
    %20 = arith.addf %17, %19 : vector<16x128xf32>
    %c256 = arith.constant 256 : index
    %c0_18 = arith.constant 0 : index
    %21 = vector.load %arg7[%c256, %c0_18] : memref<1152x128xf32, #tpu.memory_space<vmem>>, vector<128x128xf32>
    %cst_19 = arith.constant dense<0.000000e+00> : vector<16x128xf32>
    %22 = tpu.matmul %8, %21, %cst_19 {dimension_numbers = #tpu.dot_dimension_numbers<[1], [0], [0], [1], [0, 0, 1, 1], [], []>} : vector<16x128xf32>, vector<128x128xf32>, vector<16x128xf32> -> vector<16x128xf32>
    %23 = arith.addf %20, %22 : vector<16x128xf32>
    %cst_20 = arith.constant 0.000000e+00 : f32
    %24 = vector.broadcast %cst_20 : f32 to vector<16x128xf32>
    %25 = arith.maximumf %23, %24 : vector<16x128xf32>
    %c0_21 = arith.constant 0 : index
    %c0_22 = arith.constant 0 : index
    %26 = vector.load %arg8[%c0_21, %c0_22] : memref<384x128xf32, #tpu.memory_space<vmem>>, vector<128x128xf32>
    %cst_23 = arith.constant dense<0.000000e+00> : vector<16x128xf32>
    %27 = tpu.matmul %25, %26, %cst_23 {dimension_numbers = #tpu.dot_dimension_numbers<[1], [0], [0], [1], [0, 0, 1, 1], [], []>} : vector<16x128xf32>, vector<128x128xf32>, vector<16x128xf32> -> vector<16x128xf32>
    %c1 = arith.constant 1 : index
    %c0_24 = arith.constant 0 : index
    %28 = vector.load %arg9[%c1, %c0_24] : memref<8x128xf32, #tpu.memory_space<vmem>>, vector<1x128xf32>
    %29 = vector.broadcast %28 : vector<1x128xf32> to vector<16x128xf32>
    %30 = arith.addf %27, %29 : vector<16x128xf32>
    %c0_25 = arith.constant 0 : index
    %c0_26 = arith.constant 0 : index
    %31 = vector.load %arg11[%c0_25, %c0_26] : memref<16x128xf32, #tpu.memory_space<vmem>>, vector<16x128xf32>
    tpu.vector_store %arg11[%c0_25, %c0_26], %30 {strides = array<i32>} : memref<16x128xf32, #tpu.memory_space<vmem>>, vector<16x128xf32>,
    %c0_27 = arith.constant 0 : index
    %c0_28 = arith.constant 0 : index
    %32 = vector.load %arg13[%c0_27, %c0_28] : memref<128x256xf32, #tpu.memory_space<vmem>>, vector<128x256xf32>
    %33 = tpu.concatenate %30, %7 in 1 : vector<16x128xf32>, vector<16x128xf32> -> vector<16x256xf32>
    %34 = arith.truncf %33 : vector<16x256xf32> to vector<16x256xbf16>
    %cst_29 = arith.constant dense<0.000000e+00> : vector<128x256xf32>
    %35 = tpu.matmul %1, %34, %cst_29 {dimension_numbers = #tpu.dot_dimension_numbers<[0], [0], [1], [1], [0, 1, 1, 1], [], []>} : vector<16x128xbf16>, vector<16x256xbf16>, vector<128x256xf32> -> vector<128x256xf32>
    %36 = arith.addf %32, %35 : vector<128x256xf32>
    %c0_30 = arith.constant 0 : index
    %c0_31 = arith.constant 0 : index
    %37 = vector.load %arg13[%c0_30, %c0_31] : memref<128x256xf32, #tpu.memory_space<vmem>>, vector<128x256xf32>
    tpu.vector_store %arg13[%c0_30, %c0_31], %36 {strides = array<i32>} : memref<128x256xf32, #tpu.memory_space<vmem>>, vector<128x256xf32>,
    %c1_i32 = arith.constant 1 : i32
    %38 = arith.cmpi eq, %arg0, %c1_i32 : i32
    %39 = arith.extui %38 : i1 to i32
    %c0_i32_32 = arith.constant 0 : i32
    %40 = arith.cmpi ne, %39, %c0_i32_32 : i32
    scf.if %40 {
      %c0_33 = arith.constant 0 : index
      %c0_34 = arith.constant 0 : index
      %41 = vector.load %arg13[%c0_33, %c0_34] : memref<128x256xf32, #tpu.memory_space<vmem>>, vector<128x128xf32>
      %c0_35 = arith.constant 0 : index
      %c128_36 = arith.constant 128 : index
      %42 = vector.load %arg13[%c0_35, %c128_36] : memref<128x256xf32, #tpu.memory_space<vmem>>, vector<128x128xf32>
      %c0_37 = arith.constant 0 : index
      %c0_38 = arith.constant 0 : index
      %43 = vector.load %arg1[%c0_37, %c0_38] : memref<128x128xf32, #tpu.memory_space<vmem>>, vector<128x128xf32>
      %44 = arith.addf %42, %43 : vector<128x128xf32>
      %c0_39 = arith.constant 0 : index
      %c0_40 = arith.constant 0 : index
      %45 = vector.load %arg14[%c0_39, %c0_40] : memref<128x128xf32, #tpu.memory_space<vmem>>, vector<128x128xf32>
      %c2 = arith.constant 2 : index
      %c0_41 = arith.constant 0 : index
      %46 = vector.load %arg9[%c2, %c0_41] : memref<8x128xf32, #tpu.memory_space<vmem>>, vector<1x128xf32>
      %c384 = arith.constant 384 : index
      %c0_42 = arith.constant 0 : index
      %47 = vector.load %arg7[%c384, %c0_42] : memref<1152x128xf32, #tpu.memory_space<vmem>>, vector<128x128xf32>
      %cst_43 = arith.constant dense<0.000000e+00> : vector<128x128xf32>
      %48 = tpu.matmul %44, %47, %cst_43 {dimension_numbers = #tpu.dot_dimension_numbers<[1], [0], [0], [1], [0, 0, 1, 1], [], []>} : vector<128x128xf32>, vector<128x128xf32>, vector<128x128xf32> -> vector<128x128xf32>
      %49 = vector.broadcast %46 : vector<1x128xf32> to vector<128x128xf32>
      %50 = arith.addf %49, %48 : vector<128x128xf32>
      %c512 = arith.constant 512 : index
      %c0_44 = arith.constant 0 : index
      %51 = vector.load %arg7[%c512, %c0_44] : memref<1152x128xf32, #tpu.memory_space<vmem>>, vector<128x128xf32>
      %cst_45 = arith.constant dense<0.000000e+00> : vector<128x128xf32>
      %52 = tpu.matmul %41, %51, %cst_45 {dimension_numbers = #tpu.dot_dimension_numbers<[1], [0], [0], [1], [0, 0, 1, 1], [], []>} : vector<128x128xf32>, vector<128x128xf32>, vector<128x128xf32> -> vector<128x128xf32>
      %53 = arith.addf %50, %52 : vector<128x128xf32>
      %c640 = arith.constant 640 : index
      %c0_46 = arith.constant 0 : index
      %54 = vector.load %arg7[%c640, %c0_46] : memref<1152x128xf32, #tpu.memory_space<vmem>>, vector<128x128xf32>
      %cst_47 = arith.constant dense<0.000000e+00> : vector<128x128xf32>
      %55 = tpu.matmul %45, %54, %cst_47 {dimension_numbers = #tpu.dot_dimension_numbers<[1], [0], [0], [1], [0, 0, 1, 1], [], []>} : vector<128x128xf32>, vector<128x128xf32>, vector<128x128xf32> -> vector<128x128xf32>
      %56 = arith.addf %53, %55 : vector<128x128xf32>
      %cst_48 = arith.constant 0.000000e+00 : f32
      %57 = vector.broadcast %cst_48 : f32 to vector<128x128xf32>
      %58 = arith.maximumf %56, %57 : vector<128x128xf32>
      %c128_49 = arith.constant 128 : index
      %c0_50 = arith.constant 0 : index
      %59 = vector.load %arg8[%c128_49, %c0_50] : memref<384x128xf32, #tpu.memory_space<vmem>>, vector<128x128xf32>
      %cst_51 = arith.constant dense<0.000000e+00> : vector<128x128xf32>
      %60 = tpu.matmul %58, %59, %cst_51 {dimension_numbers = #tpu.dot_dimension_numbers<[1], [0], [0], [1], [0, 0, 1, 1], [], []>} : vector<128x128xf32>, vector<128x128xf32>, vector<128x128xf32> -> vector<128x128xf32>
      %c3 = arith.constant 3 : index
      %c0_52 = arith.constant 0 : index
      %61 = vector.load %arg9[%c3, %c0_52] : memref<8x128xf32, #tpu.memory_space<vmem>>, vector<1x128xf32>
      %62 = vector.broadcast %61 : vector<1x128xf32> to vector<128x128xf32>
      %63 = arith.addf %60, %62 : vector<128x128xf32>
      %c0_53 = arith.constant 0 : index
      %c0_54 = arith.constant 0 : index
      %64 = vector.load %arg10[%c0_53, %c0_54] : memref<128x128xf32, #tpu.memory_space<vmem>>, vector<128x128xf32>
      tpu.vector_store %arg10[%c0_53, %c0_54], %63 {strides = array<i32>} : memref<128x128xf32, #tpu.memory_space<vmem>>, vector<128x128xf32>,
      %c0_55 = arith.constant 0 : index
      %c0_56 = arith.constant 0 : index
      %65 = vector.load %arg6[%c0_55, %c0_56] : memref<128x8xbf16, #tpu.memory_space<vmem>>, vector<128x8xbf16>
      %66 = tpu.concatenate %63, %41 in 1 : vector<128x128xf32>, vector<128x128xf32> -> vector<128x256xf32>
      %67 = arith.truncf %66 : vector<128x256xf32> to vector<128x256xbf16>
      %cst_57 = arith.constant dense<0.000000e+00> : vector<8x256xf32>
      %68 = tpu.matmul %65, %67, %cst_57 {dimension_numbers = #tpu.dot_dimension_numbers<[0], [0], [1], [1], [0, 1, 1, 1], [], []>} : vector<128x8xbf16>, vector<128x256xbf16>, vector<8x256xf32> -> vector<8x256xf32>
      %69 = vector.extract_strided_slice %68 {offsets = [0, 0], sizes = [8, 128], strides = [1, 1]} : vector<8x256xf32> to vector<8x128xf32>
      %70 = vector.extract_strided_slice %68 {offsets = [0, 128], sizes = [8, 128], strides = [1, 1]} : vector<8x256xf32> to vector<8x128xf32>
      %c0_58 = arith.constant 0 : index
      %c0_59 = arith.constant 0 : index
      %71 = vector.load %arg3[%c0_58, %c0_59] : memref<8x128xf32, #tpu.memory_space<vmem>>, vector<8x128xf32>
      %c4 = arith.constant 4 : index
      %c0_60 = arith.constant 0 : index
      %72 = vector.load %arg9[%c4, %c0_60] : memref<8x128xf32, #tpu.memory_space<vmem>>, vector<1x128xf32>
      %c768 = arith.constant 768 : index
      %c0_61 = arith.constant 0 : index
      %73 = vector.load %arg7[%c768, %c0_61] : memref<1152x128xf32, #tpu.memory_space<vmem>>, vector<128x128xf32>
      %cst_62 = arith.constant dense<0.000000e+00> : vector<8x128xf32>
      %74 = tpu.matmul %69, %73, %cst_62 {dimension_numbers = #tpu.dot_dimension_numbers<[1], [0], [0], [1], [0, 0, 1, 1], [], []>} : vector<8x128xf32>, vector<128x128xf32>, vector<8x128xf32> -> vector<8x128xf32>
      %75 = vector.broadcast %72 : vector<1x128xf32> to vector<8x128xf32>
      %76 = arith.addf %75, %74 : vector<8x128xf32>
      %c896 = arith.constant 896 : index
      %c0_63 = arith.constant 0 : index
      %77 = vector.load %arg7[%c896, %c0_63] : memref<1152x128xf32, #tpu.memory_space<vmem>>, vector<128x128xf32>
      %cst_64 = arith.constant dense<0.000000e+00> : vector<8x128xf32>
      %78 = tpu.matmul %70, %77, %cst_64 {dimension_numbers = #tpu.dot_dimension_numbers<[1], [0], [0], [1], [0, 0, 1, 1], [], []>} : vector<8x128xf32>, vector<128x128xf32>, vector<8x128xf32> -> vector<8x128xf32>
      %79 = arith.addf %76, %78 : vector<8x128xf32>
      %c1024 = arith.constant 1024 : index
      %c0_65 = arith.constant 0 : index
      %80 = vector.load %arg7[%c1024, %c0_65] : memref<1152x128xf32, #tpu.memory_space<vmem>>, vector<128x128xf32>
      %cst_66 = arith.constant dense<0.000000e+00> : vector<8x128xf32>
      %81 = tpu.matmul %71, %80, %cst_66 {dimension_numbers = #tpu.dot_dimension_numbers<[1], [0], [0], [1], [0, 0, 1, 1], [], []>} : vector<8x128xf32>, vector<128x128xf32>, vector<8x128xf32> -> vector<8x128xf32>
      %82 = arith.addf %79, %81 : vector<8x128xf32>
      %cst_67 = arith.constant 0.000000e+00 : f32
      %83 = vector.broadcast %cst_67 : f32 to vector<8x128xf32>
      %84 = arith.maximumf %82, %83 : vector<8x128xf32>
      %c256_68 = arith.constant 256 : index
      %c0_69 = arith.constant 0 : index
      %85 = vector.load %arg8[%c256_68, %c0_69] : memref<384x128xf32, #tpu.memory_space<vmem>>, vector<128x128xf32>
      %cst_70 = arith.constant dense<0.000000e+00> : vector<8x128xf32>
      %86 = tpu.matmul %84, %85, %cst_70 {dimension_numbers = #tpu.dot_dimension_numbers<[1], [0], [0], [1], [0, 0, 1, 1], [], []>} : vector<8x128xf32>, vector<128x128xf32>, vector<8x128xf32> -> vector<8x128xf32>
      %c5 = arith.constant 5 : index
      %c0_71 = arith.constant 0 : index
      %87 = vector.load %arg9[%c5, %c0_71] : memref<8x128xf32, #tpu.memory_space<vmem>>, vector<1x128xf32>
      %88 = vector.broadcast %87 : vector<1x128xf32> to vector<8x128xf32>
      %89 = arith.addf %86, %88 : vector<8x128xf32>
      %c0_72 = arith.constant 0 : index
      %c0_73 = arith.constant 0 : index
      %90 = vector.load %arg12[%c0_72, %c0_73] : memref<8x128xf32, #tpu.memory_space<vmem>>, vector<8x128xf32>
      tpu.vector_store %arg12[%c0_72, %c0_73], %89 {strides = array<i32>} : memref<8x128xf32, #tpu.memory_space<vmem>>, vector<8x128xf32>,
    } else {
    }
    return
  }
  func.func @transform_0(%arg0: i32) -> (i32, i32) {
    %c0_i32 = arith.constant 0 : i32
    %c0_i32_0 = arith.constant 0 : i32
    %c0_i32_1 = arith.constant 0 : i32
    return %c0_i32, %c0_i32_0 : i32, i32
  }
  func.func @transform_1(%arg0: i32) -> (i32, i32) {
    %c0_i32 = arith.constant 0 : i32
    %c0_i32_0 = arith.constant 0 : i32
    return %arg0, %c0_i32 : i32, i32
  }
  func.func @transform_2(%arg0: i32) -> (i32, i32) {
    %c0_i32 = arith.constant 0 : i32
    %c0_i32_0 = arith.constant 0 : i32
    %c0_i32_1 = arith.constant 0 : i32
    return %c0_i32, %c0_i32_0 : i32, i32
  }
  func.func @transform_3(%arg0: i32) -> (i32, i32) {
    %c0_i32 = arith.constant 0 : i32
    %c0_i32_0 = arith.constant 0 : i32
    return %arg0, %c0_i32 : i32, i32
  }
  func.func @transform_4(%arg0: i32) -> (i32, i32) {
    %c0_i32 = arith.constant 0 : i32
    %c0_i32_0 = arith.constant 0 : i32
    return %arg0, %c0_i32 : i32, i32
  }
  func.func @transform_5(%arg0: i32) -> (i32, i32) {
    %c0_i32 = arith.constant 0 : i32
    %c0_i32_0 = arith.constant 0 : i32
    %c0_i32_1 = arith.constant 0 : i32
    return %c0_i32, %c0_i32_0 : i32, i32
  }
  func.func @transform_6(%arg0: i32) -> (i32, i32) {
    %c0_i32 = arith.constant 0 : i32
    %c0_i32_0 = arith.constant 0 : i32
    %c0_i32_1 = arith.constant 0 : i32
    return %c0_i32, %c0_i32_0 : i32, i32
  }
  func.func @transform_7(%arg0: i32) -> (i32, i32) {
    %c0_i32 = arith.constant 0 : i32
    %c0_i32_0 = arith.constant 0 : i32
    %c0_i32_1 = arith.constant 0 : i32
    return %c0_i32, %c0_i32_0 : i32, i32
  }
  func.func @transform_8(%arg0: i32) -> (i32, i32) {
    %c0_i32 = arith.constant 0 : i32
    %c0_i32_0 = arith.constant 0 : i32
    %c0_i32_1 = arith.constant 0 : i32
    return %c0_i32, %c0_i32_0 : i32, i32
  }
  func.func @transform_9(%arg0: i32) -> (i32, i32) {
    %c0_i32 = arith.constant 0 : i32
    %c0_i32_0 = arith.constant 0 : i32
    %c0_i32_1 = arith.constant 0 : i32
    return %c0_i32, %c0_i32_0 : i32, i32
  }
  func.func @transform_10(%arg0: i32) -> (i32, i32) {
    %c0_i32 = arith.constant 0 : i32
    %c0_i32_0 = arith.constant 0 : i32
    return %arg0, %c0_i32 : i32, i32
  }
  func.func @transform_11(%arg0: i32) -> (i32, i32) {
    %c0_i32 = arith.constant 0 : i32
    %c0_i32_0 = arith.constant 0 : i32
    %c0_i32_1 = arith.constant 0 : i32
    return %c0_i32, %c0_i32_0 : i32, i32
  }
}

</mosaic_0001>

<bundles_post_ra>
// kernel: tpu_custom_call.1
= control target key start
LH: loop header
LB: loop body
LE: loop exit
PB: predicated region body
PF: predicated region fallthrough
CT: control target
= control target key end

     0   :  { %s5821_s0 = inlined_call_operand.hbm [shape: f32[128,128], index: 0, kind: input, shape index: {}]   ;;  %s5822_s1 = inlined_call_operand.hbm [shape: f32[32,128], index: 1, kind: input, shape index: {}]   ;;  %s5823_s2 = inlined_call_operand.hbm [shape: f32[8,128], index: 2, kind: input, shape index: {}]   ;;  %s5824_s3 = inlined_call_operand.hbm [shape: bf16[32,128], index: 3, kind: input, shape index: {}]   ;;  %s5825_s4 = inlined_call_operand.hbm [shape: bf16[32,128], index: 4, kind: input, shape index: {}]   ;;  %s5826_s5 = inlined_call_operand.hbm [shape: bf16[128,8], index: 5, kind: input, shape index: {}]   ;;  %s5827_s6 = inlined_call_operand.hbm [shape: f32[1152,128], index: 6, kind: input, shape index: {}]   ;;  %s5828_s7 = inlined_call_operand.hbm [shape: f32[384,128], index: 7, kind: input, shape index: {}]   ;;  %s5829_s8 = inlined_call_operand.hbm [shape: f32[8,128], index: 8, kind: input, shape index: {}]   ;;  %s5830_s9 = inlined_call_operand.hbm [shape: f32[128,128], index: 9, kind: output, shape index: {0}]   ;;  %s5831_s10 = inlined_call_operand.hbm [shape: f32[32,128], index: 10, kind: output, shape index: {1}]   ;;  %s5832_s11 = inlined_call_operand.hbm [shape: f32[8,128], index: 11, kind: output, shape index: {2}]  }
   0x1   :  { %5871 = sst [smem:[#allocation41_spill]] %s5823_s2 }
   0x2   :  { %5872 = sst [smem:[#allocation42_spill]] %s5824_s3 }
   0x3   :  { %5873 = sst [smem:[#allocation43_spill]] %s5826_s5 }
   0x4   :  { %5874 = sst [smem:[#allocation44_spill]] %s5828_s7 }
   0x5   :  { %5875 = sst [smem:[#allocation45_spill]] %s5830_s9 }
   0x6   :  { %5876 = sst [smem:[#allocation46_spill]] %s5831_s10 }
   0x7   :  { %5877 = sst [smem:[#allocation47_spill]] %s5832_s11 }
   0x8   :  { %17 = vsyncpa [#allocation6], 0 }
   0x9   :  { %18 = vsyncpa [#allocation9], 0 }
   0xa   :  { %20 = vsyncpa [#allocation9 + $0x1], 0 }
   0xb   :  { %21 = vsyncpa [#allocation12], 0 }
   0xc   :  { %23 = vsyncpa [#allocation12 + $0x1], 0 }
   0xd   :  { %24 = vsyncpa [#allocation15], 0 }
   0xe   :  { %25 = vsyncpa [#allocation18], 0 }
   0xf   :  { %26 = vsyncpa [#allocation7], 0 }
  0x10   :  { %27 = vsyncpa [#allocation22], 0 }
  0x11   :  { %29 = vsyncpa [#allocation22 + $0x1], 0  ;;  %s5145_s17 = smov 0   ;;  %s5147_s18 = smov 0  }
  0x12   :  { %s5149_s19 = smov 0   ;;  %s5151_s20 = smov 0  }
  0x13 LB: > { %5878 = sst [smem:[#allocation33_spill]] %s5049_s18  ;;  %s5059_s21 = smov [#allocation10]   ;;  %s5057_s20 = sphi %s5151_s20, %s5944_s20   ;;  %s5053_s19 = sphi %s5149_s19, %s5947_s19   ;;  %s5049_s18 = sphi %s5147_s18, %s5946_s18   ;;  %s5045_s17 = sphi %s5145_s17, %s5945_s17  }
  0x14   : > { %5879 = sst [smem:[#allocation34_spill]] %s5053_s19  ;;  %s338_s22 = sshll.u32 %s5059_s21, 4  ;;  %s339_s22 = int_to_ptr.vmem [resolvable:$true] %s338_s22 }
  0x15   : > { %s5166_s23 = sadd.s32 4294967295, %s5057_s20   ;;  %p3166_p0 = scmp.ge.s32.totalorder %s5057_s20, 1 }
  0x16   : > { %5880 = sst [smem:[#allocation35_spill]] %s5166_s23  ;;  %p5833_p1 = scmp.eq.s32.totalorder %s5166_s23, 0 }
  0x17   : > { %p312_p2 = scmp.lt.s32.totalorder %s5057_s20, 3  ;;  %s5060_s25 = smov [#allocation14]  }
  0x18   : > { %s348_s26 = sshll.u32 %s5060_s25, 4  ;;  %s5061_s28 = smov [#allocation17]   ;;  %s5179_s26 = int_to_ptr.vmem [resolvable:$true] %s348_s26 }
  0x19   : > { %p5172_p4 = pnand %p3166_p0, %p312_p2  ;;  %s5187_s29 = sshll.u32 %s5061_s28, 4  ;;  %s375_s29 = int_to_ptr.vmem [resolvable:$true] %s5187_s29 }
  0x1a   : > { %s5883_s2 = sld [smem:[#allocation41_spill]] }
  0x1b   : > { %s5881_s24 = scalar_select %p5172_p4, 1, 0 }
  0x1c   : > { %p4532_p6 = pneg %p5172_p4 }
  0x1e   : > { %p5183_p7 = pnand %p4532_p6, %p5833_p1 }
  0x20   : > { %s5882_s27 = scalar_select %p5183_p7, 1, 0 }
  0x21   : > { %s4653_s13 = scalar_lea.hbm %s5883_s2, 128  ;;  %p5197_p9 = pneg %p5183_p7 }
  0x22   : > { %p4654_p8 = scmp.ne.s32.totalorder %s5883_s2, %s4653_s13  ;;  %p4660_p12 = scmp.lt.u32.totalorder %s4653_s13, %s5883_s2 }
  0x23   : > { %s5884_s16 = scalar_select %p5197_p9, 1, 0 }
  0x24   : > { %p4656_p10 = pnand %p5197_p9, %p4654_p8 }
  0x26   : > { %p4657_p11 = pneg %p4656_p10 }
  0x28   : > { %p4662_p13 = pnand %p4660_p12, %p4657_p11 }
  0x2a   : > { %4665 = shalt.err (!%p4662_p13)
}
  0x2b   : > { %s4666_s28 = scalar_lea.vmem %s339_s22, 128  ;;  %p4674_p5 = scmp.lt.s32.totalorder %s339_s22, %s339_s22 }
  0x2c   : > { %p4667_p0 = scmp.ne.s32.totalorder %s339_s22, %s4666_s28  ;;  %p4675_p3 = scmp.lt.s32.totalorder %s4666_s28, %s4666_s28 }
  0x2e   : > { %p4669_p2 = pnand %p4667_p0, %p5197_p9  ;;  %p4676_p1 = por %p4675_p3, %p4674_p5 }
  0x30   : > { %p4670_p6 = pneg %p4669_p2 }
  0x32   : > { %p4677_p4 = pnand %p4676_p1, %p4670_p6 }
  0x34   : > { %4680 = shalt.err (!%p4677_p4)
}
  0x35   : > { %4538 = dma.hbm_to_vmem [thread:$0]  (!%p5183_p7), %s5883_s2, 128, %s339_s22, [#allocation9]  }
  0x36   : > { %s5885_s5 = sld [smem:[#allocation43_spill]] }
  0x3c   : > { %s4681_s15 = scalar_lea.hbm %s5885_s5, 1024 }
  0x3d   : > { %p4682_p8 = scmp.ne.s32.totalorder %s5885_s5, %s4681_s15  ;;  %p4688_p1 = scmp.lt.u32.totalorder %s4681_s15, %s5885_s5 }
  0x3f   : > { %p4684_p10 = pnand %p4682_p8, %p5197_p9 }
  0x41   : > { %p4685_p3 = pneg %p4684_p10 }
  0x43   : > { %p4690_p4 = pnand %p4688_p1, %p4685_p3 }
  0x45   : > { %4693 = shalt.err (!%p4690_p4)
}
  0x46   : > { %s4694_s22 = scalar_lea.vmem %s5179_s26, 1024  ;;  %p4702_p13 = scmp.lt.s32.totalorder %s5179_s26, %s5179_s26 }
  0x47   : > { %p4695_p5 = scmp.ne.s32.totalorder %s5179_s26, %s4694_s22  ;;  %p4703_p0 = scmp.lt.s32.totalorder %s4694_s22, %s4694_s22 }
  0x49   : > { %p4697_p11 = pnand %p4695_p5, %p5197_p9  ;;  %p4704_p2 = por %p4703_p0, %p4702_p13 }
  0x4b   : > { %p4698_p12 = pneg %p4697_p11 }
  0x4d   : > { %p4705_p6 = pnand %p4704_p2, %p4698_p12 }
  0x4f   : > { %4708 = shalt.err (!%p4705_p6)
}
  0x50   : > { %s5841_s30 = smov 64   ;;  %s5843_s11 = smov 4  }
  0x51   : > { %4541 = dma.hbm_to_vmem [thread:$0]  (!%p5183_p7), %s5885_s5, 1024, %s5179_s26, [#allocation15], %s5841_s30, %s5841_s30, %s5843_s11  }
  0x52   : > { %s5886_s7 = sld [smem:[#allocation44_spill]] }
  0x58   : > { %s4709_s21 = scalar_lea.hbm %s5886_s7, 6144 }
  0x59   : > { %p4710_p8 = scmp.ne.s32.totalorder %s5886_s7, %s4709_s21  ;;  %p4716_p1 = scmp.lt.u32.totalorder %s4709_s21, %s5886_s7 }
  0x5b   : > { %p4712_p10 = pnand %p4710_p8, %p5197_p9 }
  0x5d   : > { %p4713_p3 = pneg %p4712_p10 }
  0x5f   : > { %p4718_p4 = pnand %p4716_p1, %p4713_p3 }
  0x61   : > { %4721 = shalt.err (!%p4718_p4)
}
  0x62   : > { %s4722_s12 = scalar_lea.vmem %s375_s29, 6144  ;;  %p4730_p13 = scmp.lt.s32.totalorder %s375_s29, %s375_s29 }
  0x63   : > { %p4723_p5 = scmp.ne.s32.totalorder %s375_s29, %s4722_s12  ;;  %p4731_p0 = scmp.lt.s32.totalorder %s4722_s12, %s4722_s12 }
  0x65   : > { %p4725_p11 = pnand %p4723_p5, %p5197_p9  ;;  %p4732_p2 = por %p4731_p0, %p4730_p13 }
  0x67   : > { %p4726_p12 = pneg %p4725_p11 }
  0x69   : > { %p4733_p6 = pnand %p4732_p2, %p4726_p12 }
  0x6b   : > { %4736 = shalt.err (!%p4733_p6)
}
  0x6c   : > { %s5836_s26 = smov 128   ;;  %s5838_s2 = smov 8  }
  0x6d   : > { %4547 = dma.hbm_to_vmem [thread:$0]  (!%p5183_p7), %s5886_s7, 6144, %s375_s29, [#allocation18], %s5836_s26, %s5836_s26, %s5838_s2  }
  0x6e   : > { %s5840_s15 = sadd.s32 4294967294, %s5057_s20   ;;  %s5263_s21 = sadd.s32 1, %s5057_s20  }
  0x6f   : > { %5887 = sst [smem:[#allocation36_spill]] %s5263_s21  ;;  %s63_s25 = sadd.s32 1, %s5053_s19 }
  0x70   : > { %s60_s28 = ssub.s32 %s5057_s20, %s5263_s21  ;;  %p70_p8 = scmp.ne.s32.totalorder %s5053_s19, %s5049_s18 }
  0x71   : > { %p61_p10 = scmp.eq.s32.totalorder %s60_s28, 0  ;;  %p71_p3 = scmp.eq.s32.totalorder %s5057_s20, 0 }
  0x72   : > { %p76_p1 = scmp.ne.s32.totalorder %s5049_s18, %s5045_s17  ;;  %p5849_p4 = scmp.eq.s32.totalorder %s5166_s23, 1 }
  0x73   : > { %s5275_s22 = scalar_select %p61_p10, %s5053_s19, %s63_s25  }
  0x74   : > { %p72_p5 = por %p71_p3, %p70_p8  ;;  %p5889_p11 = scmp.eq.s32.totalorder %s5166_s23, 0 }
  0x75   : > { %5888 = sst [smem:[#allocation37_spill]] %s5275_s22  ;;  %p5285_p13 = por %p5849_p4, %p70_p8 }
  0x76   : > { %p5279_p12 = por %p5889_p11, %p76_p1  ;;  %p284_p0 = scmp.eq.s32.totalorder %s5840_s15, 1 }
  0x77   : > { %s5892_s12 = scalar_select %p5285_p13, 1, 0 }
  0x78   : > { %s5890_s29 = scalar_select %p5279_p12, 1, 0 }
  0x79   : > { %5893 = sst [smem:[#allocation39_spill]] %s5892_s12  ;;  %p4571_p2 = scmp.lt.s32.totalorder %s5057_s20, 2 }
  0x7a   : > { %5891 = sst [smem:[#allocation38_spill]] %s5890_s29  ;;  %p5293_p6 = por %p284_p0, %p76_p1 }
  0x7b   : > { %s401_s14 = sand.u32 1, %s5053_s19   ;;  %p5298_p10 = pnand %p4571_p2, %p72_p5 }
  0x7c   : > { %s5894_s17 = scalar_select %p5293_p6, 1, 0 }
  0x7d   : > { %s5896_s25 = scalar_select %p5298_p10, 1, 0 }
  0x7e   : > { %5895 = sst [smem:[#allocation40_spill]] %s5894_s17  ;;  %s5302_s28 = sshll.u32 %s401_s14, 4 }
  0x7f   : > { %s5304_s26 = sshll.u32 %s401_s14, 3  ;;  %s5846_s2 = sshll.u32 %s5057_s20, 7 }
  0x80   : > { %s5897_s3 = sld [smem:[#allocation42_spill]]  ;;  %s424_s13 = scalar_lea.vmem [#allocation11], %s5304_s26 }
  0x81   : > { %s431_s5 = sshll.u32 %s424_s13, 4  ;;  %s5898_s7 = sand.u32 1, %s5057_s20   ;;  %s5315_s5 = int_to_ptr.vmem [resolvable:$true] %s431_s5 }
  0x82   : > { %s5319_s22 = scalar_lea.sflag [#allocation12], %s5898_s7  ;;  %p5325_p3 = pneg %p5298_p10 }
  0x84   : > { %s5899_s19 = scalar_select %p5325_p3, 1, 0 }
  0x86   : > { %s5312_s11 = scalar_lea.hbm %s5897_s3, %s5846_s2  ;;  %s4742_s13 = scalar_lea.hbm %s5897_s3, 256 }
  0x87   : > { %s4737_s14 = scalar_lea.hbm %s5312_s11, 128  ;;  %p4743_p11 = scmp.lt.u32.totalorder %s5312_s11, %s5897_s3 }
  0x88   : > { %p4738_p8 = scmp.ne.s32.totalorder %s5312_s11, %s4737_s14  ;;  %p4744_p0 = scmp.lt.u32.totalorder %s4742_s13, %s4737_s14 }
  0x89   : > { %p4746_p4 = scmp.lt.u32.totalorder %s4737_s14, %s5312_s11 }
  0x8a   : > { %p4740_p1 = pnand %p5325_p3, %p4738_p8  ;;  %p4745_p2 = por %p4744_p0, %p4743_p11 }
  0x8c   : > { %p4741_p5 = pneg %p4740_p1  ;;  %p4747_p6 = por %p4746_p4, %p4745_p2 }
  0x8e   : > { %p4748_p13 = pnand %p4747_p6, %p4741_p5 }
  0x90   : > { %4751 = shalt.err (!%p4748_p13)
}
  0x91   : > { %s4752_s7 = scalar_lea.vmem %s5315_s5, 128  ;;  %s5066_s30 = smov [#allocation11]  }
  0x92   : > { %p4753_p8 = scmp.ne.s32.totalorder %s5315_s5, %s4752_s7  ;;  %s4757_s15 = sshll.u32 %s5066_s30, 4  ;;  %s4758_s15 = int_to_ptr.vmem [resolvable:$false] %s4757_s15 }
  0x93   : > { %s4759_s2 = scalar_lea.vmem %s4758_s15, 256  ;;  %p4760_p7 = scmp.lt.s32.totalorder %s5315_s5, %s4758_s15 }
  0x94   : > { %p4755_p1 = pnand %p4753_p8, %p5325_p3  ;;  %p4761_p9 = scmp.lt.s32.totalorder %s4759_s2, %s4752_s7 }
  0x96   : > { %p4756_p12 = pneg %p4755_p1  ;;  %p4762_p11 = por %p4761_p9, %p4760_p7 }
  0x98   : > { %p4763_p0 = pnand %p4762_p11, %p4756_p12 }
  0x9a   : > { %4766 = shalt.err (!%p4763_p0)
}
  0x9b   : > { %s5900_s21 = smov 4   ;;  %s5901_s14 = smov 64  }
  0x9c   : > { %4557 = dma.hbm_to_vmem [thread:$0]  (!%p5298_p10), %s5312_s11, 128, %s5315_s5, %s5319_s22, %s5901_s14, %s5901_s14, %s5900_s21  }
  0x9d   : > { %s5902_s13 = sshll.u32 %s5057_s20, 7  ;;  %s445_s15 = scalar_lea.vmem [#allocation13], %s5304_s26 }
  0x9e   : > { %s5357_s7 = scalar_lea.hbm %s5825_s4, %s5902_s13  ;;  %s452_s2 = sshll.u32 %s445_s15, 4  ;;  %s5360_s2 = int_to_ptr.vmem [resolvable:$true] %s452_s2 }
  0x9f   : > { %s5067_s17 = smov [#allocation5]   ;;  %s5068_s10 = smov [#allocation16]  }
  0xa0   : > { %s324_s9 = sshll.u32 %s5067_s17, 4  ;;  %s361_s12 = sshll.u32 %s5068_s10, 4  ;;  %s325_s9 = int_to_ptr.vmem [resolvable:$true] %s324_s9  ;;  %s362_s12 = int_to_ptr.vmem [resolvable:$true] %s361_s12 }
  0xa1   : > { %s4767_s23 = scalar_lea.hbm %s5821_s0, 2048  ;;  %p5903_p9 = scmp.ne.s32.totalorder %s5884_s16, 0 }
  0xa2   : > { %p4768_p7 = scmp.ne.s32.totalorder %s5821_s0, %s4767_s23  ;;  %p4774_p13 = scmp.lt.u32.totalorder %s4767_s23, %s5821_s0 }
  0xa4   : > { %p4770_p4 = pnand %p4768_p7, %p5903_p9 }
  0xa6   : > { %p4771_p12 = pneg %p4770_p4 }
  0xa8   : > { %p4776_p6 = pnand %p4774_p13, %p4771_p12 }
  0xaa   : > { %4779 = shalt.err (!%p4776_p6)
}
  0xab   : > { %s4780_s17 = scalar_lea.vmem %s325_s9, 2048  ;;  %p4788_p1 = scmp.lt.s32.totalorder %s325_s9, %s325_s9 }
  0xac   : > { %p4781_p5 = scmp.ne.s32.totalorder %s325_s9, %s4780_s17  ;;  %p4789_p11 = scmp.lt.s32.totalorder %s4780_s17, %s4780_s17 }
  0xae   : > { %p4783_p2 = pnand %p4781_p5, %p5903_p9  ;;  %p4790_p0 = por %p4789_p11, %p4788_p1 }
  0xb0   : > { %p4784_p8 = pneg %p4783_p2 }
  0xb2   : > { %p4791_p10 = pnand %p4790_p0, %p4784_p8 }
  0xb4   : > { %4794 = shalt.err (!%p4791_p10)
}
  0xb5   : > { %p5904_p7 = scmp.ne.s32.totalorder %s5882_s27, 0  ;;  %s5905_s10 = smov 8  }
  0xb6   : > { %s5906_s18 = smov 128   ;;  %s4795_s15 = scalar_lea.hbm %s5827_s6, 18432 }
  0xb7   : > { %4535 = dma.hbm_to_vmem [thread:$0]  (!%p5904_p7), %s5821_s0, 2048, %s325_s9, [#allocation6], %s5906_s18, %s5906_s18, %s5905_s10  }
  0xb8   : > { %p4796_p4 = scmp.ne.s32.totalorder %s5827_s6, %s4795_s15  ;;  %p4802_p13 = scmp.lt.u32.totalorder %s4795_s15, %s5827_s6 }
  0xba   : > { %p4798_p10 = pnand %p4796_p4, %p5903_p9 }
  0xbc   : > { %p4799_p12 = pneg %p4798_p10 }
  0xbe   : > { %p4804_p6 = pnand %p4802_p13, %p4799_p12 }
  0xc0   : > { %4807 = shalt.err (!%p4804_p6)
}
  0xc1   : > { %s4808_s17 = scalar_lea.vmem %s362_s12, 18432  ;;  %p4816_p1 = scmp.lt.s32.totalorder %s362_s12, %s362_s12 }
  0xc2   : > { %p4809_p5 = scmp.ne.s32.totalorder %s362_s12, %s4808_s17  ;;  %p4817_p11 = scmp.lt.s32.totalorder %s4808_s17, %s4808_s17 }
  0xc4   : > { %p4811_p2 = pnand %p4809_p5, %p5903_p9  ;;  %p4818_p0 = por %p4817_p11, %p4816_p1 }
  0xc6   : > { %p4812_p8 = pneg %p4811_p2 }
  0xc8   : > { %p4819_p3 = pnand %p4818_p0, %p4812_p8 }
  0xca   : > { %4822 = shalt.err (!%p4819_p3)
}
  0xcb   : > { %4544 = dma.hbm_to_vmem [thread:$0]  (!%p5904_p7), %s5827_s6, 18432, %s362_s12, [#allocation15], %s5906_s18, %s5906_s18, %s5905_s10  }
  0xcc   : > { %s5069_s23 = smov [#allocation19]   ;;  %s3245_s30 = sshll.u32 %s5057_s20, 8 }
  0xcd   : > { %s388_s13 = sshll.u32 %s5069_s23, 4  ;;  %s4823_s11 = scalar_lea.hbm %s5829_s8, 128  ;;  %s389_s13 = int_to_ptr.vmem [resolvable:$true] %s388_s13 }
  0xce   : > { %p4824_p3 = scmp.ne.s32.totalorder %s5829_s8, %s4823_s11  ;;  %p4830_p12 = scmp.lt.u32.totalorder %s4823_s11, %s5829_s8 }
  0xd0   : > { %p4826_p4 = pnand %p4824_p3, %p5903_p9 }
  0xd2   : > { %p4827_p10 = pneg %p4826_p4 }
  0xd4   : > { %p4832_p13 = pnand %p4830_p12, %p4827_p10 }
  0xd6   : > { %4835 = shalt.err (!%p4832_p13)
}
  0xd7   : > { %s4836_s12 = scalar_lea.vmem %s389_s13, 128  ;;  %p4844_p8 = scmp.lt.s32.totalorder %s389_s13, %s389_s13 }
  0xd8   : > { %p4837_p6 = scmp.ne.s32.totalorder %s389_s13, %s4836_s12  ;;  %p4845_p1 = scmp.lt.s32.totalorder %s4836_s12, %s4836_s12 }
  0xda   : > { %p4839_p5 = pnand %p4837_p6, %p5903_p9  ;;  %p4846_p11 = por %p4845_p1, %p4844_p8 }
  0xdc   : > { %p4840_p2 = pneg %p4839_p5 }
  0xde   : > { %p4847_p0 = pnand %p4846_p11, %p4840_p2 }
  0xe0   : > { %4850 = shalt.err (!%p4847_p0)
}
  0xe1   : > { %4550 = dma.hbm_to_vmem [thread:$0]  (!%p5904_p7), %s5829_s8, 128, %s389_s13, [#allocation18]  }
  0xe2   : > { %s5426_s16 = scalar_lea.hbm %s5822_s1, %s3245_s30  ;;  %s403_s11 = scalar_lea.vmem [#allocation8], %s5302_s28 }
  0xe3   : > { %s410_s3 = sshll.u32 %s403_s11, 4  ;;  %s5907_s27 = sand.u32 1, %s5057_s20   ;;  %s5429_s3 = int_to_ptr.vmem [resolvable:$true] %s410_s3 }
  0xe4   : > { %s5433_s26 = scalar_lea.sflag [#allocation9], %s5907_s27  ;;  %s4851_s17 = scalar_lea.hbm %s5426_s16, 256 }
  0xe5   : > { %p4852_p9 = scmp.ne.s32.totalorder %s5426_s16, %s4851_s17  ;;  %p5908_p3 = scmp.ne.s32.totalorder %s5899_s19, 0 }
  0xe6   : > { %s4856_s30 = scalar_lea.hbm %s5822_s1, 512  ;;  %p4857_p10 = scmp.lt.u32.totalorder %s5426_s16, %s5822_s1 }
  0xe7   : > { %p4854_p7 = pnand %p4852_p9, %p5908_p3  ;;  %p4858_p12 = scmp.lt.u32.totalorder %s4856_s30, %s4851_s17 }
  0xe8   : > { %p4860_p6 = scmp.lt.u32.totalorder %s4851_s17, %s5426_s16 }
  0xe9   : > { %p4855_p4 = pneg %p4854_p7  ;;  %p4859_p13 = por %p4858_p12, %p4857_p10 }
  0xeb   : > { %p4861_p5 = por %p4860_p6, %p4859_p13 }
  0xed   : > { %p4862_p2 = pnand %p4861_p5, %p4855_p4 }
  0xef   : > { %4865 = shalt.err (!%p4862_p2)
}
  0xf0   : > { %s4866_s28 = scalar_lea.vmem %s5429_s3, 256  ;;  %s5070_s23 = smov [#allocation8]  }
  0xf1   : > { %p4867_p8 = scmp.ne.s32.totalorder %s5429_s3, %s4866_s28  ;;  %s4871_s15 = sshll.u32 %s5070_s23, 4  ;;  %s4872_s15 = int_to_ptr.vmem [resolvable:$false] %s4871_s15 }
  0xf2   : > { %s4873_s5 = scalar_lea.vmem %s4872_s15, 512  ;;  %p4874_p0 = scmp.lt.s32.totalorder %s5429_s3, %s4872_s15 }
  0xf3   : > { %p4869_p1 = pnand %p4867_p8, %p5908_p3  ;;  %p4875_p9 = scmp.lt.s32.totalorder %s4873_s5, %s4866_s28 }
  0xf5   : > { %p4870_p11 = pneg %p4869_p1  ;;  %p4876_p7 = por %p4875_p9, %p4874_p0 }
  0xf7   : > { %p4877_p10 = pnand %p4876_p7, %p4870_p11 }
  0xf9   : > { %4880 = shalt.err (!%p4877_p10)
}
  0xfa   : > { %p5909_p4 = scmp.ne.s32.totalorder %s5896_s25, 0  ;;  %s4881_s11 = scalar_lea.hbm %s5357_s7, 128 }
  0xfb   : > { %p4882_p12 = scmp.ne.s32.totalorder %s5357_s7, %s4881_s11  ;;  %s4886_s13 = scalar_lea.hbm %s5825_s4, 256 }
  0xfc   : > { %4554 = dma.hbm_to_vmem [thread:$0]  (!%p5909_p4), %s5426_s16, 256, %s5429_s3, %s5433_s26, %s5906_s18, %s5906_s18, %s5905_s10  }
  0xfd   : > { %p4884_p13 = pnand %p4882_p12, %p5908_p3  ;;  %p4887_p5 = scmp.lt.u32.totalorder %s5357_s7, %s5825_s4 }
  0xfe   : > { %p4888_p2 = scmp.lt.u32.totalorder %s4886_s13, %s4881_s11  ;;  %p4890_p1 = scmp.lt.u32.totalorder %s4881_s11, %s5357_s7 }
  0xff   : > { %p4885_p6 = pneg %p4884_p13 }
 0x100   : > { %p4889_p8 = por %p4888_p2, %p4887_p5 }
 0x102   : > { %p4891_p11 = por %p4890_p1, %p4889_p8 }
 0x104   : > { %p4892_p0 = pnand %p4891_p11, %p4885_p6 }
 0x106   : > { %4895 = shalt.err (!%p4892_p0)
}
 0x107   : > { %s4896_s10 = scalar_lea.vmem %s5360_s2, 128  ;;  %s5071_s18 = smov [#allocation13]  }
 0x108   : > { %p4897_p9 = scmp.ne.s32.totalorder %s5360_s2, %s4896_s10  ;;  %s4901_s16 = sshll.u32 %s5071_s18, 4  ;;  %s4902_s16 = int_to_ptr.vmem [resolvable:$false] %s4901_s16 }
 0x109   : > { %s4903_s3 = scalar_lea.vmem %s4902_s16, 256  ;;  %p4904_p12 = scmp.lt.s32.totalorder %s5360_s2, %s4902_s16 }
 0x10a   : > { %p4899_p7 = pnand %p4897_p9, %p5908_p3  ;;  %p4905_p13 = scmp.lt.s32.totalorder %s4903_s3, %s4896_s10 }
 0x10c   : > { %p4900_p10 = pneg %p4899_p7  ;;  %p4906_p5 = por %p4905_p13, %p4904_p12 }
 0x10e   : > { %p4907_p2 = pnand %p4906_p5, %p4900_p10 }
 0x110   : > { %4910 = shalt.err (!%p4907_p2)
}
 0x111   : > { %4560 = dma.hbm_to_vmem [thread:$0]  (!%p5909_p4), %s5357_s7, 128, %s5360_s2, %s5319_s22, %s5901_s14, %s5901_s14, %s5900_s21  }
 0x112   : > { %p5910_p3 = scmp.ne.s32.totalorder %s5881_s24, 0 }
 0x113   : > { %s5911_s19 = sld [smem:[#allocation35_spill]] (!%p5910_p3) }
 0x114   : > { %464 = sbr.rel (%p5910_p3) target bundleno = 2893 (0xb4d), region = 56 }
 0x119   : > { %p5912_p6 = scmp.eq.s32.totalorder (!%p5910_p3), %s5911_s19, 0 }
 0x11b   : > { %5008 = dma.done.wait (%p5912_p6), [#allocation6], 2048   ;;  %p5913_p8 = pmov %p5912_p6 }
 0x11c   : > { %s5914_s26 = sld [smem:[#allocation33_spill]]  ;;  %s5915_s12 = sld [smem:[#allocation38_spill]] }
 0x11d   : > { %5010 = vsyncadd (%p5913_p8), [#allocation6], 4294965248  ;;  %s5492_s25 = sand.u32 1, %s5911_s19  }
 0x11e   : > { %s471_s22 = scalar_lea.sflag [#allocation9], %s5492_s25 }
 0x122   : > { %s472_s29 = sand.u32 1, %s5914_s26   ;;  %p5916_p4 = scmp.ne.s32.totalorder %s5915_s12, 0 }
 0x123   : > { %s5495_s28 = sshll.u32 %s472_s29, 4 }
 0x124   : > { %s474_s21 = scalar_lea.vmem [#allocation8], %s5495_s28 }
 0x125   : > { %5012 = dma.done.wait (%p5916_p4), %s471_s22, 256  }
 0x126   : > { %5014 = vsyncadd (%p5916_p4), %s471_s22, 4294967040  ;;  %p5917_p1 = pmov %p5912_p6 }
 0x128   : > { %5016 = dma.done.wait (%p5917_p1), [#allocation9], 128   ;;  %p5918_p11 = pmov %p5917_p1 }
 0x129   : > { %s3187_s24 = sshll.u32 %s472_s29, 3  ;;  %s484_s14 = scalar_lea.sflag [#allocation12], %s5492_s25 }
 0x12a   : > { %5018 = vsyncadd (%p5918_p11), [#allocation9], 4294967168  ;;  %s487_s7 = scalar_lea.vmem [#allocation11], %s3187_s24 }
 0x12b   : > { %5020 = dma.done.wait (%p5916_p4), %s484_s14, 256  }
 0x12c   : > { %5022 = vsyncadd (%p5916_p4), %s484_s14, 4294967040  ;;  %s496_s2 = scalar_lea.vmem [#allocation13], %s3187_s24  ;;  %p5919_p0 = pmov %p5917_p1 }
 0x12e   : > { %5024 = dma.done.wait (%p5919_p0), [#allocation15], 19456   ;;  %p5920_p9 = pmov %p5919_p0 }
 0x12f   : > { %p5921_p7 = pmov %p5919_p0 }
 0x130   : > { %5026 = vsyncadd (%p5920_p9), [#allocation15], 4294947840 }
 0x131   : > { %5028 = dma.done.wait (%p5921_p7), [#allocation18], 6272   ;;  %p5922_p10 = pmov %p5919_p0 }
 0x132   : > { %v5520_v0 = vld [vmem:[%s487_s7] sm:$0xf]  ;;  %v5522_v1 = vld [vmem:[%s487_s7 + $0x4] sm:$0xf]  ;;  %v5524_v2 = vld [vmem:[%s496_s2] sm:$0xf] }
 0x133   : > { %5030 = vsyncadd (%p5922_p10), [#allocation18], 4294961024  ;;  %v5526_v3 = vld [vmem:[%s496_s2 + $0x4] sm:$0xf]  ;;  %s5529_s23 = scalar_lea.vmem [#allocation21], %s5495_s28  ;;  %p5923_p12 = scmp.ne.s32.totalorder %s5911_s19, 0 }
 0x134   : > { %v622_v4 = vld [vmem:[#allocation10] sm:$0xff] (!%p5923_p12)  ;;  %vm689_vm0 = vcmask (!%p5923_p12), 1043456   ;;  %v4637_v5 = vld [vmem:[#allocation14] sm:$0xff] (!%p5923_p12)   ;;  %v5072_v6 = vmov (!%p5923_p12), 0.0   ;;  %vm664_vm1 = vcmask (!%p5923_p12), 64512   ;;  %v4639_v10 = vld [vmem:[#allocation14 + $0x8] sm:$0xff] (!%p5923_p12)  }
 0x135   : > { %573 = sbr.rel (%p5923_p12) target bundleno = 541 (0x21d), region = 96  ;;  %574 = vst [vmem:[#allocation2] sm:$0xff] (!%p5923_p12), %v5072_v6  ;;  %575 = vst [vmem:[#allocation2 + $0x8] sm:$0xff] (!%p5923_p12), %v5072_v6  ;;  %v623_v7 = vpack.c.bf16 (!%p5923_p12), %v622_v4, %v622_v4  ;;  %v4638_v8 = vld [vmem:[#allocation14 + $0x20] sm:$0xff] (!%p5923_p12)   ;;  %3537 = vmatprep.mubr.msk.bf16.mxu0 (!%p5923_p12), %vm664_vm1, %v4637_v5  ;;  %v4640_v11 = vld [vmem:[#allocation14 + $0x28] sm:$0xff] (!%p5923_p12)  }
 0x136   : > { %576 = vst [vmem:[#allocation2 + $0x10] sm:$0xff] (!%p5923_p12), %v5072_v6  ;;  %577 = vst [vmem:[#allocation2 + $0x18] sm:$0xff] (!%p5923_p12), %v5072_v6  ;;  %3545 = vmatprep.mubr.msk.bf16.mxu1 (!%p5923_p12), %vm664_vm1, %v4638_v8  ;;  %v4641_v12 = vld [vmem:[#allocation14 + $0x10] sm:$0xff] (!%p5923_p12)   ;;  %v4643_v14 = vld [vmem:[#allocation14 + $0x18] sm:$0xff] (!%p5923_p12)  }
 0x137   : > { %578 = vst [vmem:[#allocation2 + $0x20] sm:$0xff] (!%p5923_p12), %v5072_v6  ;;  %579 = vst [vmem:[#allocation2 + $0x28] sm:$0xff] (!%p5923_p12), %v5072_v6  ;;  %4490 = vmatprep.subr.msk.bf16.mxu0 (!%p5923_p12), %vm689_vm0, %v623_v7  ;;  %4491 = vmatprep.subr.msk.bf16.mxu1 (!%p5923_p12), %vm689_vm0, %v623_v7  ;;  %v691_v9 = vsel (!%p5923_p12), %vm689_vm0, %v623_v7, 0  ;;  %v4642_v13 = vld [vmem:[#allocation14 + $0x30] sm:$0xff] (!%p5923_p12)   ;;  %v4644_v15 = vld [vmem:[#allocation14 + $0x38] sm:$0xff] (!%p5923_p12)  }
 0x138   : > { %580 = vst [vmem:[#allocation2 + $0x30] sm:$0xff] (!%p5923_p12), %v5072_v6  ;;  %581 = vst [vmem:[#allocation2 + $0x38] sm:$0xff] (!%p5923_p12), %v5072_v6  ;;  %3536 = vmatpush3.bf16.msra.mxu0 (!%p5923_p12), %v691_v9  ;;  %4430 = vmatpush3.bf16.msra.mxu1 (!%p5923_p12), %v691_v9  ;;  %v806_v16 = vld [vmem:[#allocation5] sm:$0xff] (!%p5923_p12)  ;;  %v807_v17 = vld [vmem:[#allocation5 + $0x8] sm:$0xff] (!%p5923_p12) }
 0x139   : > { %582 = vst [vmem:[#allocation2 + $0x40] sm:$0xff] (!%p5923_p12), %v5072_v6  ;;  %583 = vst [vmem:[#allocation2 + $0x48] sm:$0xff] (!%p5923_p12), %v5072_v6  ;;  %v808_v18 = vld [vmem:[#allocation5 + $0x10] sm:$0xff] (!%p5923_p12)  ;;  %v809_v19 = vld [vmem:[#allocation5 + $0x18] sm:$0xff] (!%p5923_p12)  ;;  %v822_v22 = vpack.c.bf16 (!%p5923_p12), %v807_v17, %v806_v16 }
 0x13a   : > { %584 = vst [vmem:[#allocation2 + $0x50] sm:$0xff] (!%p5923_p12), %v5072_v6  ;;  %585 = vst [vmem:[#allocation2 + $0x58] sm:$0xff] (!%p5923_p12), %v5072_v6  ;;  %v810_v20 = vld [vmem:[#allocation5 + $0x20] sm:$0xff] (!%p5923_p12)  ;;  %v811_v21 = vld [vmem:[#allocation5 + $0x28] sm:$0xff] (!%p5923_p12)  ;;  %v824_v26 = vpack.c.bf16 (!%p5923_p12), %v809_v19, %v808_v18 }
 0x13b   : > { %586 = vst [vmem:[#allocation2 + $0x60] sm:$0xff] (!%p5923_p12), %v5072_v6  ;;  %587 = vst [vmem:[#allocation2 + $0x68] sm:$0xff] (!%p5923_p12), %v5072_v6  ;;  %3538 = vmatmul.mubr.msk.bf16.vlgmr.msra.gmra.mrb[0].mxu0 (!%p5923_p12), %vm664_vm1, %v4639_v10  ;;  %3546 = vmatmul.mubr.msk.bf16.vlgmr.msra.gmra.mrb[0].mxu1 (!%p5923_p12), %vm664_vm1, %v4640_v11  ;;  %v812_v23 = vld [vmem:[#allocation5 + $0x30] sm:$0xff] (!%p5923_p12)  ;;  %v813_v24 = vld [vmem:[#allocation5 + $0x38] sm:$0xff] (!%p5923_p12)  ;;  %v826_v27 = vpack.c.bf16 (!%p5923_p12), %v811_v21, %v810_v20 }
 0x13c   : > { %588 = vst [vmem:[#allocation2 + $0x70] sm:$0xff] %v5072_v6  ;;  %589 = vst [vmem:[#allocation2 + $0x78] sm:$0xff] %v5072_v6  ;;  %3541 = vmatprep.mubr.msk.bf16.mxu0 %vm664_vm1, %v4641_v12  ;;  %3549 = vmatprep.mubr.msk.bf16.mxu1 %vm664_vm1, %v4642_v13  ;;  %v814_v25 = vld [vmem:[#allocation5 + $0x40] sm:$0xff]  ;;  %v815_v28 = vld [vmem:[#allocation5 + $0x48] sm:$0xff]  ;;  %v828_v31 = vpack.c.bf16 %v813_v24, %v812_v23 }
 0x13d   : > { %590 = vst [vmem:[#allocation2 + $0x80] sm:$0xff] %v5072_v6  ;;  %591 = vst [vmem:[#allocation2 + $0x88] sm:$0xff] %v5072_v6  ;;  %v816_v29 = vld [vmem:[#allocation5 + $0x50] sm:$0xff]  ;;  %v817_v30 = vld [vmem:[#allocation5 + $0x58] sm:$0xff]  ;;  %v830_v35 = vpack.c.bf16 %v815_v28, %v814_v25 }
 0x13e   : > { %592 = vst [vmem:[#allocation2 + $0x90] sm:$0xff] %v5072_v6  ;;  %593 = vst [vmem:[#allocation2 + $0x98] sm:$0xff] %v5072_v6  ;;  %v818_v32 = vld [vmem:[#allocation5 + $0x60] sm:$0xff]  ;;  %v819_v33 = vld [vmem:[#allocation5 + $0x68] sm:$0xff]  ;;  %v832_v36 = vpack.c.bf16 %v817_v30, %v816_v29 }
 0x13f   : > { %594 = vst [vmem:[#allocation2 + $0xa0] sm:$0xff] %v5072_v6  ;;  %595 = vst [vmem:[#allocation2 + $0xa8] sm:$0xff] %v5072_v6  ;;  %v820_v34 = vld [vmem:[#allocation5 + $0x70] sm:$0xff]  ;;  %v821_v37 = vld [vmem:[#allocation5 + $0x78] sm:$0xff]  ;;  %v834_v38 = vpack.c.bf16 %v819_v33, %v818_v32 }
 0x140   : > { %596 = vst [vmem:[#allocation2 + $0xb0] sm:$0xff] %v5072_v6  ;;  %597 = vst [vmem:[#allocation2 + $0xb8] sm:$0xff] %v5072_v6  ;;  %v836_v39 = vpack.c.bf16 %v821_v37, %v820_v34 }
 0x141   : > { %598 = vst [vmem:[#allocation2 + $0xc0] sm:$0xff] %v5072_v6  ;;  %599 = vst [vmem:[#allocation2 + $0xc8] sm:$0xff] %v5072_v6 }
 0x142   : > { %600 = vst [vmem:[#allocation2 + $0xd0] sm:$0xff] %v5072_v6  ;;  %601 = vst [vmem:[#allocation2 + $0xd8] sm:$0xff] %v5072_v6 }
 0x143   : > { %602 = vst [vmem:[#allocation2 + $0xe0] sm:$0xff] %v5072_v6  ;;  %603 = vst [vmem:[#allocation2 + $0xe8] sm:$0xff] %v5072_v6  ;;  %3542 = vmatmul.mubr.msk.bf16.gmra.mrb[4].mxu0 %vm664_vm1, %v4643_v14  ;;  %3550 = vmatmul.mubr.msk.bf16.gmra.mrb[4].mxu1 %vm664_vm1, %v4644_v15 }
 0x144   : > { %604 = vst [vmem:[#allocation2 + $0xf0] sm:$0xff] %v5072_v6  ;;  %605 = vst [vmem:[#allocation2 + $0xf8] sm:$0xff] %v5072_v6 }
 0x145   : > { %838 = vst [vmem:[#allocation4] sm:$0xff] %v822_v22  ;;  %840 = vst [vmem:[#allocation4 + $0x10] sm:$0xff] %v824_v26 }
 0x146   : > { %842 = vst [vmem:[#allocation4 + $0x20] sm:$0xff] %v826_v27  ;;  %844 = vst [vmem:[#allocation4 + $0x30] sm:$0xff] %v828_v31 }
 0x147   : > { %846 = vst [vmem:[#allocation4 + $0x40] sm:$0xff] %v830_v35  ;;  %848 = vst [vmem:[#allocation4 + $0x50] sm:$0xff] %v832_v36 }
 0x148   : > { %850 = vst [vmem:[#allocation4 + $0x60] sm:$0xff] %v834_v38  ;;  %852 = vst [vmem:[#allocation4 + $0x70] sm:$0xff] %v836_v39 }
 0x20e   : > { %v3539_v40 = vpop.f32.mrb[0].mxu0  ;;  %v3547_v41 = vpop.f32.mrb[0].mxu1 }
 0x20f   : > { %792 = vst [vmem:[#allocation3 + $0x10] sm:$0xff] %v3539_v40  ;;  %800 = vst [vmem:[#allocation3 + $0x50] sm:$0xff] %v3547_v41  ;;  %v727_v42 = vpop.f32.mrb[1].mxu0  ;;  %v759_v43 = vpop.f32.mrb[1].mxu1 }
 0x210   : > { %790 = vst [vmem:[#allocation3] sm:$0xff] %v727_v42  ;;  %798 = vst [vmem:[#allocation3 + $0x40] sm:$0xff] %v759_v43  ;;  %v3540_v44 = vpop.f32.mrb[2].mxu0  ;;  %v3548_v45 = vpop.f32.mrb[2].mxu1 }
 0x211   : > { %793 = vst [vmem:[#allocation3 + $0x18] sm:$0xff] %v3540_v44  ;;  %v825_v46 = vpack.c.bf16 %v3540_v44, %v3539_v40  ;;  %801 = vst [vmem:[#allocation3 + $0x58] sm:$0xff] %v3548_v45  ;;  %v833_v47 = vpack.c.bf16 %v3548_v45, %v3547_v41  ;;  %v730_v48 = vpop.f32.mrb[3].mxu0  ;;  %v762_v49 = vpop.f32.mrb[3].mxu1 }
 0x212   : > { %791 = vst [vmem:[#allocation3 + $0x8] sm:$0xff] %v730_v48  ;;  %v823_v50 = vpack.c.bf16 %v730_v48, %v727_v42  ;;  %799 = vst [vmem:[#allocation3 + $0x48] sm:$0xff] %v762_v49  ;;  %v831_v51 = vpack.c.bf16 %v762_v49, %v759_v43 }
 0x213   : > { %841 = vst [vmem:[#allocation4 + $0x18] sm:$0xff] %v825_v46  ;;  %849 = vst [vmem:[#allocation4 + $0x58] sm:$0xff] %v833_v47 }
 0x214   : > { %839 = vst [vmem:[#allocation4 + $0x8] sm:$0xff] %v823_v50  ;;  %847 = vst [vmem:[#allocation4 + $0x48] sm:$0xff] %v831_v51 }
 0x216   : > { %v3543_v52 = vpop.f32.mrb[4].mxu0  ;;  %v3551_v53 = vpop.f32.mrb[4].mxu1 }
 0x217   : > { %796 = vst [vmem:[#allocation3 + $0x30] sm:$0xff] %v3543_v52  ;;  %804 = vst [vmem:[#allocation3 + $0x70] sm:$0xff] %v3551_v53  ;;  %v743_v54 = vpop.f32.mrb[5].mxu0  ;;  %v775_v55 = vpop.f32.mrb[5].mxu1 }
 0x218   : > { %794 = vst [vmem:[#allocation3 + $0x20] sm:$0xff] %v743_v54  ;;  %802 = vst [vmem:[#allocation3 + $0x60] sm:$0xff] %v775_v55  ;;  %v3544_v56 = vpop.f32.mrb[6].mxu0  ;;  %v3552_v57 = vpop.f32.mrb[6].mxu1 }
 0x219   : > { %797 = vst [vmem:[#allocation3 + $0x38] sm:$0xff] %v3544_v56  ;;  %v829_v58 = vpack.c.bf16 %v3544_v56, %v3543_v52  ;;  %805 = vst [vmem:[#allocation3 + $0x78] sm:$0xff] %v3552_v57  ;;  %v837_v59 = vpack.c.bf16 %v3552_v57, %v3551_v53  ;;  %v746_v60 = vpop.f32.mrb[7].mxu0  ;;  %v778_v61 = vpop.f32.mrb[7].mxu1 }
 0x21a   : > { %795 = vst [vmem:[#allocation3 + $0x28] sm:$0xff] %v746_v60  ;;  %v827_v62 = vpack.c.bf16 %v746_v60, %v743_v54  ;;  %803 = vst [vmem:[#allocation3 + $0x68] sm:$0xff] %v778_v61  ;;  %v835_v63 = vpack.c.bf16 %v778_v61, %v775_v55 }
 0x21b   : > { %845 = vst [vmem:[#allocation4 + $0x38] sm:$0xff] %v829_v58  ;;  %853 = vst [vmem:[#allocation4 + $0x78] sm:$0xff] %v837_v59 }
 0x21c   : > { %843 = vst [vmem:[#allocation4 + $0x28] sm:$0xff] %v827_v62  ;;  %851 = vst [vmem:[#allocation4 + $0x68] sm:$0xff] %v835_v63 }
 0x21d PF: > { %v855_v4 = vld [vmem:[#allocation4 + $0x8] sm:$0xff]  ;;  %v854_v5 = vld [vmem:[#allocation4] sm:$0xff]  ;;  %v857_v6 = vld [vmem:[#allocation4 + $0x18] sm:$0xff]  ;;  %v5073_v7 = vmov 0.0   ;;  %v5546_v9 = vcombine.low %v5524_v2, %v5526_v3  ;;  %v5074_v11 = vmov 0   ;;  %vm5075_vm2 = vmmov 0  }
 0x21e   : > { %876 = vmatprep.subr.bf16.mxu0 %v855_v4  ;;  %3553 = vmatprep.subr.bf16.mxu1 %v5073_v7  ;;  %v856_v8 = vld [vmem:[#allocation4 + $0x10] sm:$0xff]  ;;  %v858_v12 = vld [vmem:[#allocation4 + $0x20] sm:$0xff]  ;;  %v863_v3 = vld [vmem:[#allocation4 + $0x48] sm:$0xff]  ;;  %v3211_v31 = vcombine.low %v5520_v0, %v5522_v1  ;;  %vm1412_vm3 = vcmask 130048   ;;  %s5924_s15 = sld [smem:[#allocation35_spill]] }
 0x21f   : > { %877 = vmatpush1.bf16.msra.mxu0 %v854_v5  ;;  %3554 = vmatpush3.bf16.msra.mxu1 %v854_v5  ;;  %v860_v2 = vld [vmem:[#allocation4 + $0x30] sm:$0xff]  ;;  %v862_v14 = vld [vmem:[#allocation4 + $0x40] sm:$0xff]  ;;  %v865_v15 = vld [vmem:[#allocation4 + $0x58] sm:$0xff] }
 0x220   : > { %878 = vmatprep.subr.bf16.mxu0 %v857_v6  ;;  %3555 = vmatprep.subr.bf16.mxu1 %v5073_v7  ;;  %v864_v16 = vld [vmem:[#allocation4 + $0x50] sm:$0xff]  ;;  %v866_v18 = vld [vmem:[#allocation4 + $0x60] sm:$0xff]  ;;  %v979_v20 = vld [vmem:[#allocation16] sm:$0xff] }
 0x221   : > { %908 = vmatprep.mubr.bf16.mxu0 %v5074_v11  ;;  %3569 = vmatprep.mubr.msk.bf16.mxu1 %vm5075_vm2, %v5073_v7  ;;  %v980_v21 = vld [vmem:[#allocation16 + $0x8] sm:$0xff]  ;;  %v1264_v22 = vld [vmem:[#allocation17] sm:$0xff]  ;;  %v981_v27 = vld [vmem:[#allocation16 + $0x10] sm:$0xff] }
 0x222   : > { %1396 = vxpose.xlu0.c.b16.start.end [1/1] (short) %v5546_v9, 128  ;;  %v861_v13 = vld [vmem:[#allocation4 + $0x38] sm:$0xff]  ;;  %v1265_v23 = vld [vmem:[#allocation17 + $0x8] sm:$0xff]  ;;  %v4077_v25 = vpack.c.bf16 %v980_v21, %v979_v20  ;;  %v982_v28 = vld [vmem:[#allocation16 + $0x18] sm:$0xff] }
 0x223   : > { %v859_v10 = vld [vmem:[#allocation4 + $0x28] sm:$0xff]  ;;  %879 = vmatpush1.bf16.msra.mxu0 %v856_v8  ;;  %3556 = vmatpush3.bf16.msra.mxu1 %v856_v8  ;;  %v869_v19 = vld [vmem:[#allocation4 + $0x78] sm:$0xff]  ;;  %v868_v24 = vld [vmem:[#allocation4 + $0x70] sm:$0xff]  ;;  %v4173_v26 = vpack.c.bf16 %v1265_v23, %v1264_v22  ;;  %v4081_v32 = vpack.c.bf16 %v982_v28, %v981_v27 }
 0x224   : > { %880 = vmatprep.subr.bf16.mxu0 %v859_v10  ;;  %3557 = vmatprep.subr.bf16.mxu1 %v5073_v7  ;;  %v867_v17 = vld [vmem:[#allocation4 + $0x68] sm:$0xff]  ;;  %v1266_v29 = vld [vmem:[#allocation17 + $0x10] sm:$0xff]  ;;  %v1267_v30 = vld [vmem:[#allocation17 + $0x18] sm:$0xff]  ;;  %p3223_p13 = scmp.ne.s32.totalorder %s5924_s15, 1 }
 0x225   : > { %v4177_v33 = vpack.c.bf16 %v1267_v30, %v1266_v29  ;;  %v983_v34 = vld [vmem:[#allocation16 + $0x20] sm:$0xff]  ;;  %v984_v35 = vld [vmem:[#allocation16 + $0x28] sm:$0xff]  ;;  %v985_v0 = vld [vmem:[#allocation16 + $0x30] sm:$0xff]  ;;  %vm5078_vm4 = vmmov (!%p3223_p13), 0  }
 0x226   : > { %v1268_v36 = vld [vmem:[#allocation17 + $0x20] sm:$0xff]  ;;  %v1269_v37 = vld [vmem:[#allocation17 + $0x28] sm:$0xff]  ;;  %v4085_v38 = vpack.c.bf16 %v984_v35, %v983_v34  ;;  %v986_v1 = vld [vmem:[#allocation16 + $0x38] sm:$0xff] }
 0x227   : > { %881 = vmatpush1.bf16.msra.mxu0 %v858_v12  ;;  %3558 = vmatpush3.bf16.msra.mxu1 %v858_v12  ;;  %v4181_v39 = vpack.c.bf16 %v1269_v37, %v1268_v36  ;;  %v1270_v40 = vld [vmem:[#allocation17 + $0x30] sm:$0xff]  ;;  %v1271_v41 = vld [vmem:[#allocation17 + $0x38] sm:$0xff]  ;;  %v4089_v42 = vpack.c.bf16 %v986_v1, %v985_v0  ;;  %v987_v44 = vld [vmem:[#allocation16 + $0x40] sm:$0xff] }
 0x228   : > { %882 = vmatprep.subr.bf16.mxu0 %v861_v13  ;;  %3559 = vmatprep.subr.bf16.mxu1 %v5073_v7  ;;  %v4185_v43 = vpack.c.bf16 %v1271_v41, %v1270_v40  ;;  %v988_v45 = vld [vmem:[#allocation16 + $0x48] sm:$0xff]  ;;  %v1272_v46 = vld [vmem:[#allocation17 + $0x40] sm:$0xff]  ;;  %v989_v50 = vld [vmem:[#allocation16 + $0x50] sm:$0xff] }
 0x229   : > { %v1273_v47 = vld [vmem:[#allocation17 + $0x48] sm:$0xff]  ;;  %v4093_v48 = vpack.c.bf16 %v988_v45, %v987_v44  ;;  %v990_v51 = vld [vmem:[#allocation16 + $0x58] sm:$0xff]  ;;  %v1274_v52 = vld [vmem:[#allocation17 + $0x50] sm:$0xff] }
 0x22a   : > { %v4189_v49 = vpack.c.bf16 %v1273_v47, %v1272_v46  ;;  %v1275_v53 = vld [vmem:[#allocation17 + $0x58] sm:$0xff]  ;;  %v4097_v54 = vpack.c.bf16 %v990_v51, %v989_v50  ;;  %v991_v56 = vld [vmem:[#allocation16 + $0x60] sm:$0xff]  ;;  %v992_v57 = vld [vmem:[#allocation16 + $0x68] sm:$0xff] }
 0x22b   : > { %883 = vmatpush1.bf16.msra.mxu0 %v860_v2  ;;  %3560 = vmatpush3.bf16.msra.mxu1 %v860_v2  ;;  %v4193_v55 = vpack.c.bf16 %v1275_v53, %v1274_v52  ;;  %v1276_v58 = vld [vmem:[#allocation17 + $0x60] sm:$0xff]  ;;  %v1277_v59 = vld [vmem:[#allocation17 + $0x68] sm:$0xff]  ;;  %v4101_v60 = vpack.c.bf16 %v992_v57, %v991_v56  ;;  %v993_v62 = vld [vmem:[#allocation16 + $0x70] sm:$0xff] }
 0x22c   : > { %884 = vmatprep.subr.bf16.mxu0 %v863_v3  ;;  %3561 = vmatprep.subr.bf16.mxu1 %v5073_v7  ;;  %v4197_v61 = vpack.c.bf16 %v1277_v59, %v1276_v58  ;;  %v994_v63 = vld [vmem:[#allocation16 + $0x78] sm:$0xff]  ;;  %v1278_v5 = vld [vmem:[#allocation17 + $0x70] sm:$0xff]  ;;  %v1076_v8 = vld [vmem:[#allocation16 + $0x80] sm:$0xff] }
 0x22d   : > { %v4105_v4 = vpack.c.bf16 %v994_v63, %v993_v62  ;;  %v1279_v6 = vld [vmem:[#allocation17 + $0x78] sm:$0xff]  ;;  %v1078_v2 = vld [vmem:[#allocation16 + $0x90] sm:$0xff]  ;;  %v1088_v37 = vld [vmem:[#allocation16 + $0xe0] sm:$0xff] }
 0x22e   : > { %v1079_v3 = vld [vmem:[#allocation16 + $0x98] sm:$0xff]  ;;  %v1082_v28 = vld [vmem:[#allocation16 + $0xb0] sm:$0xff]  ;;  %v1169_v41 = vld [vmem:[#allocation16 + $0x100] sm:$0xff] }
 0x22f   : > { %885 = vmatpush1.bf16.msra.mxu0 %v862_v14  ;;  %3562 = vmatpush3.bf16.msra.mxu1 %v862_v14  ;;  %v4113_v23 = vpack.c.bf16 %v1079_v3, %v1078_v2  ;;  %v1083_v29 = vld [vmem:[#allocation16 + $0xb8] sm:$0xff]  ;;  %v1086_v34 = vld [vmem:[#allocation16 + $0xd0] sm:$0xff]  ;;  %v3214_v2 = vld [vmem:[#allocation19 + $0x1] ss:$0 sm:$0xff] }
 0x230   : > { %886 = vmatprep.subr.bf16.mxu0 %v865_v15  ;;  %3563 = vmatprep.subr.bf16.mxu1 %v5073_v7  ;;  %v4121_v30 = vpack.c.bf16 %v1083_v29, %v1082_v28  ;;  %v1087_v35 = vld [vmem:[#allocation16 + $0xd8] sm:$0xff]  ;;  %v1090_v0 = vld [vmem:[#allocation16 + $0xf0] sm:$0xff]  ;;  %v1364_v29 = vld [vmem:[#allocation2 + $0x10] sm:$0xff] }
 0x231   : > { %v4129_v36 = vpack.c.bf16 %v1087_v35, %v1086_v34  ;;  %v1091_v1 = vld [vmem:[#allocation16 + $0xf8] sm:$0xff]  ;;  %v1171_v44 = vld [vmem:[#allocation16 + $0x110] sm:$0xff] }
 0x232   : > { %v4137_v40 = vpack.c.bf16 %v1091_v1, %v1090_v0  ;;  %v1172_v45 = vld [vmem:[#allocation16 + $0x118] sm:$0xff]  ;;  %v977_v46 = vld [vmem:[%s474_s21 + $0x8] sm:$0xff]  ;;  %v1368_v0 = vld [vmem:[#allocation2 + $0x30] sm:$0xff] }
 0x233   : > { %887 = vmatpush1.bf16.msra.mxu0 %v864_v16  ;;  %3564 = vmatpush3.bf16.msra.mxu1 %v864_v16  ;;  %v4145_v47 = vpack.c.bf16 %v1172_v45, %v1171_v44  ;;  %v1175_v51 = vld [vmem:[#allocation16 + $0x130] sm:$0xff]  ;;  %v1176_v52 = vld [vmem:[#allocation16 + $0x138] sm:$0xff] }
 0x234   : > { %888 = vmatprep.subr.bf16.mxu0 %v867_v17  ;;  %3565 = vmatprep.subr.bf16.mxu1 %v5073_v7  ;;  %v4153_v53 = vpack.c.bf16 %v1176_v52, %v1175_v51  ;;  %v1179_v57 = vld [vmem:[#allocation16 + $0x150] sm:$0xff]  ;;  %v1180_v58 = vld [vmem:[#allocation16 + $0x158] sm:$0xff] }
 0x235   : > { %v4161_v59 = vpack.c.bf16 %v1180_v58, %v1179_v57  ;;  %v1183_v63 = vld [vmem:[#allocation16 + $0x170] sm:$0xff] }
 0x237   : > { %889 = vmatpush1.bf16.msra.mxu0 %v866_v18  ;;  %3566 = vmatpush3.bf16.msra.mxu1 %v866_v18 }
 0x238   : > { %890 = vmatprep.subr.bf16.mxu0 %v869_v19  ;;  %3567 = vmatprep.subr.bf16.mxu1 %v5073_v7  ;;  %v4201_v7 = vpack.c.bf16 %v1279_v6, %v1278_v5  ;;  %v3213_v6 = vld [vmem:[#allocation19] ss:$0 sm:$0xff] }
 0x23b   : > { %891 = vmatpush1.bf16.msra.mxu0 %v868_v24  ;;  %3568 = vmatpush3.bf16.msra.mxu1 %v868_v24  ;;  %v976_v24 = vld [vmem:[%s474_s21] sm:$0xff] }
 0x23c   : > { %4078 = vmatprep.subr.bf16.mxu0 %v4077_v25  ;;  %4174 = vmatprep.subr.bf16.mxu1 %v4173_v26 }
 0x23e   : > { %909 = vmatmul.mubr.bf16.vlgmr.msra.gmra.mrb[0].mxu0 %v3211_v31  ;;  %3570 = vmatmul.mubr.bf16.vlgmr.msra.gmra.mrb[0].mxu1 %v5546_v9  ;;  %v1077_v9 = vld [vmem:[#allocation16 + $0x88] sm:$0xff]  ;;  %v1084_v31 = vld [vmem:[#allocation16 + $0xc0] sm:$0xff] }
 0x23f   : > { %4080 = vmatpush3.bf16.msra.mxu0 %v4077_v25  ;;  %4176 = vmatpush3.bf16.msra.mxu1 %v4173_v26  ;;  %v4109_v10 = vpack.c.bf16 %v1077_v9, %v1076_v8  ;;  %v1080_v25 = vld [vmem:[#allocation16 + $0xa0] sm:$0xff]  ;;  %v1081_v26 = vld [vmem:[#allocation16 + $0xa8] sm:$0xff] }
 0x240   : > { %4082 = vmatprep.subr.bf16.mxu0 %v4081_v32  ;;  %4178 = vmatprep.subr.bf16.mxu1 %v4177_v33  ;;  %v4117_v27 = vpack.c.bf16 %v1081_v26, %v1080_v25  ;;  %v1362_v26 = vld [vmem:[#allocation2] sm:$0xff] }
 0x243   : > { %4084 = vmatpush3.bf16.msra.mxu0 %v4081_v32  ;;  %4180 = vmatpush3.bf16.msra.mxu1 %v4177_v33  ;;  %v1085_v32 = vld [vmem:[#allocation16 + $0xc8] sm:$0xff] }
 0x244   : > { %4086 = vmatprep.subr.bf16.mxu0 %v4085_v38  ;;  %4182 = vmatprep.subr.bf16.mxu1 %v4181_v39  ;;  %v4125_v33 = vpack.c.bf16 %v1085_v32, %v1084_v31  ;;  %v1365_v32 = vld [vmem:[#allocation2 + $0x18] sm:$0xff] }
 0x247   : > { %4088 = vmatpush3.bf16.msra.mxu0 %v4085_v38  ;;  %4184 = vmatpush3.bf16.msra.mxu1 %v4181_v39  ;;  %v1089_v38 = vld [vmem:[#allocation16 + $0xe8] sm:$0xff] }
 0x248   : > { %4090 = vmatprep.subr.bf16.mxu0 %v4089_v42  ;;  %4186 = vmatprep.subr.bf16.mxu1 %v4185_v43  ;;  %v4133_v39 = vpack.c.bf16 %v1089_v38, %v1088_v37  ;;  %v1367_v38 = vld [vmem:[#allocation2 + $0x28] sm:$0xff] }
 0x24b   : > { %4092 = vmatpush3.bf16.msra.mxu0 %v4089_v42  ;;  %4188 = vmatpush3.bf16.msra.mxu1 %v4185_v43  ;;  %v1170_v42 = vld [vmem:[#allocation16 + $0x108] sm:$0xff] }
 0x24c   : > { %4094 = vmatprep.subr.bf16.mxu0 %v4093_v48  ;;  %4190 = vmatprep.subr.bf16.mxu1 %v4189_v49  ;;  %v4141_v43 = vpack.c.bf16 %v1170_v42, %v1169_v41  ;;  %v1369_v41 = vld [vmem:[#allocation2 + $0x38] sm:$0xff] }
 0x24f   : > { %4096 = vmatpush3.bf16.msra.mxu0 %v4093_v48  ;;  %4192 = vmatpush3.bf16.msra.mxu1 %v4189_v49  ;;  %v1173_v48 = vld [vmem:[#allocation16 + $0x120] sm:$0xff]  ;;  %v1174_v49 = vld [vmem:[#allocation16 + $0x128] sm:$0xff] }
 0x250   : > { %4098 = vmatprep.subr.bf16.mxu0 %v4097_v54  ;;  %4194 = vmatprep.subr.bf16.mxu1 %v4193_v55  ;;  %v4149_v50 = vpack.c.bf16 %v1174_v49, %v1173_v48  ;;  %v1371_v48 = vld [vmem:[#allocation2 + $0x48] sm:$0xff] }
 0x253   : > { %4100 = vmatpush3.bf16.msra.mxu0 %v4097_v54  ;;  %4196 = vmatpush3.bf16.msra.mxu1 %v4193_v55  ;;  %v1177_v54 = vld [vmem:[#allocation16 + $0x140] sm:$0xff]  ;;  %v1178_v55 = vld [vmem:[#allocation16 + $0x148] sm:$0xff] }
 0x254   : > { %4102 = vmatprep.subr.bf16.mxu0 %v4101_v60  ;;  %4198 = vmatprep.subr.bf16.mxu1 %v4197_v61  ;;  %v4157_v56 = vpack.c.bf16 %v1178_v55, %v1177_v54 }
 0x257   : > { %4104 = vmatpush3.bf16.msra.mxu0 %v4101_v60  ;;  %4200 = vmatpush3.bf16.msra.mxu1 %v4197_v61  ;;  %v1181_v60 = vld [vmem:[#allocation16 + $0x160] sm:$0xff]  ;;  %v1182_v61 = vld [vmem:[#allocation16 + $0x168] sm:$0xff] }
 0x258   : > { %4106 = vmatprep.subr.bf16.mxu0 %v4105_v4  ;;  %4202 = vmatprep.subr.bf16.mxu1 %v4201_v7  ;;  %v4165_v62 = vpack.c.bf16 %v1182_v61, %v1181_v60  ;;  %v1375_v60 = vld [vmem:[#allocation2 + $0x68] sm:$0xff] }
 0x25b   : > { %4108 = vmatpush3.bf16.msra.mxu0 %v4105_v4  ;;  %4204 = vmatpush3.bf16.msra.mxu1 %v4201_v7  ;;  %v1184_v4 = vld [vmem:[#allocation16 + $0x178] sm:$0xff] }
 0x25c   : > { %4110 = vmatprep.subr.bf16.mxu0 %v4109_v10  ;;  %v4169_v5 = vpack.c.bf16 %v1184_v4, %v1183_v63 }
 0x311   : > { %v910_v12 = vpop.f32.mrb[0].mxu0  ;;  %v967_v13 = vpop.f32.mrb[0].mxu1 }
 0x312   : > { %v974_v14 = vadd.f32 %v967_v13, %v910_v12  ;;  %v912_v15 = vpop.f32.mrb[1].mxu0  ;;  %v3571_v16 = vpop.f32.mrb[1].mxu1 }
 0x313   : > { %v914_v17 = vpop.f32.mrb[2].mxu0  ;;  %v970_v18 = vpop.f32.mrb[2].mxu1 }
 0x314   : > { %v1395_v19 = vpack.c.bf16 %v914_v17, %v910_v12  ;;  %v975_v20 = vadd.f32 %v970_v18, %v914_v17  ;;  %v5553_v21 = vpop.f32.mrb[3].mxu0  ;;  %v3572_v22 = vpop.f32.mrb[3].mxu1  ;;  %3605 = vmatprep.mubr.f32.mxu0 %v974_v14 }
 0x315   : > { %v1404_v18 = vpop.trf.xlu0 }
 0x316   : > { %3606 = vmatmul.mubr.f32.vlgmr.msra.gmra.mrb[4].mxu0 %v975_v20  ;;  %1437 = vmatprep.subr.bf16.mxu1 %v1395_v19 }
 0x317   : > { %4112 = vmatpush3.bf16.msra.mxu0 %v4109_v10  ;;  %3640 = vmatprep.mubr.f32.mxu0 %v976_v24 }
 0x318   : > { %4114 = vmatprep.subr.bf16.mxu0 %v4113_v23 }
 0x319   : > { %v1405_v19 = vpop.trf.xlu0 }
 0x31b   : > { %4116 = vmatpush3.bf16.msra.mxu0 %v4113_v23 }
 0x31c   : > { %4118 = vmatprep.subr.bf16.mxu0 %v4117_v27 }
 0x31d   : > { %v1406_v20 = vpop.trf.xlu0 }
 0x31f   : > { %4120 = vmatpush3.bf16.msra.mxu0 %v4117_v27  ;;  %v1363_v27 = vld [vmem:[#allocation2 + $0x8] sm:$0xff] }
 0x320   : > { %4122 = vmatprep.subr.bf16.mxu0 %v4121_v30 }
 0x323   : > { %4124 = vmatpush3.bf16.msra.mxu0 %v4121_v30 }
 0x324   : > { %4126 = vmatprep.subr.bf16.mxu0 %v4125_v33 }
 0x327   : > { %4128 = vmatpush3.bf16.msra.mxu0 %v4125_v33 }
 0x328   : > { %4130 = vmatprep.subr.bf16.mxu0 %v4129_v36 }
 0x32b   : > { %4132 = vmatpush3.bf16.msra.mxu0 %v4129_v36 }
 0x32c   : > { %4134 = vmatprep.subr.bf16.mxu0 %v4133_v39 }
 0x32f   : > { %4136 = vmatpush3.bf16.msra.mxu0 %v4133_v39 }
 0x330   : > { %4138 = vmatprep.subr.bf16.mxu0 %v4137_v40 }
 0x333   : > { %4140 = vmatpush3.bf16.msra.mxu0 %v4137_v40 }
 0x334   : > { %4142 = vmatprep.subr.bf16.mxu0 %v4141_v43 }
 0x336   : > { %3641 = vmatmul.mubr.f32.vlgmr.msra.gmra.mrb[4].mxu0 %v977_v46 }
 0x337   : > { %4144 = vmatpush3.bf16.msra.mxu0 %v4141_v43  ;;  %3675 = vmatprep.mubr.f32.mxu0 %v912_v15 }
 0x338   : > { %4146 = vmatprep.subr.bf16.mxu0 %v4145_v47 }
 0x33b   : > { %4148 = vmatpush3.bf16.msra.mxu0 %v4145_v47  ;;  %v1370_v47 = vld [vmem:[#allocation2 + $0x40] sm:$0xff] }
 0x33c   : > { %4150 = vmatprep.subr.bf16.mxu0 %v4149_v50 }
 0x33f   : > { %4152 = vmatpush3.bf16.msra.mxu0 %v4149_v50  ;;  %v1372_v50 = vld [vmem:[#allocation2 + $0x50] sm:$0xff] }
 0x340   : > { %4154 = vmatprep.subr.bf16.mxu0 %v4153_v53 }
 0x343   : > { %4156 = vmatpush3.bf16.msra.mxu0 %v4153_v53  ;;  %v1373_v53 = vld [vmem:[#allocation2 + $0x58] sm:$0xff] }
 0x344   : > { %4158 = vmatprep.subr.bf16.mxu0 %v4157_v56 }
 0x347   : > { %4160 = vmatpush3.bf16.msra.mxu0 %v4157_v56 }
 0x348   : > { %4162 = vmatprep.subr.bf16.mxu0 %v4161_v59 }
 0x34b   : > { %4164 = vmatpush3.bf16.msra.mxu0 %v4161_v59  ;;  %v1374_v59 = vld [vmem:[#allocation2 + $0x60] sm:$0xff] }
 0x34c   : > { %4166 = vmatprep.subr.bf16.mxu0 %v4165_v62 }
 0x34f   : > { %4168 = vmatpush3.bf16.msra.mxu0 %v4165_v62  ;;  %v1376_v62 = vld [vmem:[#allocation2 + $0x70] sm:$0xff] }
 0x350   : > { %4170 = vmatprep.subr.bf16.mxu0 %v4169_v5 }
 0x353   : > { %4172 = vmatpush3.bf16.msra.mxu0 %v4169_v5  ;;  %v1377_v5 = vld [vmem:[#allocation2 + $0x78] sm:$0xff] }
 0x356   : > { %3676 = vmatmul.mubr.f32.vlgmr.msra.gmra.mrb[4].mxu0 %v5553_v21  ;;  %v1407_v21 = vpop.trf.xlu0 }
 0x35a   : > { %v1408_v22 = vpop.trf.xlu0 }
 0x35e   : > { %v1409_v23 = vpop.trf.xlu0 }
 0x362   : > { %v1410_v24 = vpop.trf.xlu0 }
 0x366   : > { %v1411_v25 = vpop.trf.xlu0 }
 0x429   : > { %v3677_v7 = vpop.f32.mrb[4].mxu0 }
 0x42a   : > { %v4431_v8 = vadd.f32 %v3677_v7, %v3213_v6  ;;  %v1251_v9 = vpop.f32.mrb[5].mxu0 }
 0x42b   : > { %v4432_v10 = vadd.f32 %v3213_v6, %v1251_v9 }
 0x42c   : > { %v1263_v13 = vmax.f32 %v4431_v8, 0.0 }
 0x42d   : > { %v1262_v12 = vmax.f32 %v4432_v10, 0.0 }
 0x42f   : > { %3710 = vmatprep.mubr.f32.mxu1 %v1262_v12  ;;  %v1378_v12 = vld [vmem:[#allocation2 + $0x80] sm:$0xff] }
 0x430   : > { %3711 = vmatmul.mubr.f32.vlgmr.msra.gmra.mrb[4].mxu1 %v1263_v13  ;;  %v1379_v13 = vld [vmem:[#allocation2 + $0x88] sm:$0xff] }
 0x431   : > { %1469 = vmatprep.mubr.bf16.mxu1 %v5074_v11 }
 0x503   : > { %v3712_v3 = vpop.f32.mrb[4].mxu1 }
 0x504   : > { %v1357_v14 = vadd.f32 %v3712_v3, %v3214_v2  ;;  %v1351_v15 = vpop.f32.mrb[5].mxu1  ;;  %v1380_v3 = vld [vmem:[#allocation2 + $0x90] sm:$0xff] }
 0x505   : > { %v1352_v16 = vadd.f32 %v3214_v2, %v1351_v15 }
 0x506   : > { %1361 = vst [vmem:[%s5529_s23 + $0x8] sm:$0xff] %v1357_v14 }
 0x507   : > { %1360 = vst [vmem:[%s5529_s23] sm:$0xff] %v1352_v16  ;;  %v1394_v17 = vpack.c.bf16 %v1357_v14, %v1352_v16  ;;  %v1381_v16 = vld [vmem:[#allocation2 + $0x98] sm:$0xff] }
 0x509   : > { %1438 = vmatpush1.bf16.msra.mxu1 %v1394_v17 }
 0x50c   : > { %3215 = vmatmul.mubr.msk.bf16.vlgmr.msra.gmra.mrb[8].mxu1 %vm1412_vm3, %v1404_v18 }
 0x50d   : > { %1479 = vmatprep.mubr.bf16.mxu1 %v5074_v11 }
 0x514   : > { %3216 = vmatmul.mubr.msk.bf16.gmra.mrb[12].mxu1 %vm1412_vm3, %v1405_v19 }
 0x515   : > { %1489 = vmatprep.mubr.bf16.mxu1 %v5074_v11 }
 0x51c   : > { %3217 = vmatmul.mubr.msk.bf16.gmra.mrb[16].mxu1 %vm1412_vm3, %v1406_v20 }
 0x51d   : > { %1499 = vmatprep.mubr.bf16.mxu1 %v5074_v11 }
 0x524   : > { %3218 = vmatmul.mubr.msk.bf16.gmra.mrb[20].mxu1 %vm1412_vm3, %v1407_v21 }
 0x525   : > { %1509 = vmatprep.mubr.bf16.mxu1 %v5074_v11 }
 0x52c   : > { %3219 = vmatmul.mubr.msk.bf16.gmra.mrb[24].mxu1 %vm1412_vm3, %v1408_v22  ;;  %v1382_v22 = vld [vmem:[#allocation2 + $0xa0] sm:$0xff] }
 0x52d   : > { %1519 = vmatprep.mubr.bf16.mxu1 %v5074_v11 }
 0x534   : > { %3220 = vmatmul.mubr.msk.bf16.gmra.mrb[28].mxu1 %vm1412_vm3, %v1409_v23  ;;  %v1383_v23 = vld [vmem:[#allocation2 + $0xa8] sm:$0xff] }
 0x535   : > { %1529 = vmatprep.mubr.bf16.mxu1 %v5074_v11 }
 0x53c   : > { %3221 = vmatmul.mubr.msk.bf16.gmra.mrb[32].mxu1 %vm1412_vm3, %v1410_v24 }
 0x53d   : > { %1539 = vmatprep.mubr.bf16.mxu1 %v5074_v11  ;;  %v1366_v11 = vld [vmem:[#allocation2 + $0x20] sm:$0xff] }
 0x544   : > { %3222 = vmatmul.mubr.msk.bf16.gmra.mrb[36].mxu1 %vm1412_vm3, %v1411_v25  ;;  %v1384_v25 = vld [vmem:[#allocation2 + $0xb0] sm:$0xff] }
 0x5df   : > { %v1471_v28 = vpop.f32.mrb[8].mxu1 }
 0x5e0   : > { %v1550_v30 = vadd.f32 %v1471_v28, %v1362_v26  ;;  %v1473_v31 = vpop.f32.mrb[9].mxu1  ;;  %v1385_v28 = vld [vmem:[#allocation2 + $0xb8] sm:$0xff] }
 0x5e1   : > { %v1551_v33 = vadd.f32 %v1473_v31, %v1363_v27  ;;  %v1475_v34 = vpop.f32.mrb[10].mxu1 }
 0x5e2   : > { %1582 = vst [vmem:[#allocation2] sm:$0xff] %v1550_v30  ;;  %v1552_v35 = vadd.f32 %v1475_v34, %v1364_v29  ;;  %v1477_v36 = vpop.f32.mrb[11].mxu1  ;;  %v1386_v34 = vld [vmem:[#allocation2 + $0xc0] sm:$0xff] }
 0x5e3   : > { %1583 = vst [vmem:[#allocation2 + $0x8] sm:$0xff] %v1551_v33  ;;  %v1553_v37 = vadd.f32 %v1477_v36, %v1365_v32 }
 0x5e4   : > { %1584 = vst [vmem:[#allocation2 + $0x10] sm:$0xff] %v1552_v35  ;;  %v1387_v35 = vld [vmem:[#allocation2 + $0xc8] sm:$0xff] }
 0x5e5   : > { %1585 = vst [vmem:[#allocation2 + $0x18] sm:$0xff] %v1553_v37  ;;  %v1388_v37 = vld [vmem:[#allocation2 + $0xd0] sm:$0xff] }
 0x5e7   : > { %v1481_v39 = vpop.f32.mrb[12].mxu1 }
 0x5e8   : > { %v1554_v1 = vadd.f32 %v1481_v39, %v1366_v11  ;;  %v1483_v40 = vpop.f32.mrb[13].mxu1  ;;  %v1389_v39 = vld [vmem:[#allocation2 + $0xd8] sm:$0xff] }
 0x5e9   : > { %v1555_v42 = vadd.f32 %v1483_v40, %v1367_v38  ;;  %v1485_v43 = vpop.f32.mrb[14].mxu1 }
 0x5ea   : > { %1586 = vst [vmem:[#allocation2 + $0x20] sm:$0xff] %v1554_v1  ;;  %v1556_v44 = vadd.f32 %v1485_v43, %v1368_v0  ;;  %v1487_v45 = vpop.f32.mrb[15].mxu1  ;;  %v1390_v43 = vld [vmem:[#allocation2 + $0xe0] sm:$0xff] }
 0x5eb   : > { %1587 = vst [vmem:[#allocation2 + $0x28] sm:$0xff] %v1555_v42  ;;  %v1557_v46 = vadd.f32 %v1487_v45, %v1369_v41 }
 0x5ec   : > { %1588 = vst [vmem:[#allocation2 + $0x30] sm:$0xff] %v1556_v44  ;;  %v1391_v44 = vld [vmem:[#allocation2 + $0xe8] sm:$0xff] }
 0x5ed   : > { %1589 = vst [vmem:[#allocation2 + $0x38] sm:$0xff] %v1557_v46  ;;  %v1392_v46 = vld [vmem:[#allocation2 + $0xf0] sm:$0xff] }
 0x5ef   : > { %v1491_v49 = vpop.f32.mrb[16].mxu1 }
 0x5f0   : > { %v1558_v51 = vadd.f32 %v1491_v49, %v1370_v47  ;;  %v1493_v52 = vpop.f32.mrb[17].mxu1  ;;  %v1393_v49 = vld [vmem:[#allocation2 + $0xf8] sm:$0xff] }
 0x5f1   : > { %v1559_v54 = vadd.f32 %v1493_v52, %v1371_v48  ;;  %v1495_v55 = vpop.f32.mrb[18].mxu1 }
 0x5f2   : > { %1590 = vst [vmem:[#allocation2 + $0x40] sm:$0xff] %v1558_v51  ;;  %v1560_v56 = vadd.f32 %v1495_v55, %v1372_v50  ;;  %v1497_v57 = vpop.f32.mrb[19].mxu1  ;;  %v1699_v55 = vld [vmem:[#allocation16 + $0x180] sm:$0xff] (!%p3223_p13) }
 0x5f3   : > { %1591 = vst [vmem:[#allocation2 + $0x48] sm:$0xff] %v1559_v54  ;;  %v1561_v58 = vadd.f32 %v1497_v57, %v1373_v53  ;;  %v1701_v57 = vld [vmem:[#allocation16 + $0x190] sm:$0xff] (!%p3223_p13) }
 0x5f4   : > { %1592 = vst [vmem:[#allocation2 + $0x50] sm:$0xff] %v1560_v56  ;;  %v1700_v56 = vld [vmem:[#allocation16 + $0x188] sm:$0xff] (!%p3223_p13) }
 0x5f5   : > { %1593 = vst [vmem:[#allocation2 + $0x58] sm:$0xff] %v1561_v58  ;;  %v4205_v58 = vpack.c.bf16 (!%p3223_p13), %v1700_v56, %v1699_v55 }
 0x5f7   : > { %v1501_v61 = vpop.f32.mrb[20].mxu1  ;;  %4206 = vmatprep.subr.bf16.mxu0 (!%p3223_p13), %v4205_v58 }
 0x5f8   : > { %v1562_v63 = vadd.f32 %v1501_v61, %v1374_v59  ;;  %v1503_v4 = vpop.f32.mrb[21].mxu1  ;;  %v1702_v59 = vld [vmem:[#allocation16 + $0x198] sm:$0xff] (!%p3223_p13)  ;;  %v1703_v61 = vld [vmem:[#allocation16 + $0x1a0] sm:$0xff] (!%p3223_p13)  ;;  %4208 = vmatpush3.bf16.msra.mxu0 (!%p3223_p13), %v4205_v58 }
 0x5f9   : > { %v1563_v6 = vadd.f32 %v1503_v4, %v1375_v60  ;;  %v1505_v7 = vpop.f32.mrb[22].mxu1  ;;  %v4209_v60 = vpack.c.bf16 (!%p3223_p13), %v1702_v59, %v1701_v57  ;;  %v1634_v4 = vld [vmem:[#allocation2 + $0x8] sm:$0xff] (!%p3223_p13)  ;;  %v1654_v57 = vld [vmem:[#allocation5 + $0x20] sm:$0xff] (!%p3223_p13)  ;;  %v1885_v59 = vld [vmem:[#allocation16 + $0x228] sm:$0xff] (!%p3223_p13) }
 0x5fa   : > { %1594 = vst [vmem:[#allocation2 + $0x60] sm:$0xff] %v1562_v63  ;;  %v1564_v8 = vadd.f32 %v1505_v7, %v1376_v62  ;;  %v1507_v9 = vpop.f32.mrb[23].mxu1  ;;  %v1704_v62 = vld [vmem:[#allocation16 + $0x1a8] sm:$0xff] (!%p3223_p13)  ;;  %v1706_v7 = vld [vmem:[#allocation16 + $0x1b8] sm:$0xff] (!%p3223_p13)  ;;  %v1638_v56 = vld [vmem:[#allocation2 + $0x48] sm:$0xff] (!%p3223_p13) }
 0x5fb   : > { %1595 = vst [vmem:[#allocation2 + $0x68] sm:$0xff] %v1563_v6  ;;  %v1565_v10 = vadd.f32 %v1507_v9, %v1377_v5  ;;  %4210 = vmatprep.subr.bf16.mxu0 (!%p3223_p13), %v4209_v60  ;;  %v4213_v63 = vpack.c.bf16 (!%p3223_p13), %v1704_v62, %v1703_v61  ;;  %v1650_v5 = vld [vmem:[#allocation5] sm:$0xff] (!%p3223_p13)  ;;  %v1705_v6 = vld [vmem:[#allocation16 + $0x1b0] sm:$0xff] (!%p3223_p13)  ;;  %v1884_v58 = vld [vmem:[#allocation16 + $0x220] sm:$0xff] (!%p3223_p13)  ;;  %v1670_v62 = vadd.f32 (!%p3223_p13), %v1654_v57, %v1638_v56 }
 0x5fc   : > { %1596 = vst [vmem:[#allocation2 + $0x70] sm:$0xff] %v1564_v8  ;;  %v1666_v8 = vadd.f32 (!%p3223_p13), %v1650_v5, %v1634_v4  ;;  %4212 = vmatpush3.bf16.msra.mxu0 (!%p3223_p13), %v4209_v60  ;;  %v4217_v9 = vpack.c.bf16 (!%p3223_p13), %v1706_v7, %v1705_v6  ;;  %v1639_v61 = vld [vmem:[#allocation2 + $0x58] sm:$0xff] (!%p3223_p13)  ;;  %v1656_v5 = vld [vmem:[#allocation5 + $0x30] sm:$0xff] (!%p3223_p13)  ;;  %v4245_v6 = vpack.c.bf16 (!%p3223_p13), %v1885_v59, %v1884_v58  ;;  %v1891_v56 = vld [vmem:[#allocation16 + $0x258] sm:$0xff] (!%p3223_p13) }
 0x5fd   : > { %1597 = vst [vmem:[#allocation2 + $0x78] sm:$0xff] %v1565_v10  ;;  %4214 = vmatprep.subr.bf16.mxu0 (!%p3223_p13), %v4213_v63  ;;  %v1707_v10 = vld [vmem:[#allocation16 + $0x1c0] sm:$0xff] (!%p3223_p13)  ;;  %v1886_v7 = vld [vmem:[#allocation16 + $0x230] sm:$0xff] (!%p3223_p13) }
 0x5fe   : > { %3745 = vmatprep.mubr.f32.mxu0 (!%p3223_p13), %v1666_v8  ;;  %v2250_v8 = vld [vmem:[#allocation17 + $0x80] sm:$0xff] (!%p3223_p13) }
 0x5ff   : > { %v1511_v2 = vpop.f32.mrb[24].mxu1 }
 0x600   : > { %v1566_v14 = vadd.f32 %v1511_v2, %v1378_v12  ;;  %v1513_v15 = vpop.f32.mrb[25].mxu1  ;;  %v1708_v12 = vld [vmem:[#allocation16 + $0x1c8] sm:$0xff] (!%p3223_p13)  ;;  %4216 = vmatpush3.bf16.msra.mxu0 (!%p3223_p13), %v4213_v63  ;;  %v1709_v2 = vld [vmem:[#allocation16 + $0x1d0] sm:$0xff] (!%p3223_p13)  ;;  %v1655_v63 = vld [vmem:[#allocation5 + $0x28] sm:$0xff] (!%p3223_p13) }
 0x601   : > { %v1567_v17 = vadd.f32 %v1513_v15, %v1379_v13  ;;  %v1515_v18 = vpop.f32.mrb[26].mxu1  ;;  %4218 = vmatprep.subr.bf16.mxu0 (!%p3223_p13), %v4217_v9  ;;  %v4221_v13 = vpack.c.bf16 (!%p3223_p13), %v1708_v12, %v1707_v10  ;;  %v1711_v15 = vld [vmem:[#allocation16 + $0x1e0] sm:$0xff] (!%p3223_p13)  ;;  %v1887_v10 = vld [vmem:[#allocation16 + $0x238] sm:$0xff] (!%p3223_p13) }
 0x602   : > { %1598 = vst [vmem:[#allocation2 + $0x80] sm:$0xff] %v1566_v14  ;;  %v1568_v19 = vadd.f32 %v1515_v18, %v1380_v3  ;;  %v1517_v20 = vpop.f32.mrb[27].mxu1  ;;  %v1710_v3 = vld [vmem:[#allocation16 + $0x1d8] sm:$0xff] (!%p3223_p13)  ;;  %v1640_v4 = vld [vmem:[#allocation2 + $0x68] sm:$0xff] (!%p3223_p13) }
 0x603   : > { %1599 = vst [vmem:[#allocation2 + $0x88] sm:$0xff] %v1567_v17  ;;  %v1569_v21 = vadd.f32 %v1517_v20, %v1381_v16  ;;  %v4225_v14 = vpack.c.bf16 (!%p3223_p13), %v1710_v3, %v1709_v2  ;;  %v1712_v16 = vld [vmem:[#allocation16 + $0x1e8] sm:$0xff] (!%p3223_p13)  ;;  %v5579_v18 = vld [vmem:[#allocation2] sm:$0xff] (!%p3223_p13)  ;;  %v1713_v20 = vld [vmem:[#allocation16 + $0x1f0] sm:$0xff] (!%p3223_p13)  ;;  %v1671_v3 = vadd.f32 (!%p3223_p13), %v1655_v63, %v1639_v61 }
 0x604   : > { %1600 = vst [vmem:[#allocation2 + $0x90] sm:$0xff] %v1568_v19  ;;  %4220 = vmatpush3.bf16.msra.mxu0 (!%p3223_p13), %v4217_v9  ;;  %v4229_v17 = vpack.c.bf16 (!%p3223_p13), %v1712_v16, %v1711_v15  ;;  %v5581_v19 = vld [vmem:[#allocation2 + $0x10] sm:$0xff] (!%p3223_p13)  ;;  %v2253_v2 = vld [vmem:[#allocation17 + $0x98] sm:$0xff] (!%p3223_p13)  ;;  %v1657_v15 = vld [vmem:[#allocation5 + $0x38] sm:$0xff] (!%p3223_p13) }
 0x605   : > { %1601 = vst [vmem:[#allocation2 + $0x98] sm:$0xff] %v1569_v21  ;;  %4222 = vmatprep.subr.bf16.mxu0 (!%p3223_p13), %v4221_v13  ;;  %v1714_v21 = vld [vmem:[#allocation16 + $0x1f8] sm:$0xff] (!%p3223_p13)  ;;  %v2251_v9 = vld [vmem:[#allocation17 + $0x88] sm:$0xff] (!%p3223_p13)  ;;  %v2258_v63 = vld [vmem:[#allocation17 + $0xc0] sm:$0xff] (!%p3223_p13) }
 0x606   : > { %v4301_v12 = vpack.c.bf16 (!%p3223_p13), %v2251_v9, %v2250_v8  ;;  %v1892_v8 = vld [vmem:[#allocation16 + $0x260] sm:$0xff] (!%p3223_p13)  ;;  %v1893_v9 = vld [vmem:[#allocation16 + $0x268] sm:$0xff] (!%p3223_p13) }
 0x607   : > { %v1521_v24 = vpop.f32.mrb[28].mxu1 }
 0x608   : > { %v1570_v26 = vadd.f32 %v1521_v24, %v1382_v22  ;;  %v1523_v27 = vpop.f32.mrb[29].mxu1  ;;  %4224 = vmatpush3.bf16.msra.mxu0 (!%p3223_p13), %v4221_v13  ;;  %v2449_v22 = vpack.c.bf16 (!%p3223_p13), %v5581_v19, %v5579_v18  ;;  %v5587_v24 = vld [vmem:[#allocation2 + $0x30] sm:$0xff] (!%p3223_p13)  ;;  %v2252_v13 = vld [vmem:[#allocation17 + $0x90] sm:$0xff] (!%p3223_p13)  ;;  %4302 = vmatprep.subr.bf16.mxu1 (!%p3223_p13), %v4301_v12 }
 0x609   : > { %v1571_v29 = vadd.f32 %v1523_v27, %v1383_v23  ;;  %v1525_v30 = vpop.f32.mrb[30].mxu1  ;;  %4226 = vmatprep.subr.bf16.mxu0 (!%p3223_p13), %v4225_v14  ;;  %v5585_v23 = vld [vmem:[#allocation2 + $0x20] sm:$0xff] (!%p3223_p13)  ;;  %v5593_v27 = vld [vmem:[#allocation2 + $0x50] sm:$0xff] (!%p3223_p13)  ;;  %v4305_v16 = vpack.c.bf16 (!%p3223_p13), %v2253_v2, %v2252_v13  ;;  %4304 = vmatpush3.bf16.msra.mxu1 (!%p3223_p13), %v4301_v12 }
 0x60a   : > { %1602 = vst [vmem:[#allocation2 + $0xa0] sm:$0xff] %v1570_v26  ;;  %v1572_v31 = vadd.f32 %v1525_v30, %v1384_v25  ;;  %v1527_v32 = vpop.f32.mrb[31].mxu1  ;;  %v2451_v25 = vpack.c.bf16 (!%p3223_p13), %v5587_v24, %v5585_v23  ;;  %v5591_v26 = vld [vmem:[#allocation2 + $0x40] sm:$0xff] (!%p3223_p13) }
 0x60b   : > { %1603 = vst [vmem:[#allocation2 + $0xa8] sm:$0xff] %v1571_v29  ;;  %v1573_v33 = vadd.f32 %v1527_v32, %v1385_v28  ;;  %v4233_v28 = vpack.c.bf16 (!%p3223_p13), %v1714_v21, %v1713_v20  ;;  %v2453_v29 = vpack.c.bf16 (!%p3223_p13), %v5593_v27, %v5591_v26  ;;  %v5597_v30 = vld [vmem:[#allocation2 + $0x60] sm:$0xff] (!%p3223_p13)  ;;  %v1635_v32 = vld [vmem:[#allocation2 + $0x18] sm:$0xff] (!%p3223_p13)  ;;  %v1642_v20 = vld [vmem:[#allocation2 + $0x88] sm:$0xff] (!%p3223_p13)  ;;  %4306 = vmatprep.subr.bf16.mxu1 (!%p3223_p13), %v4305_v16 }
 0x60c   : > { %1604 = vst [vmem:[#allocation2 + $0xb0] sm:$0xff] %v1572_v31  ;;  %4228 = vmatpush3.bf16.msra.mxu0 (!%p3223_p13), %v4225_v14  ;;  %v5599_v31 = vld [vmem:[#allocation2 + $0x70] sm:$0xff] (!%p3223_p13)  ;;  %v1641_v14 = vld [vmem:[#allocation2 + $0x78] sm:$0xff] (!%p3223_p13)  ;;  %v2254_v21 = vld [vmem:[#allocation17 + $0xa0] sm:$0xff] (!%p3223_p13) }
 0x60d   : > { %1605 = vst [vmem:[#allocation2 + $0xb8] sm:$0xff] %v1573_v33  ;;  %4230 = vmatprep.subr.bf16.mxu0 (!%p3223_p13), %v4229_v17  ;;  %v1880_v33 = vld [vmem:[#allocation16 + $0x200] sm:$0xff] (!%p3223_p13)  ;;  %4308 = vmatpush3.bf16.msra.mxu1 (!%p3223_p13), %v4305_v16  ;;  %v4261_v16 = vpack.c.bf16 (!%p3223_p13), %v1893_v9, %v1892_v8  ;;  %v2068_v8 = vld [vmem:[#allocation16 + $0x2d8] sm:$0xff] (!%p3223_p13) }
 0x60f   : > { %v1531_v36 = vpop.f32.mrb[32].mxu1 }
 0x610   : > { %v1574_v11 = vadd.f32 %v1531_v36, %v1386_v34  ;;  %v1533_v38 = vpop.f32.mrb[33].mxu1  ;;  %v1881_v34 = vld [vmem:[#allocation16 + $0x208] sm:$0xff] (!%p3223_p13)  ;;  %v1651_v36 = vld [vmem:[#allocation5 + $0x8] sm:$0xff] (!%p3223_p13)  ;;  %4232 = vmatpush3.bf16.msra.mxu0 (!%p3223_p13), %v4229_v17  ;;  %v1672_v17 = vadd.f32 (!%p3223_p13), %v1656_v5, %v1640_v4 }
 0x611   : > { %v1575_v0 = vadd.f32 %v1533_v38, %v1387_v35  ;;  %v1535_v1 = vpop.f32.mrb[34].mxu1  ;;  %v2455_v35 = vpack.c.bf16 (!%p3223_p13), %v5599_v31, %v5597_v30  ;;  %v1636_v38 = vld [vmem:[#allocation2 + $0x28] sm:$0xff] (!%p3223_p13)  ;;  %4234 = vmatprep.subr.bf16.mxu0 (!%p3223_p13), %v4233_v28  ;;  %v2259_v4 = vld [vmem:[#allocation17 + $0xc8] sm:$0xff] (!%p3223_p13) }
 0x612   : > { %1606 = vst [vmem:[#allocation2 + $0xc0] sm:$0xff] %v1574_v11  ;;  %v1576_v40 = vadd.f32 %v1535_v1, %v1388_v37  ;;  %v1537_v41 = vpop.f32.mrb[35].mxu1  ;;  %v5603_v37 = vld [vmem:[#allocation2 + $0x80] sm:$0xff] (!%p3223_p13)  ;;  %v5605_v11 = vld [vmem:[#allocation2 + $0x90] sm:$0xff] (!%p3223_p13)  ;;  %v4317_v13 = vpack.c.bf16 (!%p3223_p13), %v2259_v4, %v2258_v63  ;;  %v2065_v4 = vld [vmem:[#allocation16 + $0x2c0] sm:$0xff] (!%p3223_p13) }
 0x613   : > { %1607 = vst [vmem:[#allocation2 + $0xc8] sm:$0xff] %v1575_v0  ;;  %v1577_v42 = vadd.f32 %v1537_v41, %v1389_v39  ;;  %v2457_v39 = vpack.c.bf16 (!%p3223_p13), %v5605_v11, %v5603_v37  ;;  %v5609_v0 = vld [vmem:[#allocation2 + $0xa0] sm:$0xff] (!%p3223_p13)  ;;  %v5611_v1 = vld [vmem:[#allocation2 + $0xb0] sm:$0xff] (!%p3223_p13) }
 0x614   : > { %1608 = vst [vmem:[#allocation2 + $0xd0] sm:$0xff] %v1576_v40  ;;  %v4237_v40 = vpack.c.bf16 (!%p3223_p13), %v1881_v34, %v1880_v33  ;;  %v1652_v41 = vld [vmem:[#allocation5 + $0x10] sm:$0xff] (!%p3223_p13)  ;;  %4236 = vmatpush3.bf16.msra.mxu0 (!%p3223_p13), %v4233_v28  ;;  %v1658_v33 = vld [vmem:[#allocation5 + $0x40] sm:$0xff] (!%p3223_p13)  ;;  %v1888_v34 = vld [vmem:[#allocation16 + $0x240] sm:$0xff] (!%p3223_p13) }
 0x615   : > { %1609 = vst [vmem:[#allocation2 + $0xd8] sm:$0xff] %v1577_v42  ;;  %v2459_v42 = vpack.c.bf16 (!%p3223_p13), %v5611_v1, %v5609_v0  ;;  %v2255_v28 = vld [vmem:[#allocation17 + $0xa8] sm:$0xff] (!%p3223_p13)  ;;  %v1645_v59 = vld [vmem:[#allocation2 + $0xb8] sm:$0xff] (!%p3223_p13) }
 0x616   : > { %4238 = vmatprep.subr.bf16.mxu0 (!%p3223_p13), %v4237_v40 }
 0x617   : > { %v1541_v45 = vpop.f32.mrb[36].mxu1  ;;  %1617 = sbr.rel (%p3223_p13) target bundleno = 2800 (0xaf0), region = 100 }
 0x618   : > { %v1578_v47 = vadd.f32 %v1541_v45, %v1390_v43  ;;  %v1543_v48 = vpop.f32.mrb[37].mxu1  ;;  %v1882_v45 = vld [vmem:[#allocation16 + $0x210] sm:$0xff] (!%p3223_p13) }
 0x619   : > { %v1579_v50 = vadd.f32 %v1543_v48, %v1391_v44  ;;  %v1545_v51 = vpop.f32.mrb[38].mxu1  ;;  %v5615_v43 = vld [vmem:[#allocation2 + $0xc0] sm:$0xff] (!%p3223_p13)  ;;  %v1667_v48 = vadd.f32 (!%p3223_p13), %v1651_v36, %v1635_v32  ;;  %v4249_v32 = vpack.c.bf16 (!%p3223_p13), %v1887_v10, %v1886_v7  ;;  %v1889_v36 = vld [vmem:[#allocation16 + $0x248] sm:$0xff] (!%p3223_p13) }
 0x61a   : > { %1610 = vst [vmem:[#allocation2 + $0xe0] sm:$0xff] %v1578_v47  ;;  %v1580_v52 = vadd.f32 %v1545_v51, %v1392_v46  ;;  %v1547_v53 = vpop.f32.mrb[39].mxu1  ;;  %v1883_v46 = vld [vmem:[#allocation16 + $0x218] sm:$0xff] (!%p3223_p13)  ;;  %v1668_v51 = vadd.f32 (!%p3223_p13), %v1652_v41, %v1636_v38  ;;  %v1643_v38 = vld [vmem:[#allocation2 + $0x98] sm:$0xff] (!%p3223_p13)  ;;  %v4253_v57 = vpack.c.bf16 (!%p3223_p13), %v1889_v36, %v1888_v34 }
 0x61b   : > { %1611 = vst [vmem:[#allocation2 + $0xe8] sm:$0xff] %v1579_v50  ;;  %v1581_v54 = vadd.f32 %v1547_v53, %v1393_v49  ;;  %v5617_v44 = vld [vmem:[#allocation2 + $0xd0] sm:$0xff] (!%p3223_p13)  ;;  %v1653_v53 = vld [vmem:[#allocation5 + $0x18] sm:$0xff] (!%p3223_p13)  ;;  %v4241_v55 = vpack.c.bf16 (!%p3223_p13), %v1883_v46, %v1882_v45  ;;  %3746 = vmatmul.mubr.f32.vlgmr.msra.gmra.mrb[0].mxu0 (!%p3223_p13), %v1667_v48  ;;  %v2257_v45 = vld [vmem:[#allocation17 + $0xb8] sm:$0xff] (!%p3223_p13)  ;;  %v1673_v46 = vadd.f32 (!%p3223_p13), %v1657_v15, %v1641_v14 }
 0x61c   : > { %1612 = vst [vmem:[#allocation2 + $0xf0] sm:$0xff] %v1580_v52  ;;  %v2461_v47 = vpack.c.bf16 (!%p3223_p13), %v5617_v44, %v5615_v43  ;;  %v1637_v52 = vld [vmem:[#allocation2 + $0x38] sm:$0xff] (!%p3223_p13)  ;;  %4240 = vmatpush3.bf16.msra.mxu0 (!%p3223_p13), %v4237_v40  ;;  %3748 = vmatprep.mubr.f32.mxu0 (!%p3223_p13), %v1668_v51  ;;  %v1659_v40 = vld [vmem:[#allocation5 + $0x48] sm:$0xff] (!%p3223_p13)  ;;  %v1660_v51 = vld [vmem:[#allocation5 + $0x50] sm:$0xff] (!%p3223_p13) }
 0x61d   : > { %1613 = vst [vmem:[#allocation2 + $0xf8] sm:$0xff] %v1581_v54  ;;  %v1669_v60 = vadd.f32 (!%p3223_p13), %v1653_v53, %v1637_v52  ;;  %4242 = vmatprep.subr.bf16.mxu0 (!%p3223_p13), %v4241_v55  ;;  %v2256_v41 = vld [vmem:[#allocation17 + $0xb0] sm:$0xff] (!%p3223_p13)  ;;  %v1644_v48 = vld [vmem:[#allocation2 + $0xa8] sm:$0xff] (!%p3223_p13)  ;;  %v4309_v52 = vpack.c.bf16 (!%p3223_p13), %v2255_v28, %v2254_v21  ;;  %v1674_v53 = vadd.f32 (!%p3223_p13), %v1658_v33, %v1642_v20  ;;  %v1662_v7 = vld [vmem:[#allocation5 + $0x60] sm:$0xff] (!%p3223_p13) }
 0x61e   : > { %v1675_v58 = vadd.f32 %v1659_v40, %v1643_v38  ;;  %v1676_v61 = vadd.f32 %v1660_v51, %v1644_v48  ;;  %v1647_v12 = vld [vmem:[#allocation2 + $0xd8] sm:$0xff]  ;;  %v2261_v15 = vld [vmem:[#allocation17 + $0xd8] sm:$0xff]  ;;  %v1664_v20 = vld [vmem:[#allocation5 + $0x70] sm:$0xff] }
 0x61f   : > { %3749 = vmatmul.mubr.f32.gmra.mrb[2].mxu0 %v1669_v60  ;;  %4310 = vmatprep.subr.bf16.mxu1 %v4309_v52  ;;  %v4313_v60 = vpack.c.bf16 %v2257_v45, %v2256_v41  ;;  %v2260_v14 = vld [vmem:[#allocation17 + $0xd0] sm:$0xff]  ;;  %v1895_v28 = vld [vmem:[#allocation16 + $0x278] sm:$0xff]  ;;  %v2262_v40 = vld [vmem:[#allocation17 + $0xe0] sm:$0xff] }
 0x620   : > { %4244 = vmatpush3.bf16.msra.mxu0 %v4241_v55  ;;  %3751 = vmatprep.mubr.f32.mxu0 %v1670_v62  ;;  %v1890_v55 = vld [vmem:[#allocation16 + $0x250] sm:$0xff]  ;;  %v4321_v34 = vpack.c.bf16 %v2261_v15, %v2260_v14  ;;  %v2263_v41 = vld [vmem:[#allocation17 + $0xe8] sm:$0xff]  ;;  %v1682_v15 = vld [vmem:[#allocation3] sm:$0xff] }
 0x621   : > { %v5621_v49 = vld [vmem:[#allocation2 + $0xe0] sm:$0xff]  ;;  %4246 = vmatprep.subr.bf16.mxu0 %v4245_v6  ;;  %v1661_v62 = vld [vmem:[#allocation5 + $0x58] sm:$0xff]  ;;  %v4257_v5 = vpack.c.bf16 %v1891_v56, %v1890_v55  ;;  %4312 = vmatpush3.bf16.msra.mxu1 %v4309_v52  ;;  %v2058_v48 = vld [vmem:[#allocation16 + $0x288] sm:$0xff]  ;;  %v4325_v52 = vpack.c.bf16 %v2263_v41, %v2262_v40 }
 0x622   : > { %v1677_v10 = vadd.f32 %v1661_v62, %v1645_v59  ;;  %4314 = vmatprep.subr.bf16.mxu1 %v4313_v60  ;;  %v1894_v21 = vld [vmem:[#allocation16 + $0x270] sm:$0xff]  ;;  %v2060_v56 = vld [vmem:[#allocation16 + $0x298] sm:$0xff]  ;;  %v2062_v59 = vld [vmem:[#allocation16 + $0x2a8] sm:$0xff] }
 0x623   : > { %v5623_v50 = vld [vmem:[#allocation2 + $0xf0] sm:$0xff]  ;;  %3752 = vmatmul.mubr.f32.gmra.mrb[4].mxu0 %v1671_v3  ;;  %v1663_v3 = vld [vmem:[#allocation5 + $0x68] sm:$0xff]  ;;  %v1665_v38 = vld [vmem:[#allocation5 + $0x78] sm:$0xff]  ;;  %v4265_v45 = vpack.c.bf16 %v1895_v28, %v1894_v21 }
 0x624   : > { %v2463_v54 = vpack.c.bf16 %v5623_v50, %v5621_v49  ;;  %4248 = vmatpush3.bf16.msra.mxu0 %v4245_v6  ;;  %3754 = vmatprep.mubr.f32.mxu0 %v1672_v17  ;;  %v1646_v6 = vld [vmem:[#allocation2 + $0xc8] sm:$0xff]  ;;  %v1649_v33 = vld [vmem:[#allocation2 + $0xf8] sm:$0xff]  ;;  %v2064_v62 = vld [vmem:[#allocation16 + $0x2b8] sm:$0xff] }
 0x625   : > { %4250 = vmatprep.subr.bf16.mxu0 %v4249_v32  ;;  %v1678_v2 = vadd.f32 %v1662_v7, %v1646_v6  ;;  %v1648_v17 = vld [vmem:[#allocation2 + $0xe8] sm:$0xff]  ;;  %4316 = vmatpush3.bf16.msra.mxu1 %v4313_v60  ;;  %v1681_v51 = vadd.f32 %v1665_v38, %v1649_v33  ;;  %v2059_v55 = vld [vmem:[#allocation16 + $0x290] sm:$0xff]  ;;  %v1686_v21 = vld [vmem:[#allocation3 + $0x20] sm:$0xff] }
 0x626   : > { %4318 = vmatprep.subr.bf16.mxu1 %v4317_v13  ;;  %v1680_v36 = vadd.f32 %v1664_v20, %v1648_v17  ;;  %v2067_v7 = vld [vmem:[#allocation16 + $0x2d0] sm:$0xff]  ;;  %v1684_v17 = vld [vmem:[#allocation3 + $0x10] sm:$0xff]  ;;  %v1687_v28 = vld [vmem:[#allocation3 + $0x28] sm:$0xff] }
 0x627   : > { %3755 = vmatmul.mubr.f32.gmra.mrb[6].mxu0 %v1673_v46  ;;  %v2057_v46 = vld [vmem:[#allocation16 + $0x280] sm:$0xff]  ;;  %v4289_v9 = vpack.c.bf16 %v2068_v8, %v2067_v7  ;;  %v1685_v20 = vld [vmem:[#allocation3 + $0x18] sm:$0xff]  ;;  %v1692_v38 = vld [vmem:[#allocation3 + $0x50] sm:$0xff] }
 0x628   : > { %4252 = vmatpush3.bf16.msra.mxu0 %v4249_v32  ;;  %3757 = vmatprep.mubr.f32.mxu0 %v1674_v53  ;;  %v1679_v32 = vadd.f32 %v1663_v3, %v1647_v12  ;;  %v4269_v53 = vpack.c.bf16 %v2058_v48, %v2057_v46  ;;  %v2070_v12 = vld [vmem:[#allocation16 + $0x2e8] sm:$0xff]  ;;  %v2072_v3 = vld [vmem:[#allocation16 + $0x2f8] sm:$0xff]  ;;  %v1689_v33 = vld [vmem:[#allocation3 + $0x38] sm:$0xff] }
 0x629   : > { %4254 = vmatprep.subr.bf16.mxu0 %v4253_v57  ;;  %4320 = vmatpush3.bf16.msra.mxu1 %v4317_v13  ;;  %v1693_v40 = vld [vmem:[#allocation3 + $0x58] sm:$0xff]  ;;  %v1694_v41 = vld [vmem:[#allocation3 + $0x60] sm:$0xff]  ;;  %v1696_v46 = vld [vmem:[#allocation3 + $0x70] sm:$0xff] }
 0x62a   : > { %4322 = vmatprep.subr.bf16.mxu1 %v4321_v34  ;;  %v1697_v48 = vld [vmem:[#allocation3 + $0x78] sm:$0xff] }
 0x62b   : > { %3758 = vmatmul.mubr.f32.gmra.mrb[8].mxu0 %v1675_v58  ;;  %v2061_v58 = vld [vmem:[#allocation16 + $0x2a0] sm:$0xff] }
 0x62c   : > { %4256 = vmatpush3.bf16.msra.mxu0 %v4253_v57  ;;  %3760 = vmatprep.mubr.f32.mxu0 %v1676_v61  ;;  %v4273_v57 = vpack.c.bf16 %v2060_v56, %v2059_v55  ;;  %v4277_v60 = vpack.c.bf16 %v2062_v59, %v2061_v58  ;;  %v2063_v61 = vld [vmem:[#allocation16 + $0x2b0] sm:$0xff]  ;;  %v4645_v55 = vld [vmem:[#allocation14] sm:$0xff]   ;;  %v4646_v56 = vld [vmem:[#allocation14 + $0x8] sm:$0xff]  }
 0x62d   : > { %4258 = vmatprep.subr.bf16.mxu0 %v4257_v5  ;;  %4324 = vmatpush3.bf16.msra.mxu1 %v4321_v34  ;;  %v4281_v63 = vpack.c.bf16 %v2064_v62, %v2063_v61  ;;  %v1690_v34 = vld [vmem:[#allocation3 + $0x40] sm:$0xff]  ;;  %v4649_v59 = vld [vmem:[#allocation14 + $0x20] sm:$0xff]   ;;  %v4651_v61 = vld [vmem:[#allocation14 + $0x30] sm:$0xff]  }
 0x62e   : > { %4326 = vmatprep.subr.bf16.mxu1 %v4325_v52  ;;  %2512 = vxpose.xlu0.c.b16.start [1/8] (narrow) %v4645_v55, 16  ;;  %v4648_v58 = vld [vmem:[#allocation14 + $0x18] sm:$0xff]  }
 0x62f   : > { %3761 = vmatmul.mubr.f32.gmra.mrb[10].mxu0 %v1677_v10  ;;  %v2069_v10 = vld [vmem:[#allocation16 + $0x2e0] sm:$0xff]  ;;  %v4652_v62 = vld [vmem:[#allocation14 + $0x38] sm:$0xff]  }
 0x630   : > { %4260 = vmatpush3.bf16.msra.mxu0 %v4257_v5  ;;  %3763 = vmatprep.mubr.f32.mxu0 %v1678_v2  ;;  %v2066_v5 = vld [vmem:[#allocation16 + $0x2c8] sm:$0xff]  ;;  %v4293_v13 = vpack.c.bf16 %v2070_v12, %v2069_v10  ;;  %v2071_v2 = vld [vmem:[#allocation16 + $0x2f0] sm:$0xff] }
 0x631   : > { %4262 = vmatprep.subr.bf16.mxu0 %v4261_v16  ;;  %4328 = vmatpush3.bf16.msra.mxu1 %v4325_v52  ;;  %v4285_v6 = vpack.c.bf16 %v2066_v5, %v2065_v4  ;;  %v4297_v14 = vpack.c.bf16 %v2072_v3, %v2071_v2  ;;  %v2265_v52 = vld [vmem:[#allocation17 + $0xf8] sm:$0xff] }
 0x632   : > { %2513 = vxpose.xlu0.c.b16.cont [2/8] (narrow) %v4646_v56, 16 }
 0x633   : > { %3764 = vmatmul.mubr.f32.gmra.mrb[12].mxu0 %v1679_v32  ;;  %v1688_v32 = vld [vmem:[#allocation3 + $0x30] sm:$0xff] }
 0x634   : > { %4264 = vmatpush3.bf16.msra.mxu0 %v4261_v16  ;;  %3766 = vmatprep.mubr.f32.mxu0 %v1680_v36  ;;  %v1683_v16 = vld [vmem:[#allocation3 + $0x8] sm:$0xff] }
 0x635   : > { %4266 = vmatprep.subr.bf16.mxu0 %v4265_v45  ;;  %v1691_v36 = vld [vmem:[#allocation3 + $0x48] sm:$0xff] }
 0x637   : > { %3767 = vmatmul.mubr.f32.gmra.mrb[14].mxu0 %v1681_v51  ;;  %v2264_v51 = vld [vmem:[#allocation17 + $0xf0] sm:$0xff] }
 0x638   : > { %4268 = vmatpush3.bf16.msra.mxu0 %v4265_v45  ;;  %3801 = vmatprep.mubr.f32.mxu0 %v5579_v18  ;;  %v1695_v45 = vld [vmem:[#allocation3 + $0x68] sm:$0xff] }
 0x639   : > { %4270 = vmatprep.subr.bf16.mxu0 %v4269_v53 }
 0x63b   : > { %3802 = vmatmul.mubr.f32.vlgmr.msra.gmra.mrb[0].mxu0 %v5581_v19 }
 0x63c   : > { %4272 = vmatpush3.bf16.msra.mxu0 %v4269_v53  ;;  %3804 = vmatprep.mubr.f32.mxu0 %v5585_v23  ;;  %v4329_v53 = vpack.c.bf16 %v2265_v52, %v2264_v51 }
 0x63d   : > { %4274 = vmatprep.subr.bf16.mxu0 %v4273_v57 }
 0x63e   : > { %4330 = vmatprep.subr.bf16.mxu1 %v4329_v53 }
 0x63f   : > { %3805 = vmatmul.mubr.f32.gmra.mrb[2].mxu0 %v5587_v24  ;;  %4332 = vmatpush3.bf16.msra.mxu1 %v4329_v53 }
 0x640   : > { %4276 = vmatpush3.bf16.msra.mxu0 %v4273_v57  ;;  %3807 = vmatprep.mubr.f32.mxu0 %v5591_v26  ;;  %v4647_v57 = vld [vmem:[#allocation14 + $0x10] sm:$0xff]  }
 0x641   : > { %4278 = vmatprep.subr.bf16.mxu0 %v4277_v60  ;;  %2528 = vmatprep.subr.bf16.mxu1 %v2449_v22 }
 0x642   : > { %2514 = vxpose.xlu0.c.b16.cont [3/8] (narrow) %v4647_v57, 16 }
 0x643   : > { %3808 = vmatmul.mubr.f32.gmra.mrb[4].mxu0 %v5593_v27 }
 0x644   : > { %4280 = vmatpush3.bf16.msra.mxu0 %v4277_v60  ;;  %3810 = vmatprep.mubr.f32.mxu0 %v5597_v30  ;;  %v4650_v60 = vld [vmem:[#allocation14 + $0x28] sm:$0xff]  }
 0x645   : > { %4282 = vmatprep.subr.bf16.mxu0 %v4281_v63 }
 0x646   : > { %2515 = vxpose.xlu0.c.b16.cont [4/8] (narrow) %v4648_v58, 16 }
 0x647   : > { %3811 = vmatmul.mubr.f32.gmra.mrb[6].mxu0 %v5599_v31 }
 0x648   : > { %4284 = vmatpush3.bf16.msra.mxu0 %v4281_v63  ;;  %3813 = vmatprep.mubr.f32.mxu0 %v5603_v37  ;;  %v3224_v63 = vld [vmem:[#allocation19 + $0x2] ss:$0 sm:$0xff] }
 0x649   : > { %4286 = vmatprep.subr.bf16.mxu0 %v4285_v6 }
 0x64a   : > { %2516 = vxpose.xlu0.c.b16.cont [5/8] (narrow) %v4649_v59, 16 }
 0x64b   : > { %3814 = vmatmul.mubr.f32.gmra.mrb[8].mxu0 %v5605_v11 }
 0x64c   : > { %4288 = vmatpush3.bf16.msra.mxu0 %v4285_v6  ;;  %3816 = vmatprep.mubr.f32.mxu0 %v5609_v0 }
 0x64d   : > { %4290 = vmatprep.subr.bf16.mxu0 %v4289_v9 }
 0x64e   : > { %2517 = vxpose.xlu0.c.b16.cont [6/8] (narrow) %v4650_v60, 16 }
 0x64f   : > { %3817 = vmatmul.mubr.f32.gmra.mrb[10].mxu0 %v5611_v1 }
 0x650   : > { %4292 = vmatpush3.bf16.msra.mxu0 %v4289_v9  ;;  %3819 = vmatprep.mubr.f32.mxu0 %v5615_v43 }
 0x651   : > { %4294 = vmatprep.subr.bf16.mxu0 %v4293_v13 }
 0x652   : > { %2518 = vxpose.xlu0.c.b16.cont [7/8] (narrow) %v4651_v61, 16 }
 0x653   : > { %3820 = vmatmul.mubr.f32.gmra.mrb[12].mxu0 %v5617_v44 }
 0x654   : > { %4296 = vmatpush3.bf16.msra.mxu0 %v4293_v13  ;;  %3822 = vmatprep.mubr.f32.mxu0 %v5621_v49 }
 0x655   : > { %4298 = vmatprep.subr.bf16.mxu0 %v4297_v14 }
 0x656   : > { %2519 = vxpose.xlu0.c.b16.end [8/8] (narrow) %v4652_v62, 16 }
 0x657   : > { %3823 = vmatmul.mubr.f32.gmra.mrb[14].mxu0 %v5623_v50  ;;  %v2577_v50 = vld [vmem:[#allocation16 + $0x330] sm:$0xff] }
 0x658   : > { %4300 = vmatpush3.bf16.msra.mxu0 %v4297_v14  ;;  %3857 = vmatprep.mubr.f32.mxu0 %v1682_v15 }
 0x65b   : > { %3858 = vmatmul.mubr.f32.vlgmr.msra.gmra.mrb[0].mxu0 %v1683_v16 }
 0x65c   : > { %3860 = vmatprep.mubr.f32.mxu0 %v1684_v17 }
 0x65f   : > { %3861 = vmatmul.mubr.f32.gmra.mrb[2].mxu0 %v1685_v20 }
 0x660   : > { %3863 = vmatprep.mubr.f32.mxu0 %v1686_v21 }
 0x663   : > { %3864 = vmatmul.mubr.f32.gmra.mrb[4].mxu0 %v1687_v28 }
 0x664   : > { %3866 = vmatprep.mubr.f32.mxu0 %v1688_v32 }
 0x667   : > { %3867 = vmatmul.mubr.f32.gmra.mrb[6].mxu0 %v1689_v33 }
 0x668   : > { %3869 = vmatprep.mubr.f32.mxu0 %v1690_v34 }
 0x66b   : > { %3870 = vmatmul.mubr.f32.gmra.mrb[8].mxu0 %v1691_v36 }
 0x66c   : > { %3872 = vmatprep.mubr.f32.mxu0 %v1692_v38 }
 0x66f   : > { %3873 = vmatmul.mubr.f32.gmra.mrb[10].mxu0 %v1693_v40 }
 0x670   : > { %3875 = vmatprep.mubr.f32.mxu0 %v1694_v41 }
 0x673   : > { %3876 = vmatmul.mubr.f32.gmra.mrb[12].mxu0 %v1695_v45 }
 0x674   : > { %3878 = vmatprep.mubr.f32.mxu0 %v1696_v46 }
 0x677   : > { %3879 = vmatmul.mubr.f32.gmra.mrb[14].mxu0 %v1697_v48 }
 0x6a0   : > { %v2520_v43 = vpop.trf.xlu0 }
 0x72e   : > { %v3859_v4 = vpop.f32.mrb[0].mxu0 }
 0x72f   : > { %v4437_v18 = vadd.f32 %v3859_v4, %v3224_v63  ;;  %v2139_v19 = vpop.f32.mrb[1].mxu0 }
 0x730   : > { %v4438_v22 = vadd.f32 %v3224_v63, %v2139_v19 }
 0x731   : > { %v2235_v7 = vmax.f32 %v4437_v18, 0.0 }
 0x732   : > { %v3862_v5 = vpop.f32.mrb[2].mxu0  ;;  %v2234_v6 = vmax.f32 %v4438_v22, 0.0 }
 0x733   : > { %v4439_v8 = vadd.f32 %v3862_v5, %v3224_v63  ;;  %v2149_v9 = vpop.f32.mrb[3].mxu0 }
 0x734   : > { %v4440_v10 = vadd.f32 %v3224_v63, %v2149_v9  ;;  %3913 = vmatprep.mubr.f32.mxu1 %v2234_v6  ;;  %v5647_v9 = vld [vmem:[#allocation19 + $0x3] ss:$0 sm:$0xff] }
 0x735   : > { %3914 = vmatmul.mubr.f32.vlgmr.msra.gmra.mrb[0].mxu1 %v2235_v7  ;;  %v2237_v2 = vmax.f32 %v4439_v8, 0.0  ;;  %v5076_v7 = vmov 0   ;;  %v5077_v8 = vmov 0.0|0.0  }
 0x736   : > { %v2236_v12 = vmax.f32 %v4440_v10, 0.0  ;;  %v3865_v13 = vpop.f32.mrb[4].mxu0  ;;  %4405 = vmatprep.subr.bf16.mxu0 %v5077_v8 }
 0x737   : > { %v4441_v3 = vadd.f32 %v3865_v13, %v3224_v63  ;;  %v2159_v14 = vpop.f32.mrb[5].mxu0 }
 0x738   : > { %v4442_v15 = vadd.f32 %v3224_v63, %v2159_v14  ;;  %3916 = vmatprep.mubr.f32.mxu1 %v2236_v12 }
 0x739   : > { %3917 = vmatmul.mubr.f32.gmra.mrb[2].mxu1 %v2237_v2  ;;  %v2239_v20 = vmax.f32 %v4441_v3, 0.0 }
 0x73a   : > { %v2238_v16 = vmax.f32 %v4442_v15, 0.0  ;;  %v3868_v17 = vpop.f32.mrb[6].mxu0 }
 0x73b   : > { %v4443_v21 = vadd.f32 %v3868_v17, %v3224_v63  ;;  %v2169_v28 = vpop.f32.mrb[7].mxu0 }
 0x73c   : > { %v4444_v32 = vadd.f32 %v3224_v63, %v2169_v28  ;;  %3919 = vmatprep.mubr.f32.mxu1 %v2238_v16 }
 0x73d   : > { %3920 = vmatmul.mubr.f32.gmra.mrb[4].mxu1 %v2239_v20  ;;  %v2241_v36 = vmax.f32 %v4443_v21, 0.0 }
 0x73e   : > { %v2240_v33 = vmax.f32 %v4444_v32, 0.0  ;;  %v3871_v34 = vpop.f32.mrb[8].mxu0 }
 0x73f   : > { %v4445_v38 = vadd.f32 %v3871_v34, %v3224_v63  ;;  %v2179_v40 = vpop.f32.mrb[9].mxu0 }
 0x740   : > { %v4446_v41 = vadd.f32 %v3224_v63, %v2179_v40  ;;  %3922 = vmatprep.mubr.f32.mxu1 %v2240_v33 }
 0x741   : > { %3923 = vmatmul.mubr.f32.gmra.mrb[6].mxu1 %v2241_v36  ;;  %v2243_v48 = vmax.f32 %v4445_v38, 0.0 }
 0x742   : > { %v2242_v45 = vmax.f32 %v4446_v41, 0.0  ;;  %v3874_v46 = vpop.f32.mrb[10].mxu0 }
 0x743   : > { %v4447_v51 = vadd.f32 %v3874_v46, %v3224_v63  ;;  %v2189_v52 = vpop.f32.mrb[11].mxu0 }
 0x744   : > { %v4448_v53 = vadd.f32 %v3224_v63, %v2189_v52  ;;  %3925 = vmatprep.mubr.f32.mxu1 %v2242_v45  ;;  %v2571_v52 = vld [vmem:[#allocation16 + $0x300] sm:$0xff] }
 0x745   : > { %3926 = vmatmul.mubr.f32.gmra.mrb[8].mxu1 %v2243_v48  ;;  %v2245_v57 = vmax.f32 %v4447_v51, 0.0 }
 0x746   : > { %v2244_v55 = vmax.f32 %v4448_v53, 0.0  ;;  %v3877_v56 = vpop.f32.mrb[12].mxu0  ;;  %v2572_v53 = vld [vmem:[#allocation16 + $0x308] sm:$0xff] }
 0x747   : > { %v4449_v58 = vadd.f32 %v3877_v56, %v3224_v63  ;;  %v2199_v59 = vpop.f32.mrb[13].mxu0  ;;  %v4334_v44 = vpack.c.bf16 %v2572_v53, %v2571_v52  ;;  %v2574_v56 = vld [vmem:[#allocation16 + $0x318] sm:$0xff]  ;;  %v2670_v53 = vld [vmem:[#allocation16 + $0x3c0] sm:$0xff] }
 0x748   : > { %v4450_v60 = vadd.f32 %v3224_v63, %v2199_v59  ;;  %3928 = vmatprep.mubr.f32.mxu1 %v2244_v55  ;;  %v2576_v59 = vld [vmem:[#allocation16 + $0x328] sm:$0xff] }
 0x749   : > { %3929 = vmatmul.mubr.f32.gmra.mrb[10].mxu1 %v2245_v57  ;;  %v2247_v4 = vmax.f32 %v4449_v58, 0.0  ;;  %v2575_v58 = vld [vmem:[#allocation16 + $0x320] sm:$0xff] }
 0x74a   : > { %v2246_v61 = vmax.f32 %v4450_v60, 0.0  ;;  %v3880_v62 = vpop.f32.mrb[14].mxu0  ;;  %v4340_v49 = vpack.c.bf16 %v2576_v59, %v2575_v58  ;;  %v2675_v58 = vld [vmem:[#allocation16 + $0x3e8] sm:$0xff] }
 0x74b   : > { %v4451_v18 = vadd.f32 %v3880_v62, %v3224_v63  ;;  %v2209_v19 = vpop.f32.mrb[15].mxu0  ;;  %v2580_v62 = vld [vmem:[#allocation16 + $0x348] sm:$0xff] }
 0x74c   : > { %v4452_v22 = vadd.f32 %v3224_v63, %v2209_v19  ;;  %3931 = vmatprep.mubr.f32.mxu1 %v2246_v61  ;;  %v2579_v61 = vld [vmem:[#allocation16 + $0x340] sm:$0xff]  ;;  %v2582_v19 = vld [vmem:[#allocation16 + $0x358] sm:$0xff] }
 0x74d   : > { %3932 = vmatmul.mubr.f32.gmra.mrb[12].mxu1 %v2247_v4  ;;  %v2249_v6 = vmax.f32 %v4451_v18, 0.0  ;;  %v4346_v4 = vpack.c.bf16 %v2580_v62, %v2579_v61  ;;  %v2581_v18 = vld [vmem:[#allocation16 + $0x350] sm:$0xff]  ;;  %v2750_v61 = vld [vmem:[#allocation16 + $0x408] sm:$0xff] }
 0x74e   : > { %v2248_v5 = vmax.f32 %v4452_v22, 0.0  ;;  %v4349_v22 = vpack.c.bf16 %v2582_v19, %v2581_v18  ;;  %v2752_v18 = vld [vmem:[#allocation16 + $0x418] sm:$0xff] }
 0x750   : > { %3934 = vmatprep.mubr.f32.mxu1 %v2248_v5  ;;  %v2583_v5 = vld [vmem:[#allocation16 + $0x360] sm:$0xff] }
 0x751   : > { %3935 = vmatmul.mubr.f32.gmra.mrb[14].mxu1 %v2249_v6  ;;  %v2584_v6 = vld [vmem:[#allocation16 + $0x368] sm:$0xff] }
 0x752   : > { %2560 = vmatprep.mubr.bf16.mxu1 %v5076_v7  ;;  %v4352_v7 = vpack.c.bf16 %v2584_v6, %v2583_v5  ;;  %v2754_v5 = vld [vmem:[#allocation16 + $0x428] sm:$0xff] }
 0x808   : > { %v3915_v10 = vpop.f32.mrb[0].mxu1 }
 0x809   : > { %v2343_v12 = vadd.f32 %v3915_v10, %v5647_v9  ;;  %v2337_v13 = vpop.f32.mrb[1].mxu1  ;;  %v2586_v10 = vld [vmem:[#allocation16 + $0x378] sm:$0xff] }
 0x80a   : > { %v2338_v2 = vadd.f32 %v5647_v9, %v2337_v13  ;;  %v5079_v13 = vmov 0.0  }
 0x80b   : > { %2417 = vst [vmem:[#allocation20 + $0x8] sm:$0xff] %v2343_v12  ;;  %4074 = vmatprep.mubr.msk.f32.mxu0 %vm5078_vm4, %v5079_v13 }
 0x80c   : > { %2416 = vst [vmem:[#allocation20] sm:$0xff] %v2338_v2  ;;  %v2448_v63 = vpack.c.bf16 %v2343_v12, %v2338_v2  ;;  %v3918_v3 = vpop.f32.mrb[2].mxu1  ;;  %v2837_v2 = vld [vmem:[#allocation17 + $0x100] sm:$0xff] }
 0x80d   : > { %v2353_v14 = vadd.f32 %v3918_v3, %v5647_v9  ;;  %v2347_v15 = vpop.f32.mrb[3].mxu1  ;;  %v2839_v3 = vld [vmem:[#allocation17 + $0x110] sm:$0xff] }
 0x80e   : > { %v2348_v16 = vadd.f32 %v5647_v9, %v2347_v15  ;;  %2529 = vmatpush1.bf16.msra.mxu1 %v2448_v63  ;;  %v2838_v63 = vld [vmem:[#allocation17 + $0x108] sm:$0xff]  ;;  %v2840_v15 = vld [vmem:[#allocation17 + $0x118] sm:$0xff] }
 0x80f   : > { %2419 = vst [vmem:[#allocation20 + $0x18] sm:$0xff] %v2353_v14  ;;  %2530 = vmatprep.subr.bf16.mxu1 %v2451_v25 }
 0x810   : > { %2418 = vst [vmem:[#allocation20 + $0x10] sm:$0xff] %v2348_v16  ;;  %v2450_v17 = vpack.c.bf16 %v2353_v14, %v2348_v16  ;;  %v3921_v20 = vpop.f32.mrb[4].mxu1  ;;  %v4406_v14 = vpack.c.bf16 %v2838_v63, %v2837_v2  ;;  %v4409_v16 = vpack.c.bf16 %v2840_v15, %v2839_v3  ;;  %v2758_v2 = vld [vmem:[#allocation16 + $0x448] sm:$0xff]  ;;  %v2760_v3 = vld [vmem:[#allocation16 + $0x458] sm:$0xff]  ;;  %v2761_v15 = vld [vmem:[#allocation16 + $0x460] sm:$0xff] }
 0x811   : > { %v2363_v21 = vadd.f32 %v3921_v20, %v5647_v9  ;;  %v2357_v28 = vpop.f32.mrb[5].mxu1  ;;  %v2842_v20 = vld [vmem:[#allocation17 + $0x128] sm:$0xff] }
 0x812   : > { %v2358_v32 = vadd.f32 %v5647_v9, %v2357_v28  ;;  %2531 = vmatpush1.bf16.msra.mxu1 %v2450_v17  ;;  %4407 = vmatpush3.bf16.msra.mxu0 %v4406_v14  ;;  %v2841_v17 = vld [vmem:[#allocation17 + $0x120] sm:$0xff]  ;;  %v2843_v28 = vld [vmem:[#allocation17 + $0x130] sm:$0xff] }
 0x813   : > { %2421 = vst [vmem:[#allocation20 + $0x28] sm:$0xff] %v2363_v21  ;;  %2532 = vmatprep.subr.bf16.mxu1 %v2453_v29  ;;  %4408 = vmatprep.subr.bf16.mxu0 %v5077_v8 }
 0x814   : > { %2420 = vst [vmem:[#allocation20 + $0x20] sm:$0xff] %v2358_v32  ;;  %v2452_v33 = vpack.c.bf16 %v2363_v21, %v2358_v32  ;;  %v3924_v34 = vpop.f32.mrb[6].mxu1  ;;  %v4412_v21 = vpack.c.bf16 %v2842_v20, %v2841_v17  ;;  %v2844_v32 = vld [vmem:[#allocation17 + $0x138] sm:$0xff]  ;;  %v2763_v20 = vld [vmem:[#allocation16 + $0x470] sm:$0xff] }
 0x815   : > { %v2373_v23 = vadd.f32 %v3924_v34, %v5647_v9  ;;  %v2367_v24 = vpop.f32.mrb[7].mxu1  ;;  %v2845_v34 = vld [vmem:[#allocation17 + $0x140] sm:$0xff] }
 0x816   : > { %v2368_v25 = vadd.f32 %v5647_v9, %v2367_v24  ;;  %2533 = vmatpush1.bf16.msra.mxu1 %v2452_v33  ;;  %4410 = vmatpush3.bf16.msra.mxu0 %v4409_v16  ;;  %v4415_v33 = vpack.c.bf16 %v2844_v32, %v2843_v28  ;;  %v2762_v16 = vld [vmem:[#allocation16 + $0x468] sm:$0xff]  ;;  %v2569_v32 = vld [vmem:[#allocation10] sm:$0xff] }
 0x817   : > { %2423 = vst [vmem:[#allocation20 + $0x38] sm:$0xff] %v2373_v23  ;;  %2534 = vmatprep.subr.bf16.mxu1 %v2455_v35  ;;  %4411 = vmatprep.subr.bf16.mxu0 %v5077_v8  ;;  %v4400_v17 = vpack.c.bf16 %v2762_v16, %v2761_v15 }
 0x818   : > { %2422 = vst [vmem:[#allocation20 + $0x30] sm:$0xff] %v2368_v25  ;;  %v2454_v36 = vpack.c.bf16 %v2373_v23, %v2368_v25  ;;  %v3927_v38 = vpop.f32.mrb[8].mxu1  ;;  %v2846_v23 = vld [vmem:[#allocation17 + $0x148] sm:$0xff]  ;;  %v2847_v25 = vld [vmem:[#allocation17 + $0x150] sm:$0xff] }
 0x819   : > { %v2383_v26 = vadd.f32 %v3927_v38, %v5647_v9  ;;  %v2377_v27 = vpop.f32.mrb[9].mxu1  ;;  %v4418_v24 = vpack.c.bf16 %v2846_v23, %v2845_v34  ;;  %v2852_v34 = vld [vmem:[#allocation17 + $0x178] sm:$0xff] }
 0x81a   : > { %v2378_v29 = vadd.f32 %v5647_v9, %v2377_v27  ;;  %2535 = vmatpush1.bf16.msra.mxu1 %v2454_v36  ;;  %4413 = vmatpush3.bf16.msra.mxu0 %v4412_v21  ;;  %v2848_v36 = vld [vmem:[#allocation17 + $0x158] sm:$0xff]  ;;  %v2850_v27 = vld [vmem:[#allocation17 + $0x168] sm:$0xff] }
 0x81b   : > { %2425 = vst [vmem:[#allocation20 + $0x48] sm:$0xff] %v2383_v26  ;;  %2536 = vmatprep.subr.bf16.mxu1 %v2457_v39  ;;  %4414 = vmatprep.subr.bf16.mxu0 %v5077_v8  ;;  %v4421_v38 = vpack.c.bf16 %v2848_v36, %v2847_v25  ;;  %v2764_v21 = vld [vmem:[#allocation16 + $0x478] sm:$0xff] }
 0x81c   : > { %2424 = vst [vmem:[#allocation20 + $0x40] sm:$0xff] %v2378_v29  ;;  %v2456_v40 = vpack.c.bf16 %v2383_v26, %v2378_v29  ;;  %v3930_v41 = vpop.f32.mrb[10].mxu1  ;;  %v2849_v26 = vld [vmem:[#allocation17 + $0x160] sm:$0xff]  ;;  %v4403_v28 = vpack.c.bf16 %v2764_v21, %v2763_v20 }
 0x81d   : > { %v2393_v30 = vadd.f32 %v3930_v41, %v5647_v9  ;;  %v2387_v31 = vpop.f32.mrb[11].mxu1  ;;  %v4424_v29 = vpack.c.bf16 %v2850_v27, %v2849_v26  ;;  %v2663_v41 = vld [vmem:[#allocation16 + $0x388] sm:$0xff]  ;;  %v3235_v27 = vld [vmem:[#allocation19 + $0x5] ss:$0 sm:$0xff] }
 0x81e   : > { %v2388_v35 = vadd.f32 %v5647_v9, %v2387_v31  ;;  %2537 = vmatpush1.bf16.msra.mxu1 %v2456_v40  ;;  %4416 = vmatpush3.bf16.msra.mxu0 %v4415_v33  ;;  %v2662_v40 = vld [vmem:[#allocation16 + $0x380] sm:$0xff]  ;;  %v2664_v31 = vld [vmem:[#allocation16 + $0x390] sm:$0xff] }
 0x81f   : > { %2427 = vst [vmem:[#allocation20 + $0x58] sm:$0xff] %v2393_v30  ;;  %2538 = vmatprep.subr.bf16.mxu1 %v2459_v42  ;;  %4417 = vmatprep.subr.bf16.mxu0 %v5077_v8  ;;  %v2851_v33 = vld [vmem:[#allocation17 + $0x170] sm:$0xff] }
 0x820   : > { %2426 = vst [vmem:[#allocation20 + $0x50] sm:$0xff] %v2388_v35  ;;  %v2458_v45 = vpack.c.bf16 %v2393_v30, %v2388_v35  ;;  %v3933_v46 = vpop.f32.mrb[12].mxu1  ;;  %v4358_v30 = vpack.c.bf16 %v2663_v41, %v2662_v40  ;;  %v2665_v35 = vld [vmem:[#allocation16 + $0x398] sm:$0xff]  ;;  %v4427_v23 = vpack.c.bf16 %v2852_v34, %v2851_v33 }
 0x821   : > { %v2403_v37 = vadd.f32 %v3933_v46, %v5647_v9  ;;  %v2397_v11 = vpop.f32.mrb[13].mxu1 }
 0x822   : > { %v2398_v39 = vadd.f32 %v5647_v9, %v2397_v11  ;;  %2539 = vmatpush1.bf16.msra.mxu1 %v2458_v45  ;;  %4419 = vmatpush3.bf16.msra.mxu0 %v4418_v24  ;;  %v4361_v11 = vpack.c.bf16 %v2665_v35, %v2664_v31  ;;  %v3234_v24 = vld [vmem:[#allocation19 + $0x4] ss:$0 sm:$0xff] }
 0x823   : > { %2429 = vst [vmem:[#allocation20 + $0x68] sm:$0xff] %v2403_v37  ;;  %2540 = vmatprep.subr.bf16.mxu1 %v2461_v47  ;;  %v2573_v47 = vld [vmem:[#allocation16 + $0x310] sm:$0xff]  ;;  %4420 = vmatprep.subr.bf16.mxu0 %v5077_v8 }
 0x824   : > { %2428 = vst [vmem:[#allocation20 + $0x60] sm:$0xff] %v2398_v39  ;;  %v2460_v48 = vpack.c.bf16 %v2403_v37, %v2398_v39  ;;  %v3936_v51 = vpop.f32.mrb[14].mxu1  ;;  %v4337_v57 = vpack.c.bf16 %v2574_v56, %v2573_v47  ;;  %v2673_v47 = vld [vmem:[#allocation16 + $0x3d8] sm:$0xff] }
 0x825   : > { %v2413_v0 = vadd.f32 %v3936_v51, %v5647_v9  ;;  %v2407_v1 = vpop.f32.mrb[15].mxu1  ;;  %v2667_v51 = vld [vmem:[#allocation16 + $0x3a8] sm:$0xff] }
 0x826   : > { %v2408_v42 = vadd.f32 %v5647_v9, %v2407_v1  ;;  %2541 = vmatpush1.bf16.msra.mxu1 %v2460_v48  ;;  %v2585_v9 = vld [vmem:[#allocation16 + $0x370] sm:$0xff]  ;;  %4422 = vmatpush3.bf16.msra.mxu0 %v4421_v38  ;;  %v2666_v48 = vld [vmem:[#allocation16 + $0x3a0] sm:$0xff] }
 0x827   : > { %2431 = vst [vmem:[#allocation20 + $0x78] sm:$0xff] %v2413_v0  ;;  %2542 = vmatprep.subr.bf16.mxu1 %v2463_v54  ;;  %v2578_v54 = vld [vmem:[#allocation16 + $0x338] sm:$0xff]  ;;  %v4355_v12 = vpack.c.bf16 %v2586_v10, %v2585_v9  ;;  %4423 = vmatprep.subr.bf16.mxu0 %v5077_v8  ;;  %v2668_v1 = vld [vmem:[#allocation16 + $0x3b0] sm:$0xff] }
 0x828   : > { %2430 = vst [vmem:[#allocation20 + $0x70] sm:$0xff] %v2408_v42  ;;  %v2462_v55 = vpack.c.bf16 %v2413_v0, %v2408_v42  ;;  %v4343_v60 = vpack.c.bf16 %v2578_v54, %v2577_v50  ;;  %v4364_v0 = vpack.c.bf16 %v2667_v51, %v2666_v48  ;;  %v2669_v42 = vld [vmem:[#allocation16 + $0x3b8] sm:$0xff] }
 0x829   : > { %v4367_v52 = vpack.c.bf16 %v2669_v42, %v2668_v1  ;;  %v2677_v50 = vld [vmem:[#allocation16 + $0x3f8] sm:$0xff] }
 0x82a   : > { %2543 = vmatpush1.bf16.msra.mxu1 %v2462_v55  ;;  %4425 = vmatpush3.bf16.msra.mxu0 %v4424_v29  ;;  %v2671_v55 = vld [vmem:[#allocation16 + $0x3c8] sm:$0xff]  ;;  %v2756_v9 = vld [vmem:[#allocation16 + $0x438] sm:$0xff] }
 0x82b   : > { %4333 = vmatprep.subr.bf16.mxu1 %v5077_v8  ;;  %4426 = vmatprep.subr.bf16.mxu0 %v5077_v8 }
 0x82d   : > { %2561 = vmatmul.mubr.bf16.vlgmr.msra.gmra.mrb[16].mxu1 %v2520_v43  ;;  %v4370_v43 = vpack.c.bf16 %v2671_v55, %v2670_v53 }
 0x82e   : > { %4335 = vmatpush3.bf16.msra.mxu1 %v4334_v44  ;;  %3969 = vmatprep.mubr.msk.f32.mxu1 %vm5078_vm4, %v5079_v13  ;;  %v2672_v44 = vld [vmem:[#allocation16 + $0x3d0] sm:$0xff] }
 0x82f   : > { %4336 = vmatprep.subr.bf16.mxu1 %v5077_v8  ;;  %v4373_v56 = vpack.c.bf16 %v2673_v47, %v2672_v44  ;;  %4428 = vmatpush3.bf16.msra.mxu0 %v4427_v23 }
 0x832   : > { %4338 = vmatpush3.bf16.msra.mxu1 %v4337_v57  ;;  %v2674_v57 = vld [vmem:[#allocation16 + $0x3e0] sm:$0xff] }
 0x833   : > { %4339 = vmatprep.subr.bf16.mxu1 %v5077_v8  ;;  %v4376_v59 = vpack.c.bf16 %v2675_v58, %v2674_v57 }
 0x836   : > { %4341 = vmatpush3.bf16.msra.mxu1 %v4340_v49  ;;  %v2676_v49 = vld [vmem:[#allocation16 + $0x3f0] sm:$0xff] }
 0x837   : > { %4342 = vmatprep.subr.bf16.mxu1 %v5077_v8  ;;  %v4379_v54 = vpack.c.bf16 %v2677_v50, %v2676_v49 }
 0x83a   : > { %4344 = vmatpush3.bf16.msra.mxu1 %v4343_v60  ;;  %v2749_v60 = vld [vmem:[#allocation16 + $0x400] sm:$0xff] }
 0x83b   : > { %4345 = vmatprep.subr.bf16.mxu1 %v5077_v8  ;;  %v4382_v62 = vpack.c.bf16 %v2750_v61, %v2749_v60 }
 0x83e   : > { %4347 = vmatpush3.bf16.msra.mxu1 %v4346_v4  ;;  %v2751_v4 = vld [vmem:[#allocation16 + $0x410] sm:$0xff] }
 0x83f   : > { %4348 = vmatprep.subr.bf16.mxu1 %v5077_v8  ;;  %v4385_v19 = vpack.c.bf16 %v2752_v18, %v2751_v4 }
 0x842   : > { %4350 = vmatpush3.bf16.msra.mxu1 %v4349_v22  ;;  %v2753_v22 = vld [vmem:[#allocation16 + $0x420] sm:$0xff] }
 0x843   : > { %4351 = vmatprep.subr.bf16.mxu1 %v5077_v8  ;;  %v4388_v6 = vpack.c.bf16 %v2754_v5, %v2753_v22 }
 0x846   : > { %4353 = vmatpush3.bf16.msra.mxu1 %v4352_v7  ;;  %v2755_v7 = vld [vmem:[#allocation16 + $0x430] sm:$0xff] }
 0x847   : > { %4354 = vmatprep.subr.bf16.mxu1 %v5077_v8  ;;  %v4391_v10 = vpack.c.bf16 %v2756_v9, %v2755_v7 }
 0x84a   : > { %4356 = vmatpush3.bf16.msra.mxu1 %v4355_v12  ;;  %v2757_v12 = vld [vmem:[#allocation16 + $0x440] sm:$0xff] }
 0x84b   : > { %4357 = vmatprep.subr.bf16.mxu1 %v5077_v8  ;;  %v4394_v63 = vpack.c.bf16 %v2758_v2, %v2757_v12 }
 0x900   : > { %v2562_v45 = vpop.f32.mrb[16].mxu1 }
 0x901   : > { %v2564_v46 = vpop.f32.mrb[17].mxu1  ;;  %3970 = vmatmul.mubr.f32.vlgmr.msra.gmra.mrb[20].mxu1 %v2562_v45 }
 0x902   : > { %4359 = vmatpush3.bf16.msra.mxu1 %v4358_v30  ;;  %v2566_v37 = vpop.f32.mrb[18].mxu1  ;;  %4004 = vmatprep.mubr.msk.f32.mxu1 %vm5078_vm4, %v5079_v13 }
 0x903   : > { %v2567_v39 = vpop.f32.mrb[19].mxu1  ;;  %4360 = vmatprep.subr.bf16.mxu1 %v5077_v8 }
 0x906   : > { %4362 = vmatpush3.bf16.msra.mxu1 %v4361_v11 }
 0x907   : > { %4363 = vmatprep.subr.bf16.mxu1 %v5077_v8 }
 0x90a   : > { %4365 = vmatpush3.bf16.msra.mxu1 %v4364_v0 }
 0x90b   : > { %4366 = vmatprep.subr.bf16.mxu1 %v5077_v8 }
 0x90e   : > { %4368 = vmatpush3.bf16.msra.mxu1 %v4367_v52 }
 0x90f   : > { %4369 = vmatprep.subr.bf16.mxu1 %v5077_v8 }
 0x912   : > { %4371 = vmatpush3.bf16.msra.mxu1 %v4370_v43 }
 0x913   : > { %4372 = vmatprep.subr.bf16.mxu1 %v5077_v8 }
 0x916   : > { %4374 = vmatpush3.bf16.msra.mxu1 %v4373_v56 }
 0x917   : > { %4375 = vmatprep.subr.bf16.mxu1 %v5077_v8 }
 0x91a   : > { %4377 = vmatpush3.bf16.msra.mxu1 %v4376_v59 }
 0x91b   : > { %4378 = vmatprep.subr.bf16.mxu1 %v5077_v8 }
 0x91e   : > { %4380 = vmatpush3.bf16.msra.mxu1 %v4379_v54 }
 0x91f   : > { %4381 = vmatprep.subr.bf16.mxu1 %v5077_v8 }
 0x921   : > { %4005 = vmatmul.mubr.f32.vlgmr.msra.gmra.mrb[20].mxu1 %v2564_v46 }
 0x922   : > { %4383 = vmatpush3.bf16.msra.mxu1 %v4382_v62  ;;  %4039 = vmatprep.mubr.msk.f32.mxu1 %vm5078_vm4, %v5079_v13  ;;  %v2759_v13 = vld [vmem:[#allocation16 + $0x450] sm:$0xff] }
 0x923   : > { %4384 = vmatprep.subr.bf16.mxu1 %v5077_v8  ;;  %v4397_v14 = vpack.c.bf16 %v2760_v3, %v2759_v13 }
 0x926   : > { %4386 = vmatpush3.bf16.msra.mxu1 %v4385_v19 }
 0x927   : > { %4387 = vmatprep.subr.bf16.mxu1 %v5077_v8 }
 0x92a   : > { %4389 = vmatpush3.bf16.msra.mxu1 %v4388_v6 }
 0x92b   : > { %4390 = vmatprep.subr.bf16.mxu1 %v5077_v8 }
 0x92e   : > { %4392 = vmatpush3.bf16.msra.mxu1 %v4391_v10 }
 0x92f   : > { %4393 = vmatprep.subr.bf16.mxu1 %v5077_v8 }
 0x932   : > { %4395 = vmatpush3.bf16.msra.mxu1 %v4394_v63 }
 0x933   : > { %4396 = vmatprep.subr.bf16.mxu1 %v5077_v8 }
 0x936   : > { %4398 = vmatpush3.bf16.msra.mxu1 %v4397_v14 }
 0x937   : > { %4399 = vmatprep.subr.bf16.mxu1 %v5077_v8 }
 0x93a   : > { %4401 = vmatpush3.bf16.msra.mxu1 %v4400_v17 }
 0x93b   : > { %4402 = vmatprep.subr.bf16.mxu1 %v5077_v8 }
 0x93e   : > { %4404 = vmatpush3.bf16.msra.mxu1 %v4403_v28 }
 0x941   : > { %4040 = vmatmul.mubr.f32.vlgmr.msra.gmra.mrb[20].mxu1 %v2569_v32 }
 0xa14   : > { %v2831_v25 = vpop.f32.mrb[20].mxu1 }
 0xa15   : > { %v4453_v36 = vadd.f32 %v3234_v24, %v2831_v25  ;;  %v4041_v38 = vpop.f32.mrb[21].mxu1 }
 0xa17   : > { %v2836_v26 = vmax.f32 %v4453_v36, 0.0 }
 0xa19   : > { %4075 = vmatmul.mubr.f32.vlgmr.msra.gmra.mrb[16].mxu0 %v2836_v26 }
 0xaec   : > { %v2924_v29 = vpop.f32.mrb[16].mxu0 }
 0xaed   : > { %v2925_v40 = vadd.f32 %v3235_v27, %v2924_v29  ;;  %v4076_v41 = vpop.f32.mrb[17].mxu0 }
 0xaef   : > { %2928 = vst [vmem:[#allocation23] sm:$0xff] %v2925_v40 }
 0xaf0 PF: > { %s5925_s5 = sld [smem:[#allocation35_spill]]  ;;  %s5926_s11 = sld [smem:[#allocation39_spill]] }
 0xaf1   : > { %s5927_s9 = sld [smem:[#allocation46_spill]]  ;;  %s2956_s10 = sshll.u32 %s5529_s23, 4  ;;  %s5732_s10 = int_to_ptr.vmem [resolvable:$true] %s2956_s10 }
 0xaf2   : > { %s2930_s18 = scalar_lea.sflag [#allocation22], %s5492_s25  ;;  %s4911_s16 = scalar_lea.vmem %s5732_s10, 256 }
 0xaf3   : > { %p4912_p5 = scmp.ne.s32.totalorder %s5732_s10, %s4911_s16  ;;  %s5080_s3 = smov [#allocation21]  }
 0xaf4   : > { %s4915_s19 = sshll.u32 %s5080_s3, 4  ;;  %s4916_s19 = int_to_ptr.vmem [resolvable:$false] %s4915_s19 }
 0xaf5   : > { %s4917_s26 = scalar_lea.vmem %s4916_s19, 512  ;;  %p4918_p8 = scmp.lt.s32.totalorder %s5732_s10, %s4916_s19 }
 0xaf6   : > { %s3248_s27 = sshll.u32 %s5925_s5, 8  ;;  %p5928_p2 = scmp.ne.s32.totalorder %s5926_s11, 0 }
 0xaf7   : > { %s5729_s30 = scalar_lea.hbm %s5927_s9, %s3248_s27  ;;  %p4919_p4 = scmp.lt.s32.totalorder %s4917_s26, %s4911_s16 }
 0xaf8   : > { %p4913_p3 = pnand %p4912_p5, %p5928_p2 }
 0xaf9   : > { %p4920_p1 = por %p4919_p4, %p4918_p8 }
 0xafa   : > { %p4914_p6 = pneg %p4913_p3 }
 0xafc   : > { %p4921_p11 = pnand %p4920_p1, %p4914_p6 }
 0xafe   : > { %4924 = shalt.err (!%p4921_p11)
}
 0xaff   : > { %s4925_s12 = scalar_lea.hbm %s5729_s30, 256  ;;  %s4929_s22 = scalar_lea.hbm %s5927_s9, 512 }
 0xb00   : > { %p4926_p0 = scmp.ne.s32.totalorder %s5729_s30, %s4925_s12  ;;  %p4930_p10 = scmp.lt.u32.totalorder %s5729_s30, %s5927_s9 }
 0xb01   : > { %p4931_p12 = scmp.lt.u32.totalorder %s4929_s22, %s4925_s12  ;;  %p4933_p5 = scmp.lt.u32.totalorder %s4925_s12, %s5729_s30 }
 0xb02   : > { %p4927_p9 = pnand %p4926_p0, %p5928_p2 }
 0xb03   : > { %p4932_p13 = por %p4931_p12, %p4930_p10 }
 0xb04   : > { %p4928_p7 = pneg %p4927_p9 }
 0xb05   : > { %p4934_p3 = por %p4933_p5, %p4932_p13 }
 0xb07   : > { %p4935_p6 = pnand %p4934_p3, %p4928_p7 }
 0xb09   : > { %4938 = shalt.err (!%p4935_p6)
}
 0xb0a   : > { %s5081_s14 = smov 128   ;;  %s5082_s7 = smov 8  }
 0xb0b   : > { %4524 = dma.vmem_to_hbm [thread:$0]  (%p5928_p2), %s5732_s10, 256, %s5729_s30, %s2930_s18, %s5081_s14, %s5081_s14, %s5082_s7  }
 0xb0c   : > { %s5083_s2 = smov [#allocation20]   ;;  %s5084_s15 = smov [#allocation23]  }
 0xb0d   : > { %s2940_s23 = sshll.u32 %s5083_s2, 4  ;;  %s2970_s27 = sshll.u32 %s5084_s15, 4  ;;  %s2941_s23 = int_to_ptr.vmem [resolvable:$true] %s2940_s23  ;;  %s2971_s27 = int_to_ptr.vmem [resolvable:$true] %s2970_s27 }
 0xb0e   : > { %s4939_s17 = scalar_lea.vmem %s2941_s23, 2048  ;;  %p5929_p4 = scmp.eq.s32.totalorder %s5925_s5, 1 }
 0xb0f   : > { %p4940_p8 = scmp.ne.s32.totalorder %s2941_s23, %s4939_s17  ;;  %p4946_p0 = scmp.lt.s32.totalorder %s2941_s23, %s2941_s23 }
 0xb10   : > { %p4947_p9 = scmp.lt.s32.totalorder %s4939_s17, %s4939_s17 }
 0xb11   : > { %p4941_p1 = pnand %p4940_p8, %p5929_p4 }
 0xb12   : > { %p4948_p7 = por %p4947_p9, %p4946_p0 }
 0xb13   : > { %p4942_p11 = pneg %p4941_p1 }
 0xb15   : > { %p4949_p10 = pnand %p4948_p7, %p4942_p11 }
 0xb17   : > { %4952 = shalt.err (!%p4949_p10)
}
 0xb18   : > { %s5930_s11 = sld [smem:[#allocation45_spill]]  ;;  %p5931_p12 = pmov %p5929_p4 }
 0xb1e   : > { %s4953_s25 = scalar_lea.hbm %s5930_s11, 2048 }
 0xb1f   : > { %p4954_p2 = scmp.ne.s32.totalorder %s5930_s11, %s4953_s25  ;;  %p4959_p3 = scmp.lt.u32.totalorder %s4953_s25, %s5930_s11 }
 0xb21   : > { %p4955_p13 = pnand %p4954_p2, %p5931_p12 }
 0xb23   : > { %p4956_p5 = pneg %p4955_p13 }
 0xb25   : > { %p4961_p6 = pnand %p4959_p3, %p4956_p5 }
 0xb27   : > { %4964 = shalt.err (!%p4961_p6)
}
 0xb28   : > { %p5932_p8 = pmov %p5929_p4  ;;  %s4965_s12 = scalar_lea.vmem %s2971_s27, 128 }
 0xb29   : > { %p4966_p4 = scmp.ne.s32.totalorder %s2971_s27, %s4965_s12  ;;  %p4972_p9 = scmp.lt.s32.totalorder %s2971_s27, %s2971_s27 }
 0xb2a   : > { %4523 = dma.vmem_to_hbm [thread:$0]  (%p5932_p8), %s2941_s23, 2048, %s5930_s11, [#allocation7], %s5081_s14, %s5081_s14, %s5082_s7  }
 0xb2b   : > { %p5933_p1 = pmov %p5932_p8  ;;  %p4973_p7 = scmp.lt.s32.totalorder %s4965_s12, %s4965_s12 }
 0xb2d   : > { %p4967_p11 = pnand %p4966_p4, %p5933_p1  ;;  %p4974_p10 = por %p4973_p7, %p4972_p9 }
 0xb2f   : > { %p4968_p0 = pneg %p4967_p11 }
 0xb31   : > { %p4975_p2 = pnand %p4974_p10, %p4968_p0 }
 0xb33   : > { %4978 = shalt.err (!%p4975_p2)
}
 0xb34   : > { %s5934_s22 = sld [smem:[#allocation47_spill]]  ;;  %p5935_p13 = pmov %p5933_p1 }
 0xb3a   : > { %s4979_s21 = scalar_lea.hbm %s5934_s22, 128 }
 0xb3b   : > { %p4980_p12 = scmp.ne.s32.totalorder %s5934_s22, %s4979_s21  ;;  %p4985_p6 = scmp.lt.u32.totalorder %s4979_s21, %s5934_s22 }
 0xb3d   : > { %p4981_p5 = pnand %p4980_p12, %p5935_p13 }
 0xb3f   : > { %p4982_p3 = pneg %p4981_p5 }
 0xb41   : > { %p4987_p8 = pnand %p4985_p6, %p4982_p3 }
 0xb43   : > { %4990 = shalt.err (!%p4987_p8)
}
 0xb44   : > { %p5936_p4 = pmov %p5933_p1 }
 0xb46   : > { %4526 = dma.vmem_to_hbm [thread:$0]  (%p5936_p4), %s2971_s27, 128, %s5934_s22, [#allocation22]  }
 0xb47   : > { %5032 = dma.done.wait (%p5933_p1), [#allocation7], 2048   ;;  %p5937_p11 = pmov %p5933_p1 }
 0xb48   : > { %p5938_p0 = pmov %p5933_p1 }
 0xb49   : > { %5034 = vsyncadd (%p5937_p11), [#allocation7], 4294965248 }
 0xb4a   : > { %5036 = dma.done.wait (%p5938_p0), [#allocation22], 128   ;;  %p5939_p9 = pmov %p5938_p0 }
 0xb4c   : > { %5038 = vsyncadd (%p5939_p9), [#allocation22], 4294967168 }
 0xb4d PF: > { %s5940_s17 = sadd.s32 4294967294, %s5057_s20   ;;  %s5941_s13 = sld [smem:[#allocation40_spill]] }
 0xb4e   : > { %s2990_s16 = sand.u32 1, %s5940_s17   ;;  %p5943_p10 = scmp.ge.s32.totalorder %s5057_s20, 2 }
 0xb4f   : > { %s2991_s27 = scalar_lea.sflag [#allocation22], %s2990_s16 }
 0xb53   : > { %p5942_p7 = scmp.ne.s32.totalorder %s5941_s13, 0 }
 0xb55   : > { %p4562_p2 = pnand %p5943_p10, %p5942_p7 }
 0xb57   : > { %5040 = dma.done.wait (!%p4562_p2), %s2991_s27, 256  }
 0xb58   : > { %5042 = vsyncadd (!%p4562_p2), %s2991_s27, 4294967040  ;;  %s5944_s20 = sld [smem:[#allocation36_spill]]  ;;  %s5945_s17 = sld [smem:[#allocation33_spill]] }
 0xb59   : > { %s5946_s18 = sld [smem:[#allocation34_spill]]  ;;  %s5947_s19 = sld [smem:[#allocation37_spill]] }
 0xb5e   : > { %p32_p12 = scmp.ge.s32.totalorder %s5944_s20, 4  }
 0xb60   :  { %34 = sbr.rel (!%p32_p12) target bundleno = 19 (0x13), region = 175 }
 0xb67   :  { %2996 = vsyncpa [#allocation6], 1 }
 0xb68   :  { %2998 = vsyncpa [#allocation6 + $0x1], 1 }
 0xb69   :  { %2999 = vsyncpa [#allocation9], 1 }
 0xb6a   :  { %3001 = vsyncpa [#allocation9 + $0x1], 1 }
 0xb6b   :  { %3002 = vsyncpa [#allocation12], 1 }
 0xb6c   :  { %3004 = vsyncpa [#allocation12 + $0x1], 1 }
 0xb6d   :  { %3005 = vsyncpa [#allocation15], 1 }
 0xb6e   :  { %3006 = vsyncpa [#allocation18], 1 }
 0xb6f   :  { %3007 = vsyncpa [#allocation7], 1 }
 0xb70   :  { %3009 = vsyncpa [#allocation7 + $0x1], 1 }
 0xb71   :  { %3010 = vsyncpa [#allocation22], 1 }
 0xb72   :  { %3012 = vsyncpa [#allocation22 + $0x1], 1 }

</bundles_post_ra>
